<compile_context>
chip_gen: v5e
topology: v5e:2x2
jax: 0.10.0
libtpu: 0.0.40
codegen_flags: <defaults>
</compile_context>

<pallas_src>
import functools

import jax
import jax.numpy as jnp
import numpy as np
from jax.experimental import pallas as pl
from jax.experimental.pallas import tpu as pltpu


# ----------------------------------------------------------------------------- #
# Relative position index (pure numpy, mirrors the PyTorch helper exactly)
# ----------------------------------------------------------------------------- #
def get_relative_position_index(grid_win_h: int, grid_win_w: int) -> np.ndarray:
    coords = np.stack(
        np.meshgrid(np.arange(grid_win_h), np.arange(grid_win_w), indexing="ij")
    )                                                   # (2, gh, gw)
    coords_flatten = coords.reshape(2, -1)              # (2, N)
    rel = coords_flatten[:, :, None] - coords_flatten[:, None, :]  # (2, N, N)
    rel = rel.transpose(1, 2, 0).copy()                 # (N, N, 2)
    rel[:, :, 0] += grid_win_h - 1
    rel[:, :, 1] += grid_win_w - 1
    rel[:, :, 0] *= 2 * grid_win_w - 1
    return rel.sum(-1)                                  # (N, N)


# ----------------------------------------------------------------------------- #
# One-time parameter preparation (NOT per forward call)
# ----------------------------------------------------------------------------- #
def prepare_params(params, n_head: int, *, mxu_dtype=jnp.bfloat16):
    """Fold the attention scale into the Q weights, pre-gather the relative
    positional bias into a dense (H, N, N) table, and cast MXU operands to
    `mxu_dtype` (bf16 recommended on v6e/v7x; pass jnp.float32 for a pure-f32
    MXU path)."""
    C = params["w_qkv"].shape[0]
    H = n_head
    scale = float(n_head) ** (-0.5)   # NOTE: module scales by n_head, not head_dim

    w_qkv = jnp.asarray(params["w_qkv"], jnp.float32)
    b_qkv = jnp.asarray(params["b_qkv"], jnp.float32)
    # q = (x @ Wq + bq) * scale  ==  x @ (Wq*scale) + bq*scale
    w_qkv = w_qkv.at[:, :C].multiply(scale)
    b_qkv = b_qkv.at[:C].multiply(scale)

    rel_idx = jnp.asarray(params["rel_pos_index"], jnp.int32)
    N = rel_idx.shape[0]
    table = jnp.asarray(params["rel_pos_bias_table"], jnp.float32)
    rel_bias = table[rel_idx.reshape(-1)].reshape(N, N, H).transpose(2, 0, 1)  # (H,N,N)

    return {
        "w_qkv": w_qkv.astype(mxu_dtype),                       # (C, 3C)
        "b_qkv": b_qkv.reshape(1, 3 * C),                       # (1, 3C) f32
        "w_proj": jnp.asarray(params["w_proj"], jnp.float32).astype(mxu_dtype),
        "b_proj": jnp.asarray(params["b_proj"], jnp.float32).reshape(1, C),
        "rel_bias": rel_bias,                                   # (H, N, N) f32
    }


# ----------------------------------------------------------------------------- #
# Pallas kernel: one grid step == BB windows (BB*N token rows)
# ----------------------------------------------------------------------------- #
def _rel_attn_kernel(
    x_ref,        # (BB*N, C)   VMEM
    wqkv_ref,     # (C, 3C)     VMEM   (scale already folded into Q columns)
    bqkv_ref,     # (1, 3C)     VMEM   f32
    wproj_ref,    # (C, C)      VMEM
    bproj_ref,    # (1, C)      VMEM   f32
    bias_ref,     # (H, N, N)   VMEM   f32 relative positional bias
    o_ref,        # (BB*N, C)   VMEM
    *,
    n_head: int,
    n_tok: int,
):
    rows, C = x_ref.shape
    H, N = n_head, n_tok
    hd = C // H
    BB = rows // N
    cdt = wqkv_ref.dtype                          # MXU operand dtype (bf16 or f32)

    # ---- fused QKV projection: one big-M MXU matmul over BB windows --------
    x = x_ref[...].astype(cdt)                                        # (BB*N, C)
    qkv = jnp.dot(x, wqkv_ref[...], preferred_element_type=jnp.float32)
    qkv = qkv + bqkv_ref[...]                                         # (BB*N, 3C) f32
    qkv = qkv.reshape(BB, N, 3 * C)               # leading-dim split (layout-free)

    bias = bias_ref[...].astype(jnp.float32)      # (H, N, N)

    # ---- attention, batched over BB windows per head (static H loop) -------
    head_outs = []
    for h in range(H):
        q = qkv[:, :, h * hd:(h + 1) * hd].astype(cdt)                # (BB, N, hd)
        k = qkv[:, :, C + h * hd:C + (h + 1) * hd].astype(cdt)
        v = qkv[:, :, 2 * C + h * hd:2 * C + (h + 1) * hd].astype(cdt)

        s = jnp.einsum("bnd,bmd->bnm", q, k,
                       preferred_element_type=jnp.float32)            # (BB, N, N)
        s = s + bias[h]
        s = s - jnp.max(s, axis=-1, keepdims=True)                    # stable softmax
        p = jnp.exp(s)
        p = p * pl.reciprocal(jnp.sum(p, axis=-1, keepdims=True), approx=True)

        head_outs.append(
            jnp.einsum("bnm,bmd->bnd", p.astype(cdt), v,
                       preferred_element_type=jnp.float32)            # (BB, N, hd)
        )

    out = jnp.concatenate(head_outs, axis=-1)     # (BB, N, C)  == transpose+reshape
    out = out.reshape(rows, C).astype(cdt)        # big-M rows for the output proj

    # ---- output projection --------------------------------------------------
    y = jnp.dot(out, wproj_ref[...], preferred_element_type=jnp.float32)
    y = y + bproj_ref[...]
    o_ref[...] = y.astype(o_ref.dtype)


# ----------------------------------------------------------------------------- #
# Wrapper: batch blocking, padding, pallas_call
# ----------------------------------------------------------------------------- #
def relative_self_attention(x, prepared, n_head: int, *,
                            block_windows=None, target_rows: int = 128):
    """x: (B, N, C). `prepared` = prepare_params(...) output.
    target_rows: 128 saturates the v5e MXU; use 256 on v6e/v7x (keep the grid
    length >= 2 on v7x so both TensorCores get work)."""
    B, N, C = x.shape
    H = n_head

    w_qkv = prepared["w_qkv"]
    b_qkv = prepared["b_qkv"]
    w_proj = prepared["w_proj"]
    b_proj = prepared["b_proj"]
    rel_bias = prepared["rel_bias"]

    # -- how many windows to fuse per grid step -------------------------------
    if block_windows is None:
        BB = max(1, min(B, max(1, target_rows // N)))
    else:
        BB = max(1, min(B, int(block_windows)))
    # block sublane dim must be a multiple of 8 (or equal the full dim)
    while (BB * N) % 8 != 0 and BB < B:
        BB += 1
    if (BB * N) % 8 != 0:
        BB = B                                   # single full-array block is legal
    G = -(-B // BB)                              # ceil(B / BB)
    B_pad = G * BB
    rows = BB * N

    x_flat = x.reshape(B * N, C)
    if B_pad != B:
        x_flat = jnp.pad(x_flat, ((0, (B_pad - B) * N), (0, 0)))

    kernel = functools.partial(_rel_attn_kernel, n_head=H, n_tok=N)

    out_flat = pl.pallas_call(
        kernel,
        out_shape=jax.ShapeDtypeStruct((B_pad * N, C), x.dtype),
        grid=(G,),
        in_specs=[
            pl.BlockSpec((rows, C), lambda b: (b, 0)),        # x block: BB windows
            pl.BlockSpec((C, 3 * C), lambda b: (0, 0)),       # weights stay resident
            pl.BlockSpec((1, 3 * C), lambda b: (0, 0)),
            pl.BlockSpec((C, C), lambda b: (0, 0)),
            pl.BlockSpec((1, C), lambda b: (0, 0)),
            pl.BlockSpec((H, N, N), lambda b: (0, 0, 0)),
        ],
        # NOTE: C=32 < 128 lanes -> partially masked output stores at this toy
        # width; at realistic MaxViT widths (C >= 128) the stores are lane-dense.
        out_specs=pl.BlockSpec((rows, C), lambda b: (b, 0)),
        compiler_params=pltpu.CompilerParams(
            dimension_semantics=("parallel",),   # shard grid across TCs (v7x megacore)
        ),
    )(x_flat, w_qkv, b_qkv, w_proj, b_proj, rel_bias)

    return out_flat[: B * N].reshape(B, N, C)


# ----------------------------------------------------------------------------- #
# Pure-JAX reference (mirrors the PyTorch forward) for verification
# ----------------------------------------------------------------------------- #
def relative_self_attention_ref(x, params, n_head: int):
    B, N, C = x.shape
    hd = C // n_head
    scale = float(n_head) ** (-0.5)

    qkv = x @ params["w_qkv"] + params["b_qkv"]          # (B, N, 3C)
    qkv = qkv.reshape(B, N, 3, n_head, hd).transpose(2, 0, 3, 1, 4)
    q, k, v = qkv[0], qkv[1], qkv[2]                     # (B, H, N, hd)
    q = q * scale

    table = params["rel_pos_bias_table"]
    idx = params["rel_pos_index"].reshape(-1)
    bias = table[idx].reshape(N, N, n_head).transpose(2, 0, 1)[None]  # (1,H,N,N)

    attn = jax.nn.softmax(jnp.einsum("bhnd,bhmd->bhnm", q, k) + bias, axis=-1)
    out = jnp.einsum("bhnm,bhmd->bhnd", attn, v)         # (B, H, N, hd)
    out = out.transpose(0, 2, 1, 3).reshape(B, N, C)
    out = out @ params["w_proj"] + params["b_proj"]
    return out                                           # dropout p=0.0 -> identity


# ----------------------------------------------------------------------------- #
if __name__ == "__main__":
    # Small shapes consistent with the module; B=16 windows so the default
    # blocking fuses 8 windows/step (128-row matmuls) with a length-2 grid.
    B = 16
    n_head = 4
    emb_dim = 32
    grid_h = grid_w = 4
    N = grid_h * grid_w                  # attn_area = 16

    key = jax.random.PRNGKey(0)
    k_x, k_wq, k_bq, k_wp, k_bp, k_tab = jax.random.split(key, 6)

    x = jax.random.normal(k_x, (B, N, emb_dim), dtype=jnp.float32)

    params = {
        # Linear weights stored as (in_features, out_features): y = x @ W + b
        "w_qkv": jax.random.normal(k_wq, (emb_dim, 3 * emb_dim), jnp.float32) * 0.1,
        "b_qkv": jax.random.normal(k_bq, (3 * emb_dim,), jnp.float32) * 0.1,
        "w_proj": jax.random.normal(k_wp, (emb_dim, emb_dim), jnp.float32) * 0.1,
        "b_proj": jax.random.normal(k_bp, (emb_dim,), jnp.float32) * 0.1,
        "rel_pos_bias_table": jax.random.normal(
            k_tab, ((2 * grid_h - 1) * (2 * grid_w - 1), n_head), jnp.float32
        ),
        "rel_pos_index": jnp.asarray(
            get_relative_position_index(grid_h, grid_w), dtype=jnp.int32
        ),
    }

    ref = relative_self_attention_ref(x, params, n_head)

    # bf16 MXU operands (recommended for v6e/v7x), f32 accumulation + softmax.
    prep_bf16 = prepare_params(params, n_head, mxu_dtype=jnp.bfloat16)
    out_bf16 = jax.block_until_ready(relative_self_attention(x, prep_bf16, n_head))
    np.testing.assert_allclose(np.asarray(out_bf16), np.asarray(ref),
                               rtol=5e-2, atol=5e-2)

    # Pure-f32 MXU path (only the approx softmax reciprocal deviates from ref).
    prep_f32 = prepare_params(params, n_head, mxu_dtype=jnp.float32)
    out_f32 = jax.block_until_ready(relative_self_attention(x, prep_f32, n_head))
    np.testing.assert_allclose(np.asarray(out_f32), np.asarray(ref),
                               rtol=1e-2, atol=1e-2)

    print("KERNEL_OK")
</pallas_src>

<mosaic_0001>
module attributes {stable_mosaic.version = 11 : i64} {
  func.func @_rel_attn_kernel(%arg0: i32, %arg1: memref<128x32xf32, #tpu.memory_space<vmem>>, %arg2: memref<32x96xbf16, #tpu.memory_space<vmem>>, %arg3: memref<1x96xf32, #tpu.memory_space<vmem>>, %arg4: memref<32x32xbf16, #tpu.memory_space<vmem>>, %arg5: memref<1x32xf32, #tpu.memory_space<vmem>>, %arg6: memref<4x16x16xf32, #tpu.memory_space<vmem>>, %arg7: memref<128x32xf32, #tpu.memory_space<vmem>>) attributes {dimension_semantics = [#tpu.dimension_semantics<parallel>], iteration_bounds = array<i64: 2>, scalar_prefetch = 0 : i64, scratch_operands = 0 : i64, tpu.core_type = #tpu.core_type<tc>, window_params = [{transform_indices = @transform_0, window_bounds = array<i64: 128, 32>}, {pipeline_mode = #tpu.pipeline_mode<synchronous>, transform_indices = @transform_1, window_bounds = array<i64: 32, 96>}, {pipeline_mode = #tpu.pipeline_mode<synchronous>, transform_indices = @transform_2, window_bounds = array<i64: 1, 96>}, {pipeline_mode = #tpu.pipeline_mode<synchronous>, transform_indices = @transform_3, window_bounds = array<i64: 32, 32>}, {pipeline_mode = #tpu.pipeline_mode<synchronous>, transform_indices = @transform_4, window_bounds = array<i64: 1, 32>}, {pipeline_mode = #tpu.pipeline_mode<synchronous>, transform_indices = @transform_5, window_bounds = array<i64: 4, 16, 16>}, {transform_indices = @transform_6, window_bounds = array<i64: 128, 32>}]} {
    %c0 = arith.constant 0 : index
    %c0_0 = arith.constant 0 : index
    %0 = vector.load %arg1[%c0, %c0_0] : memref<128x32xf32, #tpu.memory_space<vmem>>, vector<128x32xf32>
    %1 = arith.truncf %0 : vector<128x32xf32> to vector<128x32xbf16>
    %c0_1 = arith.constant 0 : index
    %c0_2 = arith.constant 0 : index
    %2 = vector.load %arg2[%c0_1, %c0_2] : memref<32x96xbf16, #tpu.memory_space<vmem>>, vector<32x96xbf16>
    %cst = arith.constant dense<0.000000e+00> : vector<128x96xf32>
    %3 = tpu.matmul %1, %2, %cst {dimension_numbers = #tpu.dot_dimension_numbers<[1], [0], [0], [1], [0, 0, 1, 1], [], []>} : vector<128x32xbf16>, vector<32x96xbf16>, vector<128x96xf32> -> vector<128x96xf32>
    %c0_3 = arith.constant 0 : index
    %c0_4 = arith.constant 0 : index
    %4 = vector.load %arg3[%c0_3, %c0_4] : memref<1x96xf32, #tpu.memory_space<vmem>>, vector<1x96xf32>
    %5 = vector.broadcast %4 : vector<1x96xf32> to vector<128x96xf32>
    %6 = arith.addf %3, %5 : vector<128x96xf32>
    %7 = vector.shape_cast %6 : vector<128x96xf32> to vector<8x16x96xf32>
    %c0_5 = arith.constant 0 : index
    %c0_6 = arith.constant 0 : index
    %c0_7 = arith.constant 0 : index
    %8 = vector.load %arg6[%c0_5, %c0_6, %c0_7] : memref<4x16x16xf32, #tpu.memory_space<vmem>>, vector<4x16x16xf32>
    %9 = vector.extract_strided_slice %7 {offsets = [0, 0, 0], sizes = [8, 16, 8], strides = [1, 1, 1]} : vector<8x16x96xf32> to vector<8x16x8xf32>
    %10 = arith.truncf %9 : vector<8x16x8xf32> to vector<8x16x8xbf16>
    %11 = vector.extract_strided_slice %7 {offsets = [0, 0, 32], sizes = [8, 16, 8], strides = [1, 1, 1]} : vector<8x16x96xf32> to vector<8x16x8xf32>
    %12 = arith.truncf %11 : vector<8x16x8xf32> to vector<8x16x8xbf16>
    %13 = vector.extract_strided_slice %7 {offsets = [0, 0, 64], sizes = [8, 16, 8], strides = [1, 1, 1]} : vector<8x16x96xf32> to vector<8x16x8xf32>
    %14 = arith.truncf %13 : vector<8x16x8xf32> to vector<8x16x8xbf16>
    "tpu.trace_start"() <{level = 10 : i32, message = "bnd,bmd->bnm"}> : () -> ()
    %cst_8 = arith.constant dense<0.000000e+00> : vector<8x16x16xf32>
    %15 = tpu.matmul %10, %12, %cst_8 {dimension_numbers = #tpu.dot_dimension_numbers<[2], [2], [1], [1], [0, 0, 0, 1, 1, 1], [0], [0]>} : vector<8x16x8xbf16>, vector<8x16x8xbf16>, vector<8x16x16xf32> -> vector<8x16x16xf32>
    "tpu.trace_stop"() : () -> ()
    %16 = vector.extract_strided_slice %8 {offsets = [0, 0, 0], sizes = [1, 16, 16], strides = [1, 1, 1]} : vector<4x16x16xf32> to vector<1x16x16xf32>
    %17 = vector.shape_cast %16 : vector<1x16x16xf32> to vector<16x16xf32>
    %18 = vector.shape_cast %17 : vector<16x16xf32> to vector<1x16x16xf32>
    %19 = vector.broadcast %18 : vector<1x16x16xf32> to vector<8x16x16xf32>
    %20 = arith.addf %15, %19 : vector<8x16x16xf32>
    %cst_9 = arith.constant dense<0xFF800000> : vector<8x16xf32>
    %21 = vector.multi_reduction <maximumf>, %20, %cst_9 [2] : vector<8x16x16xf32> to vector<8x16xf32>
    %22 = vector.shape_cast %21 : vector<8x16xf32> to vector<8x16x1xf32>
    %23 = vector.broadcast %22 : vector<8x16x1xf32> to vector<8x16x16xf32>
    %24 = arith.subf %20, %23 : vector<8x16x16xf32>
    %25 = math.exp %24 : vector<8x16x16xf32>
    %cst_10 = arith.constant dense<0.000000e+00> : vector<8x16xf32>
    %26 = vector.multi_reduction <add>, %25, %cst_10 [2] : vector<8x16x16xf32> to vector<8x16xf32>
    %27 = vector.shape_cast %26 : vector<8x16xf32> to vector<8x16x1xf32>
    %28 = tpu.reciprocal %27 {approx = true} : vector<8x16x1xf32> -> vector<8x16x1xf32>
    %29 = vector.broadcast %28 : vector<8x16x1xf32> to vector<8x16x16xf32>
    %30 = arith.mulf %25, %29 : vector<8x16x16xf32>
    %31 = arith.truncf %30 : vector<8x16x16xf32> to vector<8x16x16xbf16>
    "tpu.trace_start"() <{level = 10 : i32, message = "bnm,bmd->bnd"}> : () -> ()
    %cst_11 = arith.constant dense<0.000000e+00> : vector<8x16x8xf32>
    %32 = tpu.matmul %31, %14, %cst_11 {dimension_numbers = #tpu.dot_dimension_numbers<[2], [1], [1], [2], [0, 0, 0, 1, 1, 2], [0], [0]>} : vector<8x16x16xbf16>, vector<8x16x8xbf16>, vector<8x16x8xf32> -> vector<8x16x8xf32>
    "tpu.trace_stop"() : () -> ()
    %33 = vector.extract_strided_slice %7 {offsets = [0, 0, 8], sizes = [8, 16, 8], strides = [1, 1, 1]} : vector<8x16x96xf32> to vector<8x16x8xf32>
    %34 = arith.truncf %33 : vector<8x16x8xf32> to vector<8x16x8xbf16>
    %35 = vector.extract_strided_slice %7 {offsets = [0, 0, 40], sizes = [8, 16, 8], strides = [1, 1, 1]} : vector<8x16x96xf32> to vector<8x16x8xf32>
    %36 = arith.truncf %35 : vector<8x16x8xf32> to vector<8x16x8xbf16>
    %37 = vector.extract_strided_slice %7 {offsets = [0, 0, 72], sizes = [8, 16, 8], strides = [1, 1, 1]} : vector<8x16x96xf32> to vector<8x16x8xf32>
    %38 = arith.truncf %37 : vector<8x16x8xf32> to vector<8x16x8xbf16>
    "tpu.trace_start"() <{level = 10 : i32, message = "bnd,bmd->bnm"}> : () -> ()
    %cst_12 = arith.constant dense<0.000000e+00> : vector<8x16x16xf32>
    %39 = tpu.matmul %34, %36, %cst_12 {dimension_numbers = #tpu.dot_dimension_numbers<[2], [2], [1], [1], [0, 0, 0, 1, 1, 1], [0], [0]>} : vector<8x16x8xbf16>, vector<8x16x8xbf16>, vector<8x16x16xf32> -> vector<8x16x16xf32>
    "tpu.trace_stop"() : () -> ()
    %40 = vector.extract_strided_slice %8 {offsets = [1, 0, 0], sizes = [1, 16, 16], strides = [1, 1, 1]} : vector<4x16x16xf32> to vector<1x16x16xf32>
    %41 = vector.shape_cast %40 : vector<1x16x16xf32> to vector<16x16xf32>
    %42 = vector.shape_cast %41 : vector<16x16xf32> to vector<1x16x16xf32>
    %43 = vector.broadcast %42 : vector<1x16x16xf32> to vector<8x16x16xf32>
    %44 = arith.addf %39, %43 : vector<8x16x16xf32>
    %cst_13 = arith.constant dense<0xFF800000> : vector<8x16xf32>
    %45 = vector.multi_reduction <maximumf>, %44, %cst_13 [2] : vector<8x16x16xf32> to vector<8x16xf32>
    %46 = vector.shape_cast %45 : vector<8x16xf32> to vector<8x16x1xf32>
    %47 = vector.broadcast %46 : vector<8x16x1xf32> to vector<8x16x16xf32>
    %48 = arith.subf %44, %47 : vector<8x16x16xf32>
    %49 = math.exp %48 : vector<8x16x16xf32>
    %cst_14 = arith.constant dense<0.000000e+00> : vector<8x16xf32>
    %50 = vector.multi_reduction <add>, %49, %cst_14 [2] : vector<8x16x16xf32> to vector<8x16xf32>
    %51 = vector.shape_cast %50 : vector<8x16xf32> to vector<8x16x1xf32>
    %52 = tpu.reciprocal %51 {approx = true} : vector<8x16x1xf32> -> vector<8x16x1xf32>
    %53 = vector.broadcast %52 : vector<8x16x1xf32> to vector<8x16x16xf32>
    %54 = arith.mulf %49, %53 : vector<8x16x16xf32>
    %55 = arith.truncf %54 : vector<8x16x16xf32> to vector<8x16x16xbf16>
    "tpu.trace_start"() <{level = 10 : i32, message = "bnm,bmd->bnd"}> : () -> ()
    %cst_15 = arith.constant dense<0.000000e+00> : vector<8x16x8xf32>
    %56 = tpu.matmul %55, %38, %cst_15 {dimension_numbers = #tpu.dot_dimension_numbers<[2], [1], [1], [2], [0, 0, 0, 1, 1, 2], [0], [0]>} : vector<8x16x16xbf16>, vector<8x16x8xbf16>, vector<8x16x8xf32> -> vector<8x16x8xf32>
    "tpu.trace_stop"() : () -> ()
    %57 = vector.extract_strided_slice %7 {offsets = [0, 0, 16], sizes = [8, 16, 8], strides = [1, 1, 1]} : vector<8x16x96xf32> to vector<8x16x8xf32>
    %58 = arith.truncf %57 : vector<8x16x8xf32> to vector<8x16x8xbf16>
    %59 = vector.extract_strided_slice %7 {offsets = [0, 0, 48], sizes = [8, 16, 8], strides = [1, 1, 1]} : vector<8x16x96xf32> to vector<8x16x8xf32>
    %60 = arith.truncf %59 : vector<8x16x8xf32> to vector<8x16x8xbf16>
    %61 = vector.extract_strided_slice %7 {offsets = [0, 0, 80], sizes = [8, 16, 8], strides = [1, 1, 1]} : vector<8x16x96xf32> to vector<8x16x8xf32>
    %62 = arith.truncf %61 : vector<8x16x8xf32> to vector<8x16x8xbf16>
    "tpu.trace_start"() <{level = 10 : i32, message = "bnd,bmd->bnm"}> : () -> ()
    %cst_16 = arith.constant dense<0.000000e+00> : vector<8x16x16xf32>
    %63 = tpu.matmul %58, %60, %cst_16 {dimension_numbers = #tpu.dot_dimension_numbers<[2], [2], [1], [1], [0, 0, 0, 1, 1, 1], [0], [0]>} : vector<8x16x8xbf16>, vector<8x16x8xbf16>, vector<8x16x16xf32> -> vector<8x16x16xf32>
    "tpu.trace_stop"() : () -> ()
    %64 = vector.extract_strided_slice %8 {offsets = [2, 0, 0], sizes = [1, 16, 16], strides = [1, 1, 1]} : vector<4x16x16xf32> to vector<1x16x16xf32>
    %65 = vector.shape_cast %64 : vector<1x16x16xf32> to vector<16x16xf32>
    %66 = vector.shape_cast %65 : vector<16x16xf32> to vector<1x16x16xf32>
    %67 = vector.broadcast %66 : vector<1x16x16xf32> to vector<8x16x16xf32>
    %68 = arith.addf %63, %67 : vector<8x16x16xf32>
    %cst_17 = arith.constant dense<0xFF800000> : vector<8x16xf32>
    %69 = vector.multi_reduction <maximumf>, %68, %cst_17 [2] : vector<8x16x16xf32> to vector<8x16xf32>
    %70 = vector.shape_cast %69 : vector<8x16xf32> to vector<8x16x1xf32>
    %71 = vector.broadcast %70 : vector<8x16x1xf32> to vector<8x16x16xf32>
    %72 = arith.subf %68, %71 : vector<8x16x16xf32>
    %73 = math.exp %72 : vector<8x16x16xf32>
    %cst_18 = arith.constant dense<0.000000e+00> : vector<8x16xf32>
    %74 = vector.multi_reduction <add>, %73, %cst_18 [2] : vector<8x16x16xf32> to vector<8x16xf32>
    %75 = vector.shape_cast %74 : vector<8x16xf32> to vector<8x16x1xf32>
    %76 = tpu.reciprocal %75 {approx = true} : vector<8x16x1xf32> -> vector<8x16x1xf32>
    %77 = vector.broadcast %76 : vector<8x16x1xf32> to vector<8x16x16xf32>
    %78 = arith.mulf %73, %77 : vector<8x16x16xf32>
    %79 = arith.truncf %78 : vector<8x16x16xf32> to vector<8x16x16xbf16>
    "tpu.trace_start"() <{level = 10 : i32, message = "bnm,bmd->bnd"}> : () -> ()
    %cst_19 = arith.constant dense<0.000000e+00> : vector<8x16x8xf32>
    %80 = tpu.matmul %79, %62, %cst_19 {dimension_numbers = #tpu.dot_dimension_numbers<[2], [1], [1], [2], [0, 0, 0, 1, 1, 2], [0], [0]>} : vector<8x16x16xbf16>, vector<8x16x8xbf16>, vector<8x16x8xf32> -> vector<8x16x8xf32>
    "tpu.trace_stop"() : () -> ()
    %81 = vector.extract_strided_slice %7 {offsets = [0, 0, 24], sizes = [8, 16, 8], strides = [1, 1, 1]} : vector<8x16x96xf32> to vector<8x16x8xf32>
    %82 = arith.truncf %81 : vector<8x16x8xf32> to vector<8x16x8xbf16>
    %83 = vector.extract_strided_slice %7 {offsets = [0, 0, 56], sizes = [8, 16, 8], strides = [1, 1, 1]} : vector<8x16x96xf32> to vector<8x16x8xf32>
    %84 = arith.truncf %83 : vector<8x16x8xf32> to vector<8x16x8xbf16>
    %85 = vector.extract_strided_slice %7 {offsets = [0, 0, 88], sizes = [8, 16, 8], strides = [1, 1, 1]} : vector<8x16x96xf32> to vector<8x16x8xf32>
    %86 = arith.truncf %85 : vector<8x16x8xf32> to vector<8x16x8xbf16>
    "tpu.trace_start"() <{level = 10 : i32, message = "bnd,bmd->bnm"}> : () -> ()
    %cst_20 = arith.constant dense<0.000000e+00> : vector<8x16x16xf32>
    %87 = tpu.matmul %82, %84, %cst_20 {dimension_numbers = #tpu.dot_dimension_numbers<[2], [2], [1], [1], [0, 0, 0, 1, 1, 1], [0], [0]>} : vector<8x16x8xbf16>, vector<8x16x8xbf16>, vector<8x16x16xf32> -> vector<8x16x16xf32>
    "tpu.trace_stop"() : () -> ()
    %88 = vector.extract_strided_slice %8 {offsets = [3, 0, 0], sizes = [1, 16, 16], strides = [1, 1, 1]} : vector<4x16x16xf32> to vector<1x16x16xf32>
    %89 = vector.shape_cast %88 : vector<1x16x16xf32> to vector<16x16xf32>
    %90 = vector.shape_cast %89 : vector<16x16xf32> to vector<1x16x16xf32>
    %91 = vector.broadcast %90 : vector<1x16x16xf32> to vector<8x16x16xf32>
    %92 = arith.addf %87, %91 : vector<8x16x16xf32>
    %cst_21 = arith.constant dense<0xFF800000> : vector<8x16xf32>
    %93 = vector.multi_reduction <maximumf>, %92, %cst_21 [2] : vector<8x16x16xf32> to vector<8x16xf32>
    %94 = vector.shape_cast %93 : vector<8x16xf32> to vector<8x16x1xf32>
    %95 = vector.broadcast %94 : vector<8x16x1xf32> to vector<8x16x16xf32>
    %96 = arith.subf %92, %95 : vector<8x16x16xf32>
    %97 = math.exp %96 : vector<8x16x16xf32>
    %cst_22 = arith.constant dense<0.000000e+00> : vector<8x16xf32>
    %98 = vector.multi_reduction <add>, %97, %cst_22 [2] : vector<8x16x16xf32> to vector<8x16xf32>
    %99 = vector.shape_cast %98 : vector<8x16xf32> to vector<8x16x1xf32>
    %100 = tpu.reciprocal %99 {approx = true} : vector<8x16x1xf32> -> vector<8x16x1xf32>
    %101 = vector.broadcast %100 : vector<8x16x1xf32> to vector<8x16x16xf32>
    %102 = arith.mulf %97, %101 : vector<8x16x16xf32>
    %103 = arith.truncf %102 : vector<8x16x16xf32> to vector<8x16x16xbf16>
    "tpu.trace_start"() <{level = 10 : i32, message = "bnm,bmd->bnd"}> : () -> ()
    %cst_23 = arith.constant dense<0.000000e+00> : vector<8x16x8xf32>
    %104 = tpu.matmul %103, %86, %cst_23 {dimension_numbers = #tpu.dot_dimension_numbers<[2], [1], [1], [2], [0, 0, 0, 1, 1, 2], [0], [0]>} : vector<8x16x16xbf16>, vector<8x16x8xbf16>, vector<8x16x8xf32> -> vector<8x16x8xf32>
    "tpu.trace_stop"() : () -> ()
    %105 = tpu.concatenate %32, %56, %80, %104 in 2 : vector<8x16x8xf32>, vector<8x16x8xf32>, vector<8x16x8xf32>, vector<8x16x8xf32> -> vector<8x16x32xf32>
    %106 = vector.shape_cast %105 : vector<8x16x32xf32> to vector<128x32xf32>
    %107 = arith.truncf %106 : vector<128x32xf32> to vector<128x32xbf16>
    %c0_24 = arith.constant 0 : index
    %c0_25 = arith.constant 0 : index
    %108 = vector.load %arg4[%c0_24, %c0_25] : memref<32x32xbf16, #tpu.memory_space<vmem>>, vector<32x32xbf16>
    %cst_26 = arith.constant dense<0.000000e+00> : vector<128x32xf32>
    %109 = tpu.matmul %107, %108, %cst_26 {dimension_numbers = #tpu.dot_dimension_numbers<[1], [0], [0], [1], [0, 0, 1, 1], [], []>} : vector<128x32xbf16>, vector<32x32xbf16>, vector<128x32xf32> -> vector<128x32xf32>
    %c0_27 = arith.constant 0 : index
    %c0_28 = arith.constant 0 : index
    %110 = vector.load %arg5[%c0_27, %c0_28] : memref<1x32xf32, #tpu.memory_space<vmem>>, vector<1x32xf32>
    %111 = vector.broadcast %110 : vector<1x32xf32> to vector<128x32xf32>
    %112 = arith.addf %109, %111 : vector<128x32xf32>
    %c0_29 = arith.constant 0 : index
    %c0_30 = arith.constant 0 : index
    %113 = vector.load %arg7[%c0_29, %c0_30] : memref<128x32xf32, #tpu.memory_space<vmem>>, vector<128x32xf32>
    tpu.vector_store %arg7[%c0_29, %c0_30], %112 {strides = array<i32>} : memref<128x32xf32, #tpu.memory_space<vmem>>, vector<128x32xf32>,
    return
  }
  func.func @transform_0(%arg0: i32) -> (i32, i32) {
    %c0_i32 = arith.constant 0 : i32
    %c0_i32_0 = arith.constant 0 : i32
    return %arg0, %c0_i32 : i32, i32
  }
  func.func @transform_1(%arg0: i32) -> (i32, i32) {
    %c0_i32 = arith.constant 0 : i32
    %c0_i32_0 = arith.constant 0 : i32
    %c0_i32_1 = arith.constant 0 : i32
    return %c0_i32, %c0_i32_0 : i32, i32
  }
  func.func @transform_2(%arg0: i32) -> (i32, i32) {
    %c0_i32 = arith.constant 0 : i32
    %c0_i32_0 = arith.constant 0 : i32
    %c0_i32_1 = arith.constant 0 : i32
    return %c0_i32, %c0_i32_0 : i32, i32
  }
  func.func @transform_3(%arg0: i32) -> (i32, i32) {
    %c0_i32 = arith.constant 0 : i32
    %c0_i32_0 = arith.constant 0 : i32
    %c0_i32_1 = arith.constant 0 : i32
    return %c0_i32, %c0_i32_0 : i32, i32
  }
  func.func @transform_4(%arg0: i32) -> (i32, i32) {
    %c0_i32 = arith.constant 0 : i32
    %c0_i32_0 = arith.constant 0 : i32
    %c0_i32_1 = arith.constant 0 : i32
    return %c0_i32, %c0_i32_0 : i32, i32
  }
  func.func @transform_5(%arg0: i32) -> (i32, i32, i32) {
    %c0_i32 = arith.constant 0 : i32
    %c0_i32_0 = arith.constant 0 : i32
    %c0_i32_1 = arith.constant 0 : i32
    %c0_i32_2 = arith.constant 0 : i32
    return %c0_i32, %c0_i32_0, %c0_i32_1 : i32, i32, i32
  }
  func.func @transform_6(%arg0: i32) -> (i32, i32) {
    %c0_i32 = arith.constant 0 : i32
    %c0_i32_0 = arith.constant 0 : i32
    return %arg0, %c0_i32 : i32, i32
  }
}

</mosaic_0001>

<bundles_post_ra>
// kernel: tpu_custom_call.1
= control target key start
LH: loop header
LB: loop body
LE: loop exit
PB: predicated region body
PF: predicated region fallthrough
CT: control target
= control target key end

     0   :  { %s3748_s21 = smov 0   ;;  %s5187_s0 = inlined_call_operand.vmem [shape: f32[256,32], index: 0, kind: input, shape index: {}]   ;;  %s5188_s1 = inlined_call_operand.vmem [shape: bf16[32,96], index: 1, kind: input, shape index: {}]   ;;  %s5189_s2 = inlined_call_operand.vmem [shape: f32[1,96], index: 2, kind: input, shape index: {}]   ;;  %s5190_s3 = inlined_call_operand.vmem [shape: bf16[32,32], index: 3, kind: input, shape index: {}]   ;;  %s5191_s4 = inlined_call_operand.vmem [shape: f32[1,32], index: 4, kind: input, shape index: {}]   ;;  %s5192_s5 = inlined_call_operand.vmem [shape: f32[4,16,16], index: 5, kind: input, shape index: {}]   ;;  %s5193_s6 = inlined_call_operand.vmem [shape: f32[256,32], index: 6, kind: output, shape index: {}]  }
   0x1 LB: > { %s3174_s22 = sadd.s32 4294967295, %s3697_s21   ;;  %p3178_p0 = scmp.ge.s32.totalorder %s3697_s21, 1  ;;  %s3697_s21 = sphi %s3748_s21, %s16_s21  }
   0x2   : > { %p213_p1 = scmp.lt.s32.totalorder %s3697_s21, 3 }
   0x4   : > { %p214_p2 = pnand %p3178_p0, %p213_p1 }
   0x6   : > { %217 = sbr.rel (%p214_p2) target bundleno = 2720 (0xaa0), region = 44 }
   0xb   : > { %v3282_v0 = vld [vmem:[%s5188_s1 + $0x8] sm:$0xff]  ;;  %s3179_s25 = sshll.u32 %s3174_s22, 4  ;;  %v3281_v1 = vld [vmem:[%s5188_s1] sm:$0xff]  ;;  %vm300_vm0 = vcmask 261120   ;;  %s3699_s10 = smov 96   ;;  %vm405_vm1 = vcmask 64512  }
   0xc   : > { %p244_p3 = scmp.lt.s32.totalorder %s3179_s25, 31  ;;  %331 = vmatpush.bf16.msra.mxu0 %v3282_v0  ;;  %3285 = vmatpush.bf16.msra.mxu1 %v3282_v0  ;;  %v3781_v27 = vld [vmem:[%s5189_s2] ss:$0 sm:$0xff]  ;;  %s3700_s11 = smov 64   ;;  %vm615_vm2 = vcmask 130048   ;;  %vm2984_vm3 = vcmask 195584  }
   0xd   : > { %3286 = vmatpush.bf16.msra.mxu2 %v3282_v0  ;;  %3287 = vmatpush.bf16.msra.mxu3 %v3282_v0  ;;  %s3701_s12 = smov 120   ;;  %s3702_s13 = smov 88  }
   0xe   : > { %s5249_s25 = smov (!%p244_p3, %s3179_s25), 31  ;;  %s3703_s18 = smov 56  }
   0xf   : > { %s3180_s28 = sshll.u32 %s5249_s25, 3  ;;  %s3704_s19 = smov 112  }
  0x10   : > { %332 = vmatpush.bf16.msra.mxu0 %v3281_v1  ;;  %3288 = vmatpush.bf16.msra.mxu1 %v3281_v1  ;;  %s247_s7 = scalar_lea.vmem %s5187_s0, %s3180_s28  ;;  %s3705_s20 = smov 80  }
  0x11   : > { %3289 = vmatpush.bf16.msra.mxu2 %v3281_v1  ;;  %v256_v2 = vld [vmem:[%s247_s7] sm:$0xff]  ;;  %v257_v3 = vld [vmem:[%s247_s7 + $0x8] sm:$0xff]  ;;  %3290 = vmatpush.bf16.msra.mxu3 %v3281_v1  ;;  %v258_v14 = vld [vmem:[%s247_s7 + $0x10] sm:$0xff]  ;;  %s3706_s27 = smov 48   ;;  %s3707_s29 = smov 104  }
  0x12   : > { %v260_v4 = vld [vmem:[%s247_s7 + $0x20] sm:$0xff]  ;;  %v272_v5 = vpack.c.bf16 %v257_v3, %v256_v2  ;;  %v261_v6 = vld [vmem:[%s247_s7 + $0x28] sm:$0xff]  ;;  %v259_v15 = vld [vmem:[%s247_s7 + $0x18] sm:$0xff]  ;;  %s3708_s30 = smov 72   ;;  %s3710_s16 = smov 8  }
  0x13   : > { %v264_v7 = vld [vmem:[%s247_s7 + $0x40] sm:$0xff]  ;;  %v265_v8 = vld [vmem:[%s247_s7 + $0x48] sm:$0xff]  ;;  %v274_v9 = vpack.c.bf16 %v261_v6, %v260_v4  ;;  %v266_v16 = vld [vmem:[%s247_s7 + $0x50] sm:$0xff]  ;;  %v273_v22 = vpack.c.bf16 %v259_v15, %v258_v14  ;;  %s3711_s17 = smov 16  }
  0x14   : > { %v276_v10 = vpack.c.bf16 %v265_v8, %v264_v7  ;;  %v268_v11 = vld [vmem:[%s247_s7 + $0x60] sm:$0xff]  ;;  %v269_v12 = vld [vmem:[%s247_s7 + $0x68] sm:$0xff]  ;;  %3191 = vmatmul.msk.bf16.vlgmr.msra.gmra.mxu0 %vm300_vm0, %v272_v5  ;;  %v267_v17 = vld [vmem:[%s247_s7 + $0x58] sm:$0xff] }
  0x15   : > { %v278_v13 = vpack.c.bf16 %v269_v12, %v268_v11  ;;  %3193 = vmatmul.msk.bf16.vlgmr.msra.gmra.mxu1 %vm300_vm0, %v274_v9  ;;  %v262_v18 = vld [vmem:[%s247_s7 + $0x30] sm:$0xff]  ;;  %v263_v19 = vld [vmem:[%s247_s7 + $0x38] sm:$0xff]  ;;  %v277_v23 = vpack.c.bf16 %v267_v17, %v266_v16 }
  0x16   : > { %3195 = vmatmul.msk.bf16.vlgmr.msra.gmra.mxu2 %vm300_vm0, %v276_v10  ;;  %v270_v20 = vld [vmem:[%s247_s7 + $0x70] sm:$0xff]  ;;  %v271_v21 = vld [vmem:[%s247_s7 + $0x78] sm:$0xff]  ;;  %v275_v24 = vpack.c.bf16 %v263_v19, %v262_v18 }
  0x17   : > { %3197 = vmatmul.msk.bf16.vlgmr.msra.gmra.mxu3 %vm300_vm0, %v278_v13  ;;  %v279_v25 = vpack.c.bf16 %v271_v21, %v270_v20 }
  0x24   : > { %3192 = vmatmul.msk.bf16.gmra.mxu0 %vm300_vm0, %v273_v22 }
  0x25   : > { %3194 = vmatmul.msk.bf16.gmra.mxu1 %vm300_vm0, %v275_v24 }
  0x26   : > { %3196 = vmatmul.msk.bf16.gmra.mxu2 %vm300_vm0, %v277_v23 }
  0x27   : > { %3198 = vmatmul.msk.bf16.gmra.mxu3 %vm300_vm0, %v279_v25 }
  0x91   : > { %v334_v26 = vpop.f32.mrf.mxu0 }
  0x92   : > { %v344_v28 = vpop.f32.mrf.mxu1  ;;  %v335_v29 = vadd.f32 %v3781_v27, %v334_v26 }
  0x93   : > { %v345_v36 = vadd.f32 %v3781_v27, %v344_v28 }
  0x94   : > { %v382_v33 = vpack.c.bf16 %v335_v29, %v335_v29 }
  0x95   : > { %v386_v41 = vpack.c.bf16 %v345_v36, %v345_v36 }
  0x96   : > { %v400_v39 = vunpack.c.l.b16 %v382_v33 }
  0x97   : > { %v455_v50 = vunpack.c.l.b16 %v386_v41 }
  0x99   : > { %v354_v30 = vpop.f32.mrf.mxu2  ;;  %v336_v31 = vpop.f32.mrf.mxu0 }
  0x9a   : > { %v364_v32 = vpop.f32.mrf.mxu3  ;;  %v337_v34 = vadd.f32 %v3781_v27, %v336_v31  ;;  %v346_v35 = vpop.f32.mrf.mxu1  ;;  %v355_v57 = vadd.f32 %v3781_v27, %v354_v30 }
  0x9b   : > { %v347_v38 = vadd.f32 %v3781_v27, %v346_v35  ;;  %v365_v46 = vadd.f32 %v3781_v27, %v364_v32 }
  0x9c   : > { %v383_v37 = vpack.c.bf16 %v337_v34, %v337_v34  ;;  %v390_v6 = vpack.c.bf16 %v355_v57, %v355_v57 }
  0x9d   : > { %v387_v43 = vpack.c.bf16 %v347_v38, %v347_v38  ;;  %v394_v52 = vpack.c.bf16 %v365_v46, %v365_v46 }
  0x9e   : > { %v401_v40 = vunpack.c.l.b16 %v383_v37  ;;  %v509_v18 = vunpack.c.l.b16 %v390_v6 }
  0x9f   : > { %v456_v51 = vunpack.c.l.b16 %v387_v43  ;;  %v563_v58 = vunpack.c.l.b16 %v394_v52 }
  0xa0   : > { %v3787_v42 = vpack.c.b16 %v401_v40, %v400_v39 }
  0xa1   : > { %v356_v44 = vpop.f32.mrf.mxu2  ;;  %v339_v45 = vpop.f32.mrf.mxu0  ;;  %v3794_v55 = vpack.c.b16 %v456_v51, %v455_v50 }
  0xa2   : > { %v366_v47 = vpop.f32.mrf.mxu3  ;;  %403 = vrot.lane.b32.xlu0 %v3787_v42, %s3699_s10  ;;  %v349_v48 = vpop.f32.mrf.mxu1  ;;  %v340_v53 = vadd.f32 %v3781_v27, %v339_v45  ;;  %v357_v61 = vadd.f32 %v3781_v27, %v356_v44 }
  0xa3   : > { %v367_v49 = vadd.f32 %v3781_v27, %v366_v47  ;;  %v350_v4 = vadd.f32 %v3781_v27, %v349_v48 }
  0xa4   : > { %v384_v62 = vpack.c.bf16 %v340_v53, %v340_v53  ;;  %v391_v7 = vpack.c.bf16 %v357_v61, %v357_v61 }
  0xa5   : > { %v395_v54 = vpack.c.bf16 %v367_v49, %v367_v49  ;;  %v388_v13 = vpack.c.bf16 %v350_v4, %v350_v4 }
  0xa6   : > { %v428_v8 = vunpack.c.l.b16 %v384_v62  ;;  %v510_v19 = vunpack.c.l.b16 %v391_v7 }
  0xa7   : > { %v564_v0 = vunpack.c.l.b16 %v395_v54  ;;  %v482_v24 = vunpack.c.l.b16 %v388_v13 }
  0xa8   : > { %v3815_v28 = vpack.c.b16 %v510_v19, %v509_v18 }
  0xa9   : > { %v359_v56 = vpop.f32.mrf.mxu2  ;;  %v341_v59 = vpop.f32.mrf.mxu0  ;;  %v3804_v10 = vpack.c.b16 %v564_v0, %v563_v58  ;;  %v375_v0 = vld [vmem:[%s5192_s5 + $0x8] sm:$0xff] }
  0xaa   : > { %v369_v60 = vpop.f32.mrf.mxu3  ;;  %v342_v63 = vadd.f32 %v3781_v27, %v341_v59  ;;  %458 = vrot.lane.b32.xlu0 %v3794_v55, %s3699_s10  ;;  %v351_v1 = vpop.f32.mrf.mxu1  ;;  %v360_v2 = vadd.f32 %v3781_v27, %v359_v56 }
  0xab   : > { %v352_v5 = vadd.f32 %v3781_v27, %v351_v1  ;;  %v370_v20 = vadd.f32 %v3781_v27, %v369_v60  ;;  %v374_v60 = vld [vmem:[%s5192_s5] sm:$0xff] }
  0xac   : > { %v385_v3 = vpack.c.bf16 %v342_v63, %v342_v63  ;;  %v392_v11 = vpack.c.bf16 %v360_v2, %v360_v2 }
  0xad   : > { %v389_v15 = vpack.c.bf16 %v352_v5, %v352_v5  ;;  %v396_v29 = vpack.c.bf16 %v370_v20, %v370_v20 }
  0xae   : > { %v429_v9 = vunpack.c.l.b16 %v385_v3  ;;  %v536_v22 = vunpack.c.l.b16 %v392_v11 }
  0xaf   : > { %v483_v25 = vunpack.c.l.b16 %v389_v15  ;;  %v590_v33 = vunpack.c.l.b16 %v396_v29 }
  0xb0   : > { %v3806_v12 = vpack.c.b16 %v429_v9, %v428_v8 }
  0xb1   : > { %v361_v14 = vpop.f32.mrf.mxu2  ;;  %v3819_v32 = vpack.c.b16 %v483_v25, %v482_v24 }
  0xb2   : > { %v362_v16 = vadd.f32 %v3781_v27, %v361_v14  ;;  %v371_v17 = vpop.f32.mrf.mxu3  ;;  %431 = vrot.lane.b32.xlu1 %v3806_v12, %s3699_s10  ;;  %566 = vrot.lane.b32.xlu0 %v3804_v10, %s3699_s10 }
  0xb3   : > { %v372_v21 = vadd.f32 %v3781_v27, %v371_v17 }
  0xb4   : > { %v393_v23 = vpack.c.bf16 %v362_v16, %v362_v16 }
  0xb5   : > { %v397_v30 = vpack.c.bf16 %v372_v21, %v372_v21 }
  0xb6   : > { %v537_v26 = vunpack.c.l.b16 %v393_v23 }
  0xb7   : > { %v591_v34 = vunpack.c.l.b16 %v397_v30 }
  0xb8   : > { %v3817_v31 = vpack.c.b16 %v537_v26, %v536_v22 }
  0xb9   : > { %v3826_v27 = vpack.c.b16 %v591_v34, %v590_v33 }
  0xba   : > { %539 = vrot.lane.b32.xlu2 %v3817_v31, %s3699_s10  ;;  %485 = vrot.lane.b32.xlu1 %v3819_v32, %s3699_s10 }
  0xbb   : > { %913 = vrot.lane.b32.xlu0 %v3815_v28, %s3700_s11 }
  0xc2   : > { %512 = vrot.lane.b32.xlu2 %v3815_v28, %s3699_s10  ;;  %593 = vrot.lane.b32.xlu1 %v3826_v27, %s3699_s10 }
  0xc3   : > { %1008 = vrot.lane.b32.xlu0 %v3787_v42, %s3701_s12 }
  0xca   : > { %888 = vrot.lane.b32.xlu2 %v3819_v32, %s3700_s11  ;;  %813 = vrot.lane.b32.xlu1 %v3787_v42, %s3700_s11 }
  0xcb   : > { %938 = vrot.lane.b32.xlu0 %v3817_v31, %s3700_s11 }
  0xd2   : > { %838 = vrot.lane.b32.xlu2 %v3806_v12, %s3700_s11  ;;  %863 = vrot.lane.b32.xlu1 %v3794_v55, %s3700_s11 }
  0xda   : > { %1010 = vrot.lane.b32.xlu2 %v3787_v42, %s3702_s13  ;;  %963 = vrot.lane.b32.xlu1 %v3804_v10, %s3700_s11 }
  0xe2   : > { %1034 = vrot.lane.b32.xlu2 %v3806_v12, %s3702_s13  ;;  %988 = vrot.lane.b32.xlu1 %v3826_v27, %s3700_s11  ;;  %s3709_s11 = smov 40  }
  0xea   : > { %1032 = vrot.lane.b32.xlu2 %v3806_v12, %s3701_s12 }
 0x114   : > { %v404_v35 = vpop.permute.xlu0 %403  ;;  %v540_v37 = vpop.permute.xlu2 %539 }
 0x115   : > { %v410_v36 = vsel %vm405_vm1, %v404_v35, 0  ;;  %v545_v38 = vsel %vm405_vm1, %v540_v37, 0 }
 0x116   : > { %419 = vmatpush.bf16.xpose.msrb.mxu1 %v410_v36 }
 0x11c   : > { %v459_v39 = vpop.permute.xlu0 %458  ;;  %v513_v41 = vpop.permute.xlu2 %512 }
 0x11d   : > { %3199 = vmatmul.msk.bf16.vlgmr.msrb.gmra.mxu1 %vm405_vm1, %v3787_v42  ;;  %v464_v40 = vsel %vm405_vm1, %v459_v39, 0  ;;  %v518_v45 = vsel %vm405_vm1, %v513_v41, 0 }
 0x11e   : > { %473 = vmatpush.bf16.xpose.msrb.mxu3 %v464_v40 }
 0x124   : > { %v432_v43 = vpop.permute.xlu1 %431  ;;  %v889_v46 = vpop.permute.xlu2 %888 }
 0x125   : > { %3201 = vmatmul.msk.bf16.vlgmr.msrb.gmra.mxu3 %vm405_vm1, %v3794_v55  ;;  %v437_v44 = vsel %vm405_vm1, %v432_v43, 0  ;;  %v567_v47 = vpop.permute.xlu0 %566 }
 0x126   : > { %554 = vmatpush.bf16.xpose.msra.mxu3 %v545_v38  ;;  %446 = vmatpush.bf16.xpose.msrb.mxu2 %v437_v44  ;;  %v572_v48 = vsel %vm405_vm1, %v567_v47, 0 }
 0x12c   : > { %v486_v49 = vpop.permute.xlu1 %485  ;;  %v839_v52 = vpop.permute.xlu2 %838 }
 0x12d   : > { %v491_v50 = vsel %vm405_vm1, %v486_v49, 0  ;;  %3200 = vmatmul.msk.bf16.vlgmr.msrb.gmra.mxu2 %vm405_vm1, %v3806_v12  ;;  %v914_v54 = vpop.permute.xlu0 %913 }
 0x12e   : > { %527 = vmatpush.bf16.xpose.msra.mxu2 %v518_v45  ;;  %500 = vmatpush.bf16.xpose.msra.mxu1 %v491_v50 }
 0x134   : > { %v594_v51 = vpop.permute.xlu1 %593 }
 0x135   : > { %v599_v53 = vsel %vm405_vm1, %v594_v51, 0  ;;  %3202 = vmatmul.msk.bf16.vlgmr.msra.gmra.mxu1 %vm405_vm1, %v3819_v32  ;;  %3204 = vmatmul.msk.bf16.vlgmr.msra.gmra.mxu3 %vm405_vm1, %v3817_v31  ;;  %v3867_v58 = vpop.permute.xlu0 %1008 }
 0x136   : > { %581 = vmatpush.bf16.xpose.msrb.mxu1 %v572_v48  ;;  %608 = vmatpush.bf16.xpose.msrb.mxu2 %v599_v53  ;;  %v3943_v53 = vpop.permute.xlu2 %1010 }
 0x13c   : > { %v814_v56 = vpop.permute.xlu1 %813 }
 0x13d   : > { %3203 = vmatmul.msk.bf16.vlgmr.msra.gmra.mxu2 %vm405_vm1, %v3815_v28  ;;  %826 = vmatpush.bf16.msrb.mxu3 %v814_v56  ;;  %v939_v59 = vpop.permute.xlu0 %938 }
 0x13e   : > { %851 = vmatpush.bf16.msra.mxu1 %v839_v52 }
 0x141   : > { %901 = vmatpush.bf16.msra.mxu3 %v889_v46 }
 0x144   : > { %v864_v57 = vpop.permute.xlu1 %863 }
 0x145   : > { %3205 = vmatmul.msk.bf16.vlgmr.msrb.gmra.mxu1 %vm405_vm1, %v3804_v10  ;;  %876 = vmatpush.bf16.msra.mxu2 %v864_v57 }
 0x146   : > { %926 = vmatpush.bf16.msrb.mxu1 %v914_v54  ;;  %v3945_v54 = vpop.permute.xlu2 %1034 }
 0x14c   : > { %v3949_v57 = vpop.permute.xlu1 %963 }
 0x14d   : > { %3206 = vmatmul.msk.bf16.vlgmr.msrb.gmra.mxu2 %vm405_vm1, %v3826_v27 }
 0x14e   : > { %951 = vmatpush.bf16.msrb.mxu2 %v939_v59  ;;  %v3947_v56 = vpop.permute.xlu2 %1032 }
 0x19a   : > { %v421_v61 = vpop.f32.mrf.mxu1 }
 0x19b   : > { %v3876_v62 = vadd.f32 %v421_v61, %v374_v60 }
 0x19d   : > { %v616_v63 = vsel %vm615_vm2, %v3876_v62, -inf }
 0x19e   : > { %617 = vmax.xlane.f32.xlu2 %v616_v63  ;;  %v3952_v63 = vpop.permute.xlu1 %988 }
 0x1a2   : > { %v423_v1 = vpop.f32.mrf.mxu1 }
 0x1a3   : > { %v3883_v2 = vadd.f32 %v423_v1, %v375_v0 }
 0x1a5   : > { %v619_v3 = vsel %vm615_vm2, %v3883_v2, -inf }
 0x1a6   : > { %620 = vmax.xlane.f32.xlu0 %v619_v3 }
 0x1a8   : > { %v475_v4 = vpop.f32.mrf.mxu3 }
 0x1a9   : > { %v3887_v5 = vadd.f32 %v475_v4, %v374_v60 }
 0x1ab   : > { %v628_v6 = vsel %vm615_vm2, %v3887_v5, -inf }
 0x1ac   : > { %629 = vmax.xlane.f32.xlu1 %v628_v6 }
 0x1b0   : > { %v448_v7 = vpop.f32.mrf.mxu2  ;;  %v477_v8 = vpop.f32.mrf.mxu3 }
 0x1b1   : > { %v3891_v9 = vadd.f32 %v448_v7, %v374_v60  ;;  %v3893_v11 = vadd.f32 %v477_v8, %v375_v0 }
 0x1b2   : > { %v502_v13 = vpop.f32.mrf.mxu1 }
 0x1b3   : > { %v631_v14 = vsel %vm615_vm2, %v3893_v11, -inf  ;;  %v622_v15 = vsel %vm615_vm2, %v3891_v9, -inf  ;;  %v3899_v16 = vadd.f32 %v502_v13, %v374_v60 }
 0x1b4   : > { %632 = vmax.xlane.f32.xlu2 %v631_v14  ;;  %623 = vmax.xlane.f32.xlu1 %v622_v15 }
 0x1b5   : > { %v634_v21 = vsel %vm615_vm2, %v3899_v16, -inf }
 0x1b8   : > { %v450_v17 = vpop.f32.mrf.mxu2  ;;  %v556_v18 = vpop.f32.mrf.mxu3 }
 0x1b9   : > { %v3907_v23 = vadd.f32 %v450_v17, %v375_v0  ;;  %v3909_v26 = vadd.f32 %v556_v18, %v374_v60 }
 0x1ba   : > { %v504_v19 = vpop.f32.mrf.mxu1 }
 0x1bb   : > { %v3901_v20 = vadd.f32 %v504_v19, %v375_v0  ;;  %v625_v33 = vsel %vm615_vm2, %v3907_v23, -inf  ;;  %v646_v35 = vsel %vm615_vm2, %v3909_v26, -inf }
 0x1bc   : > { %635 = vmax.xlane.f32.xlu2 %v634_v21 }
 0x1bd   : > { %v637_v22 = vsel %vm615_vm2, %v3901_v20, -inf }
 0x1be   : > { %638 = vmax.xlane.f32.xlu0 %v637_v22 }
 0x1c0   : > { %v529_v24 = vpop.f32.mrf.mxu2  ;;  %v558_v25 = vpop.f32.mrf.mxu3 }
 0x1c1   : > { %v3911_v29 = vadd.f32 %v558_v25, %v375_v0  ;;  %v3919_v36 = vadd.f32 %v529_v24, %v374_v60 }
 0x1c2   : > { %v583_v30 = vpop.f32.mrf.mxu1 }
 0x1c3   : > { %v649_v34 = vsel %vm615_vm2, %v3911_v29, -inf  ;;  %v3921_v37 = vadd.f32 %v583_v30, %v374_v60  ;;  %v640_v41 = vsel %vm615_vm2, %v3919_v36, -inf }
 0x1c4   : > { %626 = vmax.xlane.f32.xlu2 %v625_v33  ;;  %650 = vmax.xlane.f32.xlu1 %v649_v34 }
 0x1c5   : > { %v652_v43 = vsel %vm615_vm2, %v3921_v37, -inf }
 0x1c6   : > { %647 = vmax.xlane.f32.xlu0 %v646_v35 }
 0x1c8   : > { %v531_v38 = vpop.f32.mrf.mxu2 }
 0x1c9   : > { %v3931_v45 = vadd.f32 %v531_v38, %v375_v0 }
 0x1ca   : > { %v585_v39 = vpop.f32.mrf.mxu1 }
 0x1cb   : > { %v3923_v40 = vadd.f32 %v585_v39, %v375_v0  ;;  %v643_v48 = vsel %vm615_vm2, %v3931_v45, -inf }
 0x1cc   : > { %641 = vmax.xlane.f32.xlu1 %v640_v41  ;;  %653 = vmax.xlane.f32.xlu2 %v652_v43 }
 0x1cd   : > { %v655_v44 = vsel %vm615_vm2, %v3923_v40, -inf }
 0x1ce   : > { %656 = vmax.xlane.f32.xlu0 %v655_v44 }
 0x1d0   : > { %v610_v46 = vpop.f32.mrf.mxu2 }
 0x1d1   : > { %v3933_v47 = vadd.f32 %v610_v46, %v374_v60 }
 0x1d3   : > { %v658_v49 = vsel %vm615_vm2, %v3933_v47, -inf }
 0x1d4   : > { %644 = vmax.xlane.f32.xlu2 %v643_v48 }
 0x1d6   : > { %659 = vmax.xlane.f32.xlu0 %v658_v49 }
 0x1d8   : > { %v612_v50 = vpop.f32.mrf.mxu2 }
 0x1d9   : > { %v3939_v51 = vadd.f32 %v612_v50, %v375_v0 }
 0x1db   : > { %v661_v52 = vsel %vm615_vm2, %v3939_v51, -inf }
 0x1dc   : > { %662 = vmax.xlane.f32.xlu1 %v661_v52 }
 0x211   : > { %v618_v59 = vpop.xlane.xlu2 %617 }
 0x212   : > { %v664_v60 = vsub.f32 %v3876_v62, %v618_v59 }
 0x214   : > { %v680_v61 = vmul.f32 1.442695, %v664_v60 }
 0x216   : > { %3435 = vpow2.f32 %v680_v61 }
 0x219   : > { %v621_v0 = vpop.xlane.xlu0 %620 }
 0x21a   : > { %v665_v1 = vsub.f32 %v3883_v2, %v621_v0 }
 0x21c   : > { %v3955_v3 = vpop.eup %3435  ;;  %v682_v4 = vmul.f32 1.442695, %v665_v1 }
 0x21d   : > { %v712_v6 = vsel %vm615_vm2, %v3955_v3, 0.0 }
 0x21e   : > { %3437 = vpow2.f32 %v682_v4  ;;  %713 = vadd.xlane.f32.xlu2 %v712_v6 }
 0x21f   : > { %v630_v7 = vpop.xlane.xlu1 %629 }
 0x220   : > { %v668_v8 = vsub.f32 %v3887_v5, %v630_v7 }
 0x222   : > { %v688_v13 = vmul.f32 1.442695, %v668_v8 }
 0x224   : > { %v3960_v62 = vpop.eup %3437  ;;  %3439 = vpow2.f32 %v688_v13 }
 0x225   : > { %v715_v14 = vsel %vm615_vm2, %v3960_v62, 0.0 }
 0x226   : > { %716 = vadd.xlane.f32.xlu0 %v715_v14 }
 0x227   : > { %v633_v2 = vpop.xlane.xlu2 %632  ;;  %v624_v5 = vpop.xlane.xlu1 %623 }
 0x228   : > { %v669_v15 = vsub.f32 %v3893_v11, %v633_v2  ;;  %v666_v30 = vsub.f32 %v3891_v9, %v624_v5 }
 0x22a   : > { %v3965_v17 = vpop.eup %3439  ;;  %v690_v18 = vmul.f32 1.442695, %v669_v15  ;;  %v684_v38 = vmul.f32 1.442695, %v666_v30 }
 0x22b   : > { %v724_v19 = vsel %vm615_vm2, %v3965_v17, 0.0 }
 0x22c   : > { %3441 = vpow2.f32 %v690_v18  ;;  %725 = vadd.xlane.f32.xlu2 %v724_v19 }
 0x22f   : > { %v636_v21 = vpop.xlane.xlu2 %635 }
 0x230   : > { %v670_v22 = vsub.f32 %v3899_v16, %v636_v21 }
 0x231   : > { %v639_v24 = vpop.xlane.xlu0 %638 }
 0x232   : > { %v3970_v25 = vpop.eup %3441  ;;  %v692_v33 = vmul.f32 1.442695, %v670_v22  ;;  %v671_v11 = vsub.f32 %v3901_v20, %v639_v24 }
 0x233   : > { %v727_v34 = vsel %vm615_vm2, %v3970_v25, 0.0 }
 0x234   : > { %3443 = vpow2.f32 %v692_v33  ;;  %v694_v35 = vmul.f32 1.442695, %v671_v11  ;;  %728 = vadd.xlane.f32.xlu0 %v727_v34 }
 0x236   : > { %3445 = vpow2.f32 %v694_v35 }
 0x237   : > { %v627_v39 = vpop.xlane.xlu2 %626  ;;  %v651_v41 = vpop.xlane.xlu1 %650  ;;  %3447 = vpow2.f32 %v684_v38 }
 0x238   : > { %v675_v16 = vsub.f32 %v3911_v29, %v651_v41  ;;  %v667_v49 = vsub.f32 %v3907_v23, %v627_v39 }
 0x239   : > { %v648_v43 = vpop.xlane.xlu0 %647 }
 0x23a   : > { %v3977_v44 = vpop.eup %3443  ;;  %v702_v9 = vmul.f32 1.442695, %v675_v16  ;;  %v674_v46 = vsub.f32 %v3909_v26, %v648_v43  ;;  %v686_v59 = vmul.f32 1.442695, %v667_v49 }
 0x23b   : > { %v730_v20 = vsel %vm615_vm2, %v3977_v44, 0.0 }
 0x23c   : > { %v3982_v48 = vpop.eup %3445  ;;  %v700_v50 = vmul.f32 1.442695, %v674_v46  ;;  %731 = vadd.xlane.f32.xlu2 %v730_v20  ;;  %3449 = vpow2.f32 %v702_v9 }
 0x23d   : > { %v733_v29 = vsel %vm615_vm2, %v3982_v48, 0.0  ;;  %v3987_v52 = vpop.eup %3447 }
 0x23e   : > { %3451 = vpow2.f32 %v700_v50  ;;  %734 = vadd.xlane.f32.xlu0 %v733_v29  ;;  %v718_v61 = vsel %vm615_vm2, %v3987_v52, 0.0 }
 0x23f   : > { %v654_v60 = vpop.xlane.xlu2 %653  ;;  %3453 = vpow2.f32 %v686_v59  ;;  %v642_v7 = vpop.xlane.xlu1 %641 }
 0x240   : > { %v676_v23 = vsub.f32 %v3921_v37, %v654_v60  ;;  %v672_v13 = vsub.f32 %v3919_v36, %v642_v7 }
 0x241   : > { %v657_v2 = vpop.xlane.xlu0 %656 }
 0x242   : > { %v3989_v26 = vpop.eup %3449  ;;  %v704_v6 = vmul.f32 1.442695, %v676_v23  ;;  %v696_v37 = vmul.f32 1.442695, %v672_v13  ;;  %v677_v18 = vsub.f32 %v3923_v40, %v657_v2 }
 0x243   : > { %v745_v1 = vsel %vm615_vm2, %v3989_v26, 0.0 }
 0x244   : > { %v3993_v0 = vpop.eup %3451  ;;  %719 = vadd.xlane.f32.xlu2 %v718_v61  ;;  %746 = vadd.xlane.f32.xlu1 %v745_v1  ;;  %3455 = vpow2.f32 %v704_v6  ;;  %v706_v5 = vmul.f32 1.442695, %v677_v18 }
 0x245   : > { %v742_v4 = vsel %vm615_vm2, %v3993_v0, 0.0  ;;  %v4000_v8 = vpop.eup %3453  ;;  %3457 = vpow2.f32 %v696_v37 }
 0x246   : > { %743 = vadd.xlane.f32.xlu0 %v742_v4  ;;  %v721_v14 = vsel %vm615_vm2, %v4000_v8, 0.0  ;;  %3459 = vpow2.f32 %v706_v5 }
 0x247   : > { %v645_v24 = vpop.xlane.xlu2 %644 }
 0x248   : > { %v673_v30 = vsub.f32 %v3931_v45, %v645_v24 }
 0x249   : > { %v660_v41 = vpop.xlane.xlu0 %659 }
 0x24a   : > { %v4005_v15 = vpop.eup %3455  ;;  %v698_v34 = vmul.f32 1.442695, %v673_v30  ;;  %v678_v43 = vsub.f32 %v3933_v47, %v660_v41 }
 0x24b   : > { %v748_v19 = vsel %vm615_vm2, %v4005_v15, 0.0  ;;  %v4010_v21 = vpop.eup %3457 }
 0x24c   : > { %v736_v36 = vsel %vm615_vm2, %v4010_v21, 0.0  ;;  %v4018_v22 = vpop.eup %3459  ;;  %3461 = vpow2.f32 %v698_v34  ;;  %v708_v20 = vmul.f32 1.442695, %v678_v43 }
 0x24d   : > { %v751_v40 = vsel %vm615_vm2, %v4018_v22, 0.0 }
 0x24e   : > { %722 = vadd.xlane.f32.xlu0 %v721_v14 }
 0x24f   : > { %v663_v33 = vpop.xlane.xlu1 %662 }
 0x250   : > { %v679_v11 = vsub.f32 %v3939_v51, %v663_v33 }
 0x252   : > { %v710_v35 = vmul.f32 1.442695, %v679_v11  ;;  %v4026_v38 = vpop.eup %3461 }
 0x253   : > { %v739_v45 = vsel %vm615_vm2, %v4026_v38, 0.0 }
 0x254   : > { %3463 = vpow2.f32 %v710_v35 }
 0x256   : > { %749 = vadd.xlane.f32.xlu0 %v748_v19 }
 0x25a   : > { %v4030_v39 = vpop.eup %3463 }
 0x25b   : > { %v757_v51 = vsel %vm615_vm2, %v4030_v39, 0.0 }
 0x25c   : > { %1082 = vrot.lane.b32.xlu2 %v3819_v32, %s3702_s13 }
 0x25d   : > { %1056 = vrot.lane.b32.xlu1 %v3794_v55, %s3701_s12 }
 0x25e   : > { %737 = vadd.xlane.f32.xlu0 %v736_v36 }
 0x266   : > { %752 = vadd.xlane.f32.xlu0 %v751_v40  ;;  %v1016_v40 = vsel %vm405_vm1, %v3943_v53, 0 }
 0x27a   : > { %1058 = vrot.lane.b32.xlu0 %v3794_v55, %s3702_s13 }
 0x282   : > { %1104 = vrot.lane.b32.xlu0 %v3815_v28, %s3701_s12 }
 0x285   : > { %740 = vadd.xlane.f32.xlu2 %v739_v45 }
 0x287   : > { %758 = vadd.xlane.f32.xlu1 %v757_v51 }
 0x291   : > { %v714_v16 = vpop.xlane.xlu2 %713 }
 0x292   : > { %3465 = vrcp.f32 %v714_v16 }
 0x298   : > { %v3466_v46 = vpop.eup %3465 }
 0x299   : > { %v717_v9 = vpop.xlane.xlu0 %716  ;;  %v776_v49 = vmul.f32 %v3466_v46, %v3955_v3 }
 0x29a   : > { %3467 = vrcp.f32 %v717_v9 }
 0x29b   : > { %3469 = vpow2.f32 %v708_v20  ;;  %v792_v59 = vpack.c.bf16 %v776_v49, %v776_v49 }
 0x29d   : > { %1106 = vrot.lane.b32.xlu2 %v3815_v28, %s3702_s13  ;;  %v810_v61 = vunpack.c.l.b16 %v792_v59 }
 0x29f   : > { %v726_v50 = vpop.xlane.xlu2 %725 }
 0x2a0   : > { %v3468_v29 = vpop.eup %3467  ;;  %1152 = vrot.lane.b32.xlu1 %v3804_v10, %s3701_s12  ;;  %3471 = vrcp.f32 %v726_v50 }
 0x2a1   : > { %v777_v60 = vmul.f32 %v3468_v29, %v3960_v62  ;;  %v4045_v3 = vpop.eup %3469 }
 0x2a2   : > { %v754_v7 = vsel %vm615_vm2, %v4045_v3, 0.0 }
 0x2a3   : > { %v793_v47 = vpack.c.bf16 %v777_v60, %v777_v60 }
 0x2a5   : > { %v811_v23 = vunpack.c.l.b16 %v793_v47  ;;  %1080 = vrot.lane.b32.xlu2 %v3819_v32, %s3701_s12 }
 0x2a6   : > { %v3472_v6 = vpop.eup %3471 }
 0x2a7   : > { %v812_v1 = vpack.c.b16 %v811_v23, %v810_v61  ;;  %v729_v4 = vpop.xlane.xlu0 %728  ;;  %v780_v62 = vmul.f32 %v3472_v6, %v3965_v17 }
 0x2a8   : > { %3473 = vrcp.f32 %v729_v4  ;;  %1176 = vrot.lane.b32.xlu1 %v3826_v27, %s3701_s12 }
 0x2a9   : > { %3207 = vmatmul.msk.bf16.vlgmr.msrb.gmra.mxu3 %vm615_vm2, %v812_v1  ;;  %v796_v14 = vpack.c.bf16 %v780_v62, %v780_v62 }
 0x2aa   : > { %976 = vmatpush.bf16.msrb.mxu3 %v3949_v57 }
 0x2ab   : > { %v860_v17 = vunpack.c.l.b16 %v796_v14 }
 0x2ac   : > { %755 = vadd.xlane.f32.xlu0 %v754_v7 }
 0x2ad   : > { %1154 = vrot.lane.b32.xlu2 %v3804_v10, %s3702_s13 }
 0x2ae   : > { %v3474_v13 = vpop.eup %3473 }
 0x2af   : > { %v781_v37 = vmul.f32 %v3474_v13, %v3970_v25  ;;  %v732_v2 = vpop.xlane.xlu2 %731 }
 0x2b0   : > { %3475 = vrcp.f32 %v732_v2  ;;  %1497 = vrot.lane.b32.xlu1 %v3815_v28, %s3703_s18 }
 0x2b1   : > { %v797_v18 = vpack.c.bf16 %v781_v37, %v781_v37  ;;  %v735_v57 = vpop.xlane.xlu0 %734 }
 0x2b2   : > { %3477 = vrcp.f32 %v735_v57 }
 0x2b3   : > { %v861_v19 = vunpack.c.l.b16 %v797_v18 }
 0x2b5   : > { %v862_v5 = vpack.c.b16 %v861_v19, %v860_v17  ;;  %1128 = vrot.lane.b32.xlu2 %v3817_v31, %s3701_s12 }
 0x2b6   : > { %v3476_v36 = vpop.eup %3475 }
 0x2b7   : > { %v782_v25 = vmul.f32 %v3476_v36, %v3977_v44  ;;  %3209 = vmatmul.msk.bf16.vlgmr.msra.gmra.mxu2 %vm615_vm2, %v862_v5  ;;  %v747_v30 = vpop.xlane.xlu1 %746  ;;  %v720_v34 = vpop.xlane.xlu2 %719 }
 0x2b8   : > { %v3478_v24 = vpop.eup %3477  ;;  %1025 = vmatpush.bf16.xpose.msra.mxu2 %v1016_v40  ;;  %3479 = vrcp.f32 %v747_v30  ;;  %1547 = vrot.lane.b32.xlu1 %v3804_v10, %s3703_s18 }
 0x2b9   : > { %v798_v33 = vpack.c.bf16 %v782_v25, %v782_v25  ;;  %v783_v11 = vmul.f32 %v3478_v24, %v3982_v48  ;;  %v744_v35 = vpop.xlane.xlu0 %743  ;;  %v1040_v48 = vsel %vm405_vm1, %v3945_v54, 0 }
 0x2ba   : > { %3481 = vrcp.f32 %v744_v35 }
 0x2bb   : > { %v799_v45 = vpack.c.bf16 %v783_v11, %v783_v11  ;;  %3483 = vrcp.f32 %v720_v34  ;;  %v885_v53 = vunpack.c.l.b16 %v798_v33 }
 0x2bd   : > { %v886_v51 = vunpack.c.l.b16 %v799_v45  ;;  %1397 = vrot.lane.b32.xlu2 %v3787_v42, %s3703_s18 }
 0x2be   : > { %v3480_v44 = vpop.eup %3479 }
 0x2bf   : > { %v887_v41 = vpack.c.b16 %v886_v51, %v885_v53  ;;  %v787_v43 = vmul.f32 %v3480_v44, %v3989_v26  ;;  %v1083_v54 = vpop.permute.xlu2 %1082 }
 0x2c0   : > { %v3482_v16 = vpop.eup %3481  ;;  %1130 = vrot.lane.b32.xlu0 %v3817_v31, %s3702_s13  ;;  %1592 = vrot.lane.b32.xlu1 %v3787_v42, %s3704_s19  ;;  %v1088_v61 = vsel %vm405_vm1, %v1083_v54, 0 }
 0x2c1   : > { %v786_v9 = vmul.f32 %v3482_v16, %v3993_v0  ;;  %3210 = vmatmul.msk.bf16.vlgmr.msra.gmra.mxu3 %vm615_vm2, %v887_v41  ;;  %v723_v46 = vpop.xlane.xlu0 %722  ;;  %v3484_v20 = vpop.eup %3483  ;;  %v803_v49 = vpack.c.bf16 %v787_v43, %v787_v43 }
 0x2c2   : > { %1049 = vmatpush.bf16.xpose.msra.mxu3 %v1040_v48  ;;  %3485 = vrcp.f32 %v723_v46  ;;  %v778_v29 = vmul.f32 %v3484_v20, %v3987_v52 }
 0x2c3   : > { %v802_v26 = vpack.c.bf16 %v786_v9, %v786_v9  ;;  %v936_v50 = vunpack.c.l.b16 %v803_v49 }
 0x2c4   : > { %v794_v47 = vpack.c.bf16 %v778_v29, %v778_v29 }
 0x2c5   : > { %v935_v59 = vunpack.c.l.b16 %v802_v26  ;;  %1447 = vrot.lane.b32.xlu2 %v3794_v55, %s3703_s18 }
 0x2c6   : > { %v835_v4 = vunpack.c.l.b16 %v794_v47 }
 0x2c7   : > { %v937_v0 = vpack.c.b16 %v936_v50, %v935_v59 }
 0x2c8   : > { %v3486_v60 = vpop.eup %3485  ;;  %1178 = vrot.lane.b32.xlu0 %v3826_v27, %s3702_s13  ;;  %1642 = vrot.lane.b32.xlu1 %v3794_v55, %s3705_s20 }
 0x2c9   : > { %v779_v23 = vmul.f32 %v3486_v60, %v4000_v8  ;;  %3212 = vmatmul.msk.bf16.vlgmr.msrb.gmra.mxu2 %vm615_vm2, %v937_v0  ;;  %v750_v52 = vpop.xlane.xlu0 %749 }
 0x2ca   : > { %1097 = vmatpush.bf16.xpose.msrb.mxu2 %v1088_v61  ;;  %3487 = vrcp.f32 %v750_v52 }
 0x2cb   : > { %v795_v1 = vpack.c.bf16 %v779_v23, %v779_v23 }
 0x2cd   : > { %v836_v6 = vunpack.c.l.b16 %v795_v1  ;;  %1594 = vrot.lane.b32.xlu2 %v3787_v42, %s3705_s20 }
 0x2cf   : > { %v837_v62 = vpack.c.b16 %v836_v6, %v835_v4  ;;  %v1057_v11 = vpop.permute.xlu1 %1056 }
 0x2d0   : > { %1422 = vrot.lane.b32.xlu0 %v3806_v12, %s3703_s18  ;;  %1618 = vrot.lane.b32.xlu1 %v3806_v12, %s3705_s20  ;;  %v3488_v13 = vpop.eup %3487 }
 0x2d1   : > { %3208 = vmatmul.msk.bf16.vlgmr.msra.gmra.mxu1 %vm615_vm2, %v837_v62  ;;  %v738_v8 = vpop.xlane.xlu0 %737  ;;  %v788_v14 = vmul.f32 %v3488_v13, %v4005_v15 }
 0x2d2   : > { %1001 = vmatpush.bf16.msra.mxu1 %v3952_v63 }
 0x2d3   : > { %v804_v37 = vpack.c.bf16 %v788_v14, %v788_v14 }
 0x2d5   : > { %1522 = vrot.lane.b32.xlu2 %v3817_v31, %s3703_s18 }
 0x2d8   : > { %1472 = vrot.lane.b32.xlu0 %v3819_v32, %s3703_s18  ;;  %1690 = vrot.lane.b32.xlu1 %v3815_v28, %s3705_s20 }
 0x2d9   : > { %3215 = vmatmul.msk.bf16.vlgmr.msra.gmra.mxu2 %vm405_vm1, %v3867_v58  ;;  %v753_v7 = vpop.xlane.xlu0 %752  ;;  %v960_v58 = vunpack.c.l.b16 %v804_v37 }
 0x2da   : > { %3489 = vrcp.f32 %v753_v7 }
 0x2db   : > { %3491 = vrcp.f32 %v738_v8 }
 0x2dd   : > { %1616 = vrot.lane.b32.xlu2 %v3806_v12, %s3704_s19 }
 0x2e0   : > { %v3490_v63 = vpop.eup %3489  ;;  %1640 = vrot.lane.b32.xlu0 %v3794_v55, %s3704_s19  ;;  %1572 = vrot.lane.b32.xlu1 %v3826_v27, %s3703_s18  ;;  %s3712_s18 = smov 24  }
 0x2e1   : > { %v789_v2 = vmul.f32 %v3490_v63, %v4018_v22  ;;  %v3492_v19 = vpop.eup %3491 }
 0x2e2   : > { %v784_v22 = vmul.f32 %v3492_v19, %v4010_v21  ;;  %v4162_v19 = vld [vmem:[%s5192_s5 + $0x10] sm:$0xff] }
 0x2e3   : > { %v805_v18 = vpack.c.bf16 %v789_v2, %v789_v2 }
 0x2e4   : > { %v800_v40 = vpack.c.bf16 %v784_v22, %v784_v22 }
 0x2e5   : > { %v961_v57 = vunpack.c.l.b16 %v805_v18 }
 0x2e6   : > { %v910_v34 = vunpack.c.l.b16 %v800_v40 }
 0x2e7   : > { %v962_v17 = vpack.c.b16 %v961_v57, %v960_v58 }
 0x2e8   : > { %1688 = vrot.lane.b32.xlu1 %v3815_v28, %s3704_s19 }
 0x2e9   : > { %3213 = vmatmul.msk.bf16.vlgmr.msrb.gmra.mxu3 %vm615_vm2, %v962_v17 }
 0x2ec   : > { %v1059_v36 = vpop.permute.xlu0 %1058 }
 0x2ed   : > { %v1064_v53 = vsel %vm405_vm1, %v1059_v36, 0 }
 0x2f8   : > { %v741_v15 = vpop.xlane.xlu2 %740 }
 0x2f9   : > { %3493 = vrcp.f32 %v741_v15  ;;  %3216 = vmatmul.msk.bf16.vlgmr.msra.gmra.mxu3 %vm405_vm1, %v3947_v56  ;;  %v1105_v56 = vpop.permute.xlu0 %1104 }
 0x2fa   : > { %v759_v21 = vpop.xlane.xlu1 %758 }
 0x2fb   : > { %3495 = vrcp.f32 %v759_v21 }
 0x2ff   : > { %v3494_v5 = vpop.eup %3493 }
 0x300   : > { %v785_v25 = vmul.f32 %v3494_v5, %v4026_v38  ;;  %v1107_v24 = vpop.permute.xlu2 %1106 }
 0x301   : > { %v1112_v30 = vsel %vm405_vm1, %v1107_v24, 0  ;;  %v3496_v9 = vpop.eup %3495 }
 0x302   : > { %v801_v33 = vpack.c.bf16 %v785_v25, %v785_v25  ;;  %1121 = vmatpush.bf16.xpose.msrb.mxu3 %v1112_v30  ;;  %v791_v20 = vmul.f32 %v3496_v9, %v4030_v39 }
 0x304   : > { %v911_v35 = vunpack.c.l.b16 %v801_v33  ;;  %v807_v50 = vpack.c.bf16 %v791_v20, %v791_v20 }
 0x306   : > { %v912_v45 = vpack.c.b16 %v911_v35, %v910_v34  ;;  %v986_v0 = vunpack.c.l.b16 %v807_v50  ;;  %v377_v34 = vld [vmem:[%s5192_s5 + $0x18] sm:$0xff] }
 0x308   : > { %v1081_v51 = vpop.permute.xlu2 %1080  ;;  %3211 = vmatmul.msk.bf16.vlgmr.msrb.gmra.mxu1 %vm615_vm2, %v912_v45 }
 0x309   : > { %1073 = vmatpush.bf16.xpose.msrb.mxu1 %v1064_v53  ;;  %3218 = vmatmul.msk.bf16.vlgmr.msrb.gmra.mxu2 %vm405_vm1, %v1081_v51 }
 0x30a   : > { %3219 = vmatmul.msk.bf16.vlgmr.msrb.gmra.mxu3 %vm405_vm1, %v1105_v56 }
 0x310   : > { %v1155_v38 = vpop.permute.xlu2 %1154 }
 0x311   : > { %v1160_v44 = vsel %vm405_vm1, %v1155_v38, 0 }
 0x312   : > { %1169 = vmatpush.bf16.xpose.msra.mxu2 %v1160_v44  ;;  %v1153_v41 = vpop.permute.xlu1 %1152 }
 0x318   : > { %v1129_v16 = vpop.permute.xlu2 %1128 }
 0x319   : > { %3221 = vmatmul.msk.bf16.vlgmr.msra.gmra.mxu2 %vm405_vm1, %v1153_v41 }
 0x31a   : > { %v1177_v43 = vpop.permute.xlu1 %1176 }
 0x31f   : > { %v756_v48 = vpop.xlane.xlu0 %755 }
 0x320   : > { %3497 = vrcp.f32 %v756_v48  ;;  %v1398_v46 = vpop.permute.xlu2 %1397 }
 0x321   : > { %1410 = vmatpush.bf16.msrb.mxu0 %v1398_v46 }
 0x322   : > { %v1498_v49 = vpop.permute.xlu1 %1497 }
 0x325   : > { %1510 = vmatpush.bf16.msra.mxu0 %v1498_v49 }
 0x326   : > { %v3498_v26 = vpop.eup %3497 }
 0x327   : > { %v790_v29 = vmul.f32 %v3498_v26, %v4045_v3 }
 0x328   : > { %v1448_v59 = vpop.permute.xlu2 %1447 }
 0x329   : > { %v806_v54 = vpack.c.bf16 %v790_v29, %v790_v29  ;;  %1460 = vmatpush.bf16.msrb.mxu2 %v1448_v59 }
 0x32a   : > { %v1548_v47 = vpop.permute.xlu1 %1547 }
 0x32b   : > { %v985_v60 = vunpack.c.l.b16 %v806_v54 }
 0x32c   : > { %v4146_v14 = vpop.f32.mrf.mxu3 }
 0x32d   : > { %1560 = vmatpush.bf16.msra.mxu2 %v1548_v47  ;;  %v987_v61 = vpack.c.b16 %v986_v0, %v985_v60  ;;  %5200 = vst [vmem:[#allocation4_spill] sm:$0xff] %v4146_v14 }
 0x32f   : > { %3214 = vmatmul.msk.bf16.vlgmr.msra.gmra.mxu1 %vm615_vm2, %v987_v61 }
 0x330   : > { %v4144_v13 = vpop.permute.xlu2 %1594 }
 0x332   : > { %v1131_v23 = vpop.permute.xlu0 %1130  ;;  %v4130_v52 = vpop.permute.xlu1 %1592 }
 0x333   : > { %v1136_v39 = vsel %vm405_vm1, %v1131_v23, 0 }
 0x334   : > { %1145 = vmatpush.bf16.xpose.msra.mxu1 %v1136_v39  ;;  %v4153_v58 = vpop.f32.mrf.mxu3 }
 0x335   : > { %5202 = vst [vmem:[#allocation6_spill] sm:$0xff] %v4153_v58 }
 0x338   : > { %v1523_v18 = vpop.permute.xlu2 %1522 }
 0x33a   : > { %v4133_v1 = vpop.f32.mrf.mxu2  ;;  %v1179_v4 = vpop.permute.xlu0 %1178 }
 0x33b   : > { %5198 = vst [vmem:[#allocation2_spill] sm:$0xff] %v4133_v1  ;;  %v4135_v3 = vpop.permute.xlu1 %1642  ;;  %v1184_v6 = vsel %vm405_vm1, %v1179_v4, 0 }
 0x33c   : > { %1193 = vmatpush.bf16.xpose.msra.mxu3 %v1184_v6 }
 0x33f   : > { %3217 = vmatmul.msk.bf16.vlgmr.msrb.gmra.mxu1 %vm405_vm1, %v1057_v11 }
 0x342   : > { %v1423_v62 = vpop.permute.xlu0 %1422  ;;  %v4142_v7 = vpop.f32.mrf.mxu2 }
 0x343   : > { %v4139_v8 = vpop.permute.xlu1 %1618  ;;  %3222 = vmatmul.msk.bf16.vlgmr.msra.gmra.mxu3 %vm405_vm1, %v1177_v43  ;;  %1435 = vmatpush.bf16.msrb.mxu1 %v1423_v62  ;;  %5199 = vst [vmem:[#allocation3_spill] sm:$0xff] %v4142_v7 }
 0x344   : > { %v4157_v15 = vpop.f32.mrf.mxu3 }
 0x345   : > { %5204 = vst [vmem:[#allocation8_spill] sm:$0xff] %v4157_v15 }
 0x34a   : > { %v1473_v63 = vpop.permute.xlu0 %1472 }
 0x34b   : > { %v4148_v37 = vpop.permute.xlu1 %1690  ;;  %1485 = vmatpush.bf16.msrb.mxu3 %v1473_v63 }
 0x34c   : > { %v4150_v2 = vpop.f32.mrf.mxu2  ;;  %v4169_v40 = vpop.f32.mrf.mxu3 }
 0x34d   : > { %5201 = vst [vmem:[#allocation5_spill] sm:$0xff] %v4150_v2 }
 0x34e   : > { %5205 = vst [vmem:[#allocation9_spill] sm:$0xff] %v4169_v40  ;;  %v4191_v38 = vpop.f32.mrf.mxu1 }
 0x34f   : > { %3220 = vmatmul.msk.bf16.vlgmr.msra.gmra.mxu1 %vm405_vm1, %v1129_v16  ;;  %5208 = vst [vmem:[#allocation12_spill] sm:$0xff] %v4191_v38 }
 0x350   : > { %1535 = vmatpush.bf16.msra.mxu1 %v1523_v18 }
 0x353   : > { %v1573_v57 = vpop.permute.xlu1 %1572 }
 0x354   : > { %1585 = vmatpush.bf16.msra.mxu3 %v1573_v57  ;;  %v4155_v17 = vpop.f32.mrf.mxu2 }
 0x355   : > { %5203 = vst [vmem:[#allocation7_spill] sm:$0xff] %v4155_v17 }
 0x356   : > { %v4203_v46 = vpop.f32.mrf.mxu1 }
 0x357   : > { %5209 = vst [vmem:[#allocation13_spill] sm:$0xff] %v4203_v46 }
 0x35c   : > { %v1027_v22 = vpop.f32.mrf.mxu2 }
 0x35d   : > { %v4165_v5 = vadd.f32 %v1027_v22, %v4162_v19 }
 0x35f   : > { %v1200_v36 = vsel %vm615_vm2, %v4165_v5, -inf }
 0x360   : > { %1201 = vmax.xlane.f32.xlu2 %v1200_v36 }
 0x364   : > { %v1029_v35 = vpop.f32.mrf.mxu2 }
 0x365   : > { %v4183_v45 = vadd.f32 %v1029_v35, %v377_v34  ;;  %v4240_v35 = vpop.permute.xlu2 %1616 }
 0x367   : > { %v1203_v21 = vsel %vm615_vm2, %v4183_v45, -inf }
 0x36c   : > { %v4171_v25 = vpop.f32.mrf.mxu3 }
 0x36d   : > { %5206 = vst [vmem:[#allocation10_spill] sm:$0xff] %v4171_v25 }
 0x374   : > { %v4173_v24 = vpop.f32.mrf.mxu3 }
 0x375   : > { %5207 = vst [vmem:[#allocation11_spill] sm:$0xff] %v4173_v24 }
 0x37c   : > { %v1051_v30 = vpop.f32.mrf.mxu3 }
 0x37d   : > { %v4176_v33 = vadd.f32 %v1051_v30, %v4162_v19 }
 0x37f   : > { %v1206_v11 = vsel %vm615_vm2, %v4176_v33, -inf }
 0x380   : > { %1207 = vmax.xlane.f32.xlu0 %v1206_v11 }
 0x384   : > { %v1053_v53 = vpop.f32.mrf.mxu3 }
 0x385   : > { %v4185_v51 = vadd.f32 %v1053_v53, %v377_v34  ;;  %v4213_v54 = vpop.f32.mrf.mxu1 }
 0x386   : > { %5210 = vst [vmem:[#allocation14_spill] sm:$0xff] %v4213_v54 }
 0x387   : > { %v1209_v56 = vsel %vm615_vm2, %v4185_v51, -inf }
 0x388   : > { %1210 = vmax.xlane.f32.xlu1 %v1209_v56  ;;  %1204 = vmax.xlane.f32.xlu0 %v1203_v21 }
 0x38c   : > { %v1099_v44 = vpop.f32.mrf.mxu2 }
 0x38d   : > { %v4194_v41 = vadd.f32 %v1099_v44, %v4162_v19  ;;  %v1123_v16 = vpop.f32.mrf.mxu3  ;;  %v4220_v61 = vpop.f32.mrf.mxu1 }
 0x38e   : > { %v4197_v43 = vadd.f32 %v1123_v16, %v4162_v19  ;;  %5211 = vst [vmem:[#allocation15_spill] sm:$0xff] %v4220_v61 }
 0x38f   : > { %v1218_v48 = vsel %vm615_vm2, %v4194_v41, -inf }
 0x390   : > { %1219 = vmax.xlane.f32.xlu1 %v1218_v48  ;;  %v1224_v9 = vsel %vm615_vm2, %v4197_v43, -inf }
 0x391   : > { %1225 = vmax.xlane.f32.xlu2 %v1224_v9 }
 0x394   : > { %v1101_v20 = vpop.f32.mrf.mxu2 }
 0x395   : > { %v4205_v49 = vadd.f32 %v1101_v20, %v377_v34  ;;  %v1125_v26 = vpop.f32.mrf.mxu3 }
 0x396   : > { %v4207_v50 = vadd.f32 %v1125_v26, %v377_v34 }
 0x397   : > { %v1221_v29 = vsel %vm615_vm2, %v4205_v49, -inf }
 0x398   : > { %v1227_v59 = vsel %vm615_vm2, %v4207_v50, -inf }
 0x399   : > { %1228 = vmax.xlane.f32.xlu0 %v1227_v59  ;;  %1222 = vmax.xlane.f32.xlu2 %v1221_v29 }
 0x39c   : > { %v1171_v0 = vpop.f32.mrf.mxu2 }
 0x39d   : > { %v4216_v60 = vadd.f32 %v1171_v0, %v4162_v19 }
 0x39f   : > { %v1236_v47 = vsel %vm615_vm2, %v4216_v60, -inf }
 0x3a1   : > { %1237 = vmax.xlane.f32.xlu0 %v1236_v47 }
 0x3a4   : > { %v1173_v11 = vpop.f32.mrf.mxu2 }
 0x3a5   : > { %v4242_v56 = vadd.f32 %v1173_v11, %v377_v34 }
 0x3a7   : > { %v1239_v48 = vsel %vm615_vm2, %v4242_v56, -inf }
 0x3ac   : > { %v4222_v23 = vpop.f32.mrf.mxu1 }
 0x3ad   : > { %5212 = vst [vmem:[#allocation16_spill] sm:$0xff] %v4222_v23 }
 0x3b4   : > { %v4224_v39 = vpop.f32.mrf.mxu1 }
 0x3b5   : > { %5213 = vst [vmem:[#allocation17_spill] sm:$0xff] %v4224_v39 }
 0x3bc   : > { %v1075_v4 = vpop.f32.mrf.mxu1 }
 0x3bd   : > { %v4227_v6 = vadd.f32 %v1075_v4, %v4162_v19 }
 0x3bf   : > { %v1212_v62 = vsel %vm615_vm2, %v4227_v6, -inf }
 0x3c0   : > { %1213 = vmax.xlane.f32.xlu1 %v1212_v62 }
 0x3c4   : > { %v1077_v63 = vpop.f32.mrf.mxu1 }
 0x3c5   : > { %v4231_v18 = vadd.f32 %v1077_v63, %v377_v34 }
 0x3c6   : > { %v1195_v57 = vpop.f32.mrf.mxu3 }
 0x3c7   : > { %v4234_v22 = vadd.f32 %v1195_v57, %v4162_v19  ;;  %v1215_v36 = vsel %vm615_vm2, %v4231_v18, -inf }
 0x3c8   : > { %1216 = vmax.xlane.f32.xlu2 %v1215_v36 }
 0x3c9   : > { %v1242_v30 = vsel %vm615_vm2, %v4234_v22, -inf }
 0x3ca   : > { %1243 = vmax.xlane.f32.xlu1 %v1242_v30 }
 0x3cc   : > { %v1147_v53 = vpop.f32.mrf.mxu1 }
 0x3cd   : > { %v4245_v21 = vadd.f32 %v1147_v53, %v4162_v19 }
 0x3ce   : > { %v1197_v16 = vpop.f32.mrf.mxu3 }
 0x3cf   : > { %v1230_v44 = vsel %vm615_vm2, %v4245_v21, -inf  ;;  %v4251_v9 = vadd.f32 %v1197_v16, %v377_v34 }
 0x3d0   : > { %1231 = vmax.xlane.f32.xlu2 %v1230_v44 }
 0x3d1   : > { %v1245_v47 = vsel %vm615_vm2, %v4251_v9, -inf }
 0x3d2   : > { %1240 = vmax.xlane.f32.xlu1 %v1239_v48 }
 0x3d3   : > { %v1202_v20 = vpop.xlane.xlu2 %1201 }
 0x3d4   : > { %v1248_v26 = vsub.f32 %v4165_v5, %v1202_v20  ;;  %v1149_v29 = vpop.f32.mrf.mxu1  ;;  %v4264_v5 = vpop.permute.xlu0 %1640 }
 0x3d5   : > { %v4254_v59 = vadd.f32 %v1149_v29, %v377_v34  ;;  %v4266_v34 = vpop.permute.xlu1 %1688 }
 0x3d6   : > { %v1264_v0 = vmul.f32 1.442695, %v1248_v26 }
 0x3d7   : > { %v1233_v19 = vsel %vm615_vm2, %v4254_v59, -inf }
 0x3d8   : > { %3499 = vpow2.f32 %v1264_v0  ;;  %1234 = vmax.xlane.f32.xlu0 %v1233_v19  ;;  %1246 = vmax.xlane.f32.xlu2 %v1245_v47 }
 0x3de   : > { %v4260_v4 = vpop.eup %3499 }
 0x3df   : > { %v1296_v62 = vsel %vm615_vm2, %v4260_v4, 0.0 }
 0x3e0   : > { %1297 = vadd.xlane.f32.xlu0 %v1296_v62 }
 0x3f3   : > { %v1208_v63 = vpop.xlane.xlu0 %1207 }
 0x3f4   : > { %v1250_v57 = vsub.f32 %v4176_v33, %v1208_v63 }
 0x3f6   : > { %v1268_v36 = vmul.f32 1.442695, %v1250_v57 }
 0x3f8   : > { %3501 = vpow2.f32 %v1268_v36 }
 0x3fb   : > { %v1211_v30 = vpop.xlane.xlu1 %1210  ;;  %v1205_v11 = vpop.xlane.xlu0 %1204 }
 0x3fc   : > { %v1249_v53 = vsub.f32 %v4183_v45, %v1205_v11  ;;  %v1251_v48 = vsub.f32 %v4185_v51, %v1211_v30 }
 0x3fe   : > { %v4270_v44 = vpop.eup %3501  ;;  %v1266_v16 = vmul.f32 1.442695, %v1249_v53  ;;  %v1270_v26 = vmul.f32 1.442695, %v1251_v48 }
 0x3ff   : > { %v1302_v20 = vsel %vm615_vm2, %v4270_v44, 0.0 }
 0x400   : > { %1303 = vadd.xlane.f32.xlu0 %v1302_v20  ;;  %3503 = vpow2.f32 %v1266_v16 }
 0x401   : > { %3505 = vpow2.f32 %v1270_v26 }
 0x403   : > { %v1220_v29 = vpop.xlane.xlu1 %1219 }
 0x404   : > { %v1254_v33 = vsub.f32 %v4194_v41, %v1220_v29  ;;  %v1226_v63 = vpop.xlane.xlu2 %1225 }
 0x405   : > { %v1256_v11 = vsub.f32 %v4197_v43, %v1226_v63 }
 0x406   : > { %v1276_v0 = vmul.f32 1.442695, %v1254_v33  ;;  %v4276_v19 = vpop.eup %3503 }
 0x407   : > { %v1299_v45 = vsel %vm615_vm2, %v4276_v19, 0.0  ;;  %v4280_v47 = vpop.eup %3505  ;;  %v1280_v48 = vmul.f32 1.442695, %v1256_v11 }
 0x408   : > { %3507 = vpow2.f32 %v1276_v0  ;;  %1300 = vadd.xlane.f32.xlu1 %v1299_v45  ;;  %v1305_v41 = vsel %vm615_vm2, %v4280_v47, 0.0 }
 0x40c   : > { %v1223_v57 = vpop.xlane.xlu2 %1222  ;;  %v1229_v16 = vpop.xlane.xlu0 %1228 }
 0x40d   : > { %v1255_v0 = vsub.f32 %v4205_v49, %v1223_v57 }
 0x40e   : > { %v4282_v51 = vpop.eup %3507 }
 0x40f   : > { %v1314_v62 = vsel %vm615_vm2, %v4282_v51, 0.0  ;;  %v1278_v43 = vmul.f32 1.442695, %v1255_v0 }
 0x410   : > { %1315 = vadd.xlane.f32.xlu2 %v1314_v62  ;;  %1306 = vadd.xlane.f32.xlu1 %v1305_v41  ;;  %v1257_v62 = vsub.f32 %v4207_v50, %v1229_v16 }
 0x412   : > { %v1282_v41 = vmul.f32 1.442695, %v1257_v62 }
 0x414   : > { %v4297_v63 = vpop.xlane.xlu0 %1237 }
 0x433   : > { %v1214_v36 = vpop.xlane.xlu1 %1213 }
 0x434   : > { %v1252_v30 = vsub.f32 %v4227_v6, %v1214_v36 }
 0x436   : > { %v1272_v53 = vmul.f32 1.442695, %v1252_v30 }
 0x438   : > { %3509 = vpow2.f32 %v1272_v53 }
 0x439   : > { %3511 = vpow2.f32 %v1280_v48 }
 0x43b   : > { %v1217_v20 = vpop.xlane.xlu2 %1216 }
 0x43c   : > { %v1253_v26 = vsub.f32 %v4231_v18, %v1217_v20 }
 0x43d   : > { %v1244_v29 = vpop.xlane.xlu1 %1243 }
 0x43e   : > { %v4291_v33 = vpop.eup %3509  ;;  %v1274_v45 = vmul.f32 1.442695, %v1253_v26  ;;  %v1262_v11 = vsub.f32 %v4234_v22, %v1244_v29 }
 0x43f   : > { %v1308_v6 = vsel %vm615_vm2, %v4291_v33, 0.0  ;;  %v4299_v18 = vpop.eup %3511 }
 0x440   : > { %3513 = vpow2.f32 %v1274_v45  ;;  %1309 = vadd.xlane.f32.xlu0 %v1308_v6  ;;  %v1320_v16 = vsel %vm615_vm2, %v4299_v18, 0.0 }
 0x441   : > { %3515 = vpow2.f32 %v1278_v43 }
 0x442   : > { %3517 = vpow2.f32 %v1282_v41 }
 0x443   : > { %v1232_v36 = vpop.xlane.xlu2 %1231 }
 0x444   : > { %v1258_v30 = vsub.f32 %v4245_v21, %v1232_v36  ;;  %v1292_v21 = vmul.f32 1.442695, %v1262_v11 }
 0x445   : > { %v1241_v49 = vpop.xlane.xlu1 %1240 }
 0x446   : > { %v4303_v57 = vpop.eup %3513  ;;  %v1284_v50 = vmul.f32 1.442695, %v1258_v30  ;;  %v1261_v53 = vsub.f32 %v4242_v56, %v1241_v49 }
 0x447   : > { %v1311_v48 = vsel %vm615_vm2, %v4303_v57, 0.0  ;;  %v4310_v26 = vpop.eup %3515 }
 0x448   : > { %3519 = vpow2.f32 %v1284_v50  ;;  %1321 = vadd.xlane.f32.xlu0 %v1320_v16  ;;  %1312 = vadd.xlane.f32.xlu1 %v1311_v48  ;;  %v1290_v20 = vmul.f32 1.442695, %v1261_v53  ;;  %v4312_v29 = vpop.eup %3517  ;;  %v1317_v62 = vsel %vm615_vm2, %v4310_v26, 0.0 }
 0x449   : > { %3521 = vpow2.f32 %v1292_v21  ;;  %v1323_v6 = vsel %vm615_vm2, %v4312_v29, 0.0 }
 0x44a   : > { %3523 = vpow2.f32 %v1290_v20  ;;  %v1260_v20 = vsub.f32 %v4216_v60, %v4297_v63 }
 0x44b   : > { %v1235_v22 = vpop.xlane.xlu0 %1234 }
 0x44c   : > { %v1259_v56 = vsub.f32 %v4254_v59, %v1235_v22 }
 0x44e   : > { %v4314_v0 = vpop.eup %3519  ;;  %v1286_v43 = vmul.f32 1.442695, %v1259_v56  ;;  %v1247_v56 = vpop.xlane.xlu2 %1246 }
 0x44f   : > { %v1326_v45 = vsel %vm615_vm2, %v4314_v0, 0.0  ;;  %v4323_v41 = vpop.eup %3521 }
 0x450   : > { %1327 = vadd.xlane.f32.xlu2 %v1326_v45  ;;  %1318 = vadd.xlane.f32.xlu0 %v1317_v62  ;;  %v4325_v36 = vpop.eup %3523  ;;  %3525 = vpow2.f32 %v1286_v43  ;;  %v1338_v30 = vsel %vm615_vm2, %v4323_v41, 0.0 }
 0x451   : > { %1324 = vadd.xlane.f32.xlu1 %v1323_v6  ;;  %v1335_v59 = vsel %vm615_vm2, %v4325_v36, 0.0 }
 0x453   : > { %v1298_v50 = vpop.xlane.xlu0 %1297 }
 0x454   : > { %3527 = vrcp.f32 %v1298_v50 }
 0x456   : > { %v4331_v11 = vpop.eup %3525 }
 0x457   : > { %v1329_v49 = vsel %vm615_vm2, %v4331_v11, 0.0 }
 0x458   : > { %1336 = vadd.xlane.f32.xlu2 %v1335_v59  ;;  %1339 = vadd.xlane.f32.xlu0 %v1338_v30  ;;  %v1288_v59 = vmul.f32 1.442695, %v1260_v20 }
 0x45a   : > { %v3528_v48 = vpop.eup %3527 }
 0x45b   : > { %v1360_v21 = vmul.f32 %v3528_v48, %v4260_v4 }
 0x45d   : > { %v1376_v45 = vpack.c.bf16 %v1360_v21, %v1360_v21 }
 0x460   : > { %1330 = vadd.xlane.f32.xlu0 %v1329_v49  ;;  %v1263_v49 = vsub.f32 %v4251_v9, %v1247_v56 }
 0x46a   : > { %1666 = vrot.lane.b32.xlu1 %v3819_v32, %s3705_s20 }
 0x470   : > { %1664 = vrot.lane.b32.xlu2 %v3819_v32, %s3704_s19 }
 0x473   : > { %v1304_v53 = vpop.xlane.xlu0 %1303 }
 0x474   : > { %1738 = vrot.lane.b32.xlu0 %v3804_v10, %s3705_s20 }
 0x47b   : > { %v1301_v16 = vpop.xlane.xlu1 %1300 }
 0x47c   : > { %1736 = vrot.lane.b32.xlu0 %v3804_v10, %s3704_s19  ;;  %3529 = vrcp.f32 %v1301_v16  ;;  %v1294_v16 = vmul.f32 1.442695, %v1263_v49 }
 0x47d   : > { %3531 = vrcp.f32 %v1304_v53  ;;  %v1394_v53 = vunpack.c.l.b16 %v1376_v45 }
 0x482   : > { %v3530_v22 = vpop.eup %3529 }
 0x483   : > { %v1361_v62 = vmul.f32 %v3530_v22, %v4276_v19  ;;  %v1307_v6 = vpop.xlane.xlu1 %1306  ;;  %v3532_v43 = vpop.eup %3531  ;;  %v1600_v19 = vsel %vm405_vm1, %v4144_v13, 0 }
 0x484   : > { %1760 = vrot.lane.b32.xlu0 %v3826_v27, %s3704_s19  ;;  %3533 = vrcp.f32 %v1307_v6  ;;  %v1362_v4 = vmul.f32 %v3532_v43, %v4270_v44 }
 0x485   : > { %v1377_v30 = vpack.c.bf16 %v1361_v62, %v1361_v62  ;;  %3535 = vpow2.f32 %v1288_v59 }
 0x486   : > { %v1378_v48 = vpack.c.bf16 %v1362_v4, %v1362_v4  ;;  %3537 = vpow2.f32 %v1294_v16 }
 0x487   : > { %v1395_v50 = vunpack.c.l.b16 %v1377_v30  ;;  %v1316_v30 = vpop.xlane.xlu2 %1315 }
 0x488   : > { %v1419_v20 = vunpack.c.l.b16 %v1378_v48 }
 0x489   : > { %v1396_v60 = vpack.c.b16 %v1395_v50, %v1394_v53 }
 0x48a   : > { %v3534_v63 = vpop.eup %3533 }
 0x48b   : > { %v1363_v21 = vmul.f32 %v3534_v63, %v4280_v47  ;;  %3223 = vmatmul.msk.bf16.vlgmr.msrb.gmra.mxu0 %vm615_vm2, %v1396_v60  ;;  %v4357_v44 = vpop.eup %3535  ;;  %v1624_v47 = vsel %vm405_vm1, %v4139_v8, 0 }
 0x48c   : > { %2031 = vrot.lane.b32.xlu0 %v3794_v55, %s3706_s27  ;;  %1609 = vmatpush.bf16.xpose.msrb.mxu0 %v1600_v19  ;;  %v1332_v13 = vsel %vm615_vm2, %v4357_v44, 0.0  ;;  %v4364_v45 = vpop.eup %3537 }
 0x48d   : > { %v1379_v9 = vpack.c.bf16 %v1363_v21, %v1363_v21  ;;  %v1341_v62 = vsel %vm615_vm2, %v4364_v45, 0.0 }
 0x48f   : > { %v1420_v22 = vunpack.c.l.b16 %v1379_v9 }
 0x491   : > { %v1421_v56 = vpack.c.b16 %v1420_v22, %v1419_v20 }
 0x493   : > { %3224 = vmatmul.msk.bf16.vlgmr.msrb.gmra.mxu1 %vm615_vm2, %v1421_v56 }
 0x494   : > { %1333 = vadd.xlane.f32.xlu1 %v1332_v13  ;;  %1633 = vmatpush.bf16.xpose.msrb.mxu1 %v1624_v47 }
 0x495   : > { %2176 = vrot.lane.b32.xlu0 %v3787_v42, %s3707_s29 }
 0x499   : > { %1342 = vadd.xlane.f32.xlu2 %v1341_v62 }
 0x4ad   : > { %1714 = vrot.lane.b32.xlu1 %v3817_v31, %s3705_s20 }
 0x4b1   : > { %1762 = vrot.lane.b32.xlu2 %v3826_v27, %s3705_s20 }
 0x4b3   : > { %v1310_v8 = vpop.xlane.xlu0 %1309 }
 0x4b4   : > { %3539 = vrcp.f32 %v1310_v8 }
 0x4b5   : > { %1712 = vrot.lane.b32.xlu1 %v3817_v31, %s3704_s19 }
 0x4b9   : > { %2081 = vrot.lane.b32.xlu2 %v3815_v28, %s3706_s27 }
 0x4ba   : > { %v3540_v59 = vpop.eup %3539 }
 0x4bb   : > { %v1313_v6 = vpop.xlane.xlu1 %1312  ;;  %v1322_v43 = vpop.xlane.xlu0 %1321  ;;  %v1364_v49 = vmul.f32 %v3540_v59, %v4291_v33 }
 0x4bc   : > { %3541 = vrcp.f32 %v1313_v6 }
 0x4bd   : > { %1981 = vrot.lane.b32.xlu1 %v3787_v42, %s3706_s27  ;;  %3543 = vrcp.f32 %v1322_v43  ;;  %v1380_v50 = vpack.c.bf16 %v1364_v49, %v1364_v49 }
 0x4be   : > { %3545 = vrcp.f32 %v1316_v30 }
 0x4bf   : > { %v1444_v33 = vunpack.c.l.b16 %v1380_v50 }
 0x4c1   : > { %2106 = vrot.lane.b32.xlu2 %v3817_v31, %s3706_s27 }
 0x4c2   : > { %v3542_v4 = vpop.eup %3541 }
 0x4c3   : > { %v1365_v53 = vmul.f32 %v3542_v4, %v4303_v57  ;;  %v1319_v60 = vpop.xlane.xlu0 %1318  ;;  %v3544_v16 = vpop.eup %3543  ;;  %v1648_v57 = vsel %vm405_vm1, %v4135_v3, 0 }
 0x4c4   : > { %v1325_v63 = vpop.xlane.xlu1 %1324  ;;  %v3546_v48 = vpop.eup %3545  ;;  %v1368_v9 = vmul.f32 %v3544_v16, %v4299_v18 }
 0x4c5   : > { %v1381_v19 = vpack.c.bf16 %v1365_v53, %v1365_v53  ;;  %3547 = vrcp.f32 %v1325_v63  ;;  %2006 = vrot.lane.b32.xlu1 %v3806_v12, %s3706_s27  ;;  %v1366_v20 = vmul.f32 %v3546_v48, %v4282_v51  ;;  %v1328_v13 = vpop.xlane.xlu2 %1327 }
 0x4c6   : > { %3549 = vrcp.f32 %v1319_v60  ;;  %v1384_v8 = vpack.c.bf16 %v1368_v9, %v1368_v9 }
 0x4c7   : > { %v1445_v21 = vunpack.c.l.b16 %v1381_v19  ;;  %v1382_v43 = vpack.c.bf16 %v1366_v20, %v1366_v20  ;;  %3551 = vrcp.f32 %v1328_v13 }
 0x4c8   : > { %v1494_v3 = vunpack.c.l.b16 %v1384_v8 }
 0x4c9   : > { %v1446_v22 = vpack.c.b16 %v1445_v21, %v1444_v33  ;;  %v1469_v49 = vunpack.c.l.b16 %v1382_v43 }
 0x4cb   : > { %v3548_v56 = vpop.eup %3547  ;;  %3225 = vmatmul.msk.bf16.vlgmr.msrb.gmra.mxu2 %vm615_vm2, %v1446_v22  ;;  %v1340_v47 = vpop.xlane.xlu0 %1339 }
 0x4cc   : > { %v3550_v62 = vpop.eup %3549  ;;  %v1369_v6 = vmul.f32 %v3548_v56, %v4312_v29  ;;  %1657 = vmatpush.bf16.xpose.msrb.mxu2 %v1648_v57  ;;  %v1696_v29 = vsel %vm405_vm1, %v4148_v37, 0 }
 0x4cd   : > { %v1367_v59 = vmul.f32 %v3550_v62, %v4310_v26  ;;  %2178 = vrot.lane.b32.xlu1 %v3787_v42, %s3708_s30  ;;  %v3552_v63 = vpop.eup %3551 }
 0x4ce   : > { %v1385_v51 = vpack.c.bf16 %v1369_v6, %v1369_v6  ;;  %v1370_v26 = vmul.f32 %v3552_v63, %v4314_v0  ;;  %v1337_v0 = vpop.xlane.xlu2 %1336 }
 0x4cf   : > { %v1383_v18 = vpack.c.bf16 %v1367_v59, %v1367_v59 }
 0x4d0   : > { %v1495_v30 = vunpack.c.l.b16 %v1385_v51  ;;  %v1386_v19 = vpack.c.bf16 %v1370_v26, %v1370_v26 }
 0x4d1   : > { %v1470_v4 = vunpack.c.l.b16 %v1383_v18 }
 0x4d2   : > { %v1496_v50 = vpack.c.b16 %v1495_v30, %v1494_v3  ;;  %v1519_v20 = vunpack.c.l.b16 %v1386_v19 }
 0x4d3   : > { %v1471_v53 = vpack.c.b16 %v1470_v4, %v1469_v49  ;;  %v1331_v60 = vpop.xlane.xlu0 %1330 }
 0x4d4   : > { %3227 = vmatmul.msk.bf16.vlgmr.msra.gmra.mxu0 %vm615_vm2, %v1496_v50  ;;  %3553 = vrcp.f32 %v1331_v60 }
 0x4d5   : > { %3226 = vmatmul.msk.bf16.vlgmr.msrb.gmra.mxu3 %vm615_vm2, %v1471_v53  ;;  %1705 = vmatpush.bf16.xpose.msra.mxu0 %v1696_v29  ;;  %3555 = vrcp.f32 %v1337_v0 }
 0x4d6   : > { %3557 = vrcp.f32 %v1340_v47 }
 0x4da   : > { %v3554_v16 = vpop.eup %3553 }
 0x4db   : > { %v1371_v48 = vmul.f32 %v3554_v16, %v4331_v11  ;;  %v1665_v11 = vpop.permute.xlu2 %1664  ;;  %v3556_v57 = vpop.eup %3555 }
 0x4dc   : > { %v1667_v33 = vpop.permute.xlu1 %1666  ;;  %v1373_v62 = vmul.f32 %v3556_v57, %v4325_v36  ;;  %v3558_v6 = vpop.eup %3557  ;;  %v4441_v57 = vld [vmem:[%s5192_s5 + $0x20] sm:$0xff] }
 0x4dd   : > { %v1387_v21 = vpack.c.bf16 %v1371_v48, %v1371_v48  ;;  %v1672_v9 = vsel %vm405_vm1, %v1667_v33, 0  ;;  %v1374_v59 = vmul.f32 %v3558_v6, %v4323_v41 }
 0x4de   : > { %1681 = vmatpush.bf16.xpose.msrb.mxu3 %v1672_v9  ;;  %v1389_v43 = vpack.c.bf16 %v1373_v62, %v1373_v62 }
 0x4df   : > { %v1520_v22 = vunpack.c.l.b16 %v1387_v21  ;;  %v1390_v30 = vpack.c.bf16 %v1374_v59, %v1374_v59 }
 0x4e0   : > { %v1545_v18 = vunpack.c.l.b16 %v1389_v43 }
 0x4e1   : > { %v1521_v37 = vpack.c.b16 %v1520_v22, %v1519_v20  ;;  %v1569_v53 = vunpack.c.l.b16 %v1390_v30 }
 0x4e3   : > { %3228 = vmatmul.msk.bf16.vlgmr.msra.gmra.mxu1 %vm615_vm2, %v1521_v37 }
 0x4e4   : > { %3231 = vmatmul.msk.bf16.vlgmr.msrb.gmra.mxu0 %vm405_vm1, %v4130_v52 }
 0x4e6   : > { %v1739_v13 = vpop.permute.xlu0 %1738 }
 0x4e7   : > { %v1744_v36 = vsel %vm405_vm1, %v1739_v13, 0 }
 0x4ee   : > { %v1737_v3 = vpop.permute.xlu0 %1736 }
 0x4f3   : > { %3232 = vmatmul.msk.bf16.vlgmr.msrb.gmra.mxu1 %vm405_vm1, %v4240_v35 }
 0x4f4   : > { %3235 = vmatmul.msk.bf16.vlgmr.msra.gmra.mxu0 %vm405_vm1, %v4266_v34 }
 0x4f6   : > { %v1761_v29 = vpop.permute.xlu0 %1760 }
 0x4fe   : > { %v2032_v16 = vpop.permute.xlu0 %2031 }
 0x507   : > { %v1334_v56 = vpop.xlane.xlu1 %1333 }
 0x508   : > { %3559 = vrcp.f32 %v1334_v56  ;;  %v4424_v20 = vpop.f32.mrf.mxu0 }
 0x50c   : > { %v1343_v8 = vpop.xlane.xlu2 %1342 }
 0x50d   : > { %3561 = vrcp.f32 %v1343_v8 }
 0x50e   : > { %v3560_v52 = vpop.eup %3559 }
 0x50f   : > { %v1372_v35 = vmul.f32 %v3560_v52, %v4357_v44 }
 0x510   : > { %v4428_v22 = vpop.f32.mrf.mxu1 }
 0x511   : > { %v1388_v34 = vpack.c.bf16 %v1372_v35, %v1372_v35  ;;  %v4457_v35 = vld [vmem:[%s5192_s5 + $0x28] sm:$0xff] }
 0x513   : > { %v3562_v51 = vpop.eup %3561  ;;  %v1544_v47 = vunpack.c.l.b16 %v1388_v34 }
 0x514   : > { %v1375_v49 = vmul.f32 %v3562_v51, %v4364_v45  ;;  %v1763_v44 = vpop.permute.xlu2 %1762 }
 0x515   : > { %v1546_v4 = vpack.c.b16 %v1545_v18, %v1544_v47  ;;  %v1768_v41 = vsel %vm405_vm1, %v1763_v44, 0 }
 0x516   : > { %v1391_v50 = vpack.c.bf16 %v1375_v49, %v1375_v49 }
 0x517   : > { %3229 = vmatmul.msk.bf16.vlgmr.msra.gmra.mxu2 %vm615_vm2, %v1546_v4 }
 0x518   : > { %v1570_v60 = vunpack.c.l.b16 %v1391_v50  ;;  %1753 = vmatpush.bf16.xpose.msra.mxu2 %v1744_v36  ;;  %v4432_v0 = vpop.f32.mrf.mxu1 }
 0x51a   : > { %v1571_v63 = vpack.c.b16 %v1570_v60, %v1569_v53 }
 0x51c   : > { %3230 = vmatmul.msk.bf16.vlgmr.msra.gmra.mxu3 %vm615_vm2, %v1571_v63  ;;  %v2082_v48 = vpop.permute.xlu2 %2081 }
 0x51d   : > { %1777 = vmatpush.bf16.xpose.msra.mxu3 %v1768_v41 }
 0x51f   : > { %v1715_v26 = vpop.permute.xlu1 %1714 }
 0x520   : > { %v1720_v45 = vsel %vm405_vm1, %v1715_v26, 0 }
 0x521   : > { %1729 = vmatpush.bf16.xpose.msra.mxu1 %v1720_v45 }
 0x524   : > { %v2107_v9 = vpop.permute.xlu2 %2106 }
 0x527   : > { %v1713_v19 = vpop.permute.xlu1 %1712  ;;  %3233 = vmatmul.msk.bf16.vlgmr.msrb.gmra.mxu2 %vm405_vm1, %v4264_v5  ;;  %v4426_v5 = vpop.f32.mrf.mxu0 }
 0x528   : > { %2044 = vmatpush.bf16.msrb.mxu2 %v2032_v16  ;;  %3236 = vmatmul.msk.bf16.vlgmr.msra.gmra.mxu1 %vm405_vm1, %v1713_v19 }
 0x52c   : > { %3234 = vmatmul.msk.bf16.vlgmr.msrb.gmra.mxu3 %vm405_vm1, %v1665_v11 }
 0x52f   : > { %v1982_v33 = vpop.permute.xlu1 %1981 }
 0x530   : > { %1994 = vmatpush.bf16.msrb.mxu0 %v1982_v33 }
 0x534   : > { %2094 = vmatpush.bf16.msra.mxu0 %v2082_v48 }
 0x537   : > { %v2007_v21 = vpop.permute.xlu1 %2006  ;;  %3237 = vmatmul.msk.bf16.vlgmr.msra.gmra.mxu2 %vm405_vm1, %v1737_v3 }
 0x538   : > { %2019 = vmatpush.bf16.msrb.mxu1 %v2007_v21 }
 0x53c   : > { %2119 = vmatpush.bf16.msra.mxu1 %v2107_v9  ;;  %3238 = vmatmul.msk.bf16.vlgmr.msra.gmra.mxu3 %vm405_vm1, %v1761_v29 }
 0x54e   : > { %v4483_v63 = vpop.f32.mrf.mxu2 }
 0x551   : > { %v4430_v37 = vpop.f32.mrf.mxu0 }
 0x556   : > { %v4485_v41 = vpop.f32.mrf.mxu2 }
 0x558   : > { %v4434_v11 = vpop.f32.mrf.mxu3 }
 0x559   : > { %v4436_v56 = vpop.f32.mrf.mxu0 }
 0x560   : > { %v4443_v13 = vpop.f32.mrf.mxu3  ;;  %v4445_v62 = vpop.f32.mrf.mxu1 }
 0x561   : > { %v1611_v6 = vpop.f32.mrf.mxu0 }
 0x562   : > { %v4450_v52 = vadd.f32 %v1611_v6, %v4441_v57 }
 0x564   : > { %v1784_v43 = vsel %vm615_vm2, %v4450_v52, -inf }
 0x565   : > { %1785 = vmax.xlane.f32.xlu1 %v1784_v43 }
 0x568   : > { %v4459_v59 = vpop.f32.mrf.mxu1 }
 0x569   : > { %v1613_v51 = vpop.f32.mrf.mxu0 }
 0x56a   : > { %v4464_v18 = vadd.f32 %v1613_v51, %v4457_v35 }
 0x56c   : > { %v1787_v3 = vsel %vm615_vm2, %v4464_v18, -inf }
 0x56d   : > { %1788 = vmax.xlane.f32.xlu2 %v1787_v3 }
 0x570   : > { %v1635_v47 = vpop.f32.mrf.mxu1 }
 0x571   : > { %v4469_v30 = vadd.f32 %v1635_v47, %v4441_v57  ;;  %v1707_v49 = vpop.f32.mrf.mxu0 }
 0x572   : > { %v4472_v4 = vadd.f32 %v1707_v49, %v4441_v57 }
 0x573   : > { %v1790_v50 = vsel %vm615_vm2, %v4469_v30, -inf }
 0x574   : > { %v1808_v36 = vsel %vm615_vm2, %v4472_v4, -inf  ;;  %1791 = vmax.xlane.f32.xlu0 %v1790_v50 }
 0x575   : > { %1809 = vmax.xlane.f32.xlu2 %v1808_v36 }
 0x578   : > { %v1637_v9 = vpop.f32.mrf.mxu1 }
 0x579   : > { %v1709_v53 = vpop.f32.mrf.mxu0  ;;  %v4508_v3 = vadd.f32 %v1637_v9, %v4457_v35 }
 0x57a   : > { %v4479_v60 = vadd.f32 %v1709_v53, %v4457_v35 }
 0x57b   : > { %v1793_v36 = vsel %vm615_vm2, %v4508_v3, -inf }
 0x57c   : > { %v1811_v44 = vsel %vm615_vm2, %v4479_v60, -inf }
 0x57d   : > { %1812 = vmax.xlane.f32.xlu0 %v1811_v44 }
 0x59a   : > { %v4487_v29 = vpop.f32.mrf.mxu2 }
 0x59f   : > { %v4489_v26 = vpop.f32.mrf.mxu3 }
 0x5a2   : > { %v4491_v45 = vpop.f32.mrf.mxu2 }
 0x5a5   : > { %v1731_v50 = vpop.f32.mrf.mxu1 }
 0x5a7   : > { %v4495_v19 = vpop.f32.mrf.mxu3 }
 0x5aa   : > { %v1659_v33 = vpop.f32.mrf.mxu2 }
 0x5ab   : > { %v4500_v21 = vadd.f32 %v1659_v33, %v4441_v57 }
 0x5ad   : > { %v1796_v6 = vsel %vm615_vm2, %v4500_v21, -inf }
 0x5ae   : > { %1797 = vmax.xlane.f32.xlu1 %v1796_v6 }
 0x5af   : > { %v1683_v43 = vpop.f32.mrf.mxu3 }
 0x5b0   : > { %v4505_v51 = vadd.f32 %v1683_v43, %v4441_v57 }
 0x5b2   : > { %v1661_v47 = vpop.f32.mrf.mxu2  ;;  %v1802_v49 = vsel %vm615_vm2, %v4505_v51, -inf }
 0x5b3   : > { %1803 = vmax.xlane.f32.xlu2 %v1802_v49  ;;  %v4515_v53 = vadd.f32 %v1661_v47, %v4457_v35 }
 0x5b5   : > { %v1799_v9 = vsel %vm615_vm2, %v4515_v53, -inf }
 0x5b6   : > { %1794 = vmax.xlane.f32.xlu1 %v1793_v36  ;;  %v4530_v36 = vadd.f32 %v1731_v50, %v4441_v57 }
 0x5b7   : > { %v1685_v44 = vpop.f32.mrf.mxu3 }
 0x5b8   : > { %v4518_v33 = vadd.f32 %v1685_v44, %v4457_v35  ;;  %v1733_v44 = vpop.f32.mrf.mxu1  ;;  %v1814_v8 = vsel %vm615_vm2, %v4530_v36, -inf }
 0x5b9   : > { %v4533_v16 = vadd.f32 %v1733_v44, %v4457_v35 }
 0x5ba   : > { %v1755_v6 = vpop.f32.mrf.mxu2  ;;  %v1805_v43 = vsel %vm615_vm2, %v4518_v33, -inf }
 0x5bb   : > { %v4525_v49 = vadd.f32 %v1755_v6, %v4441_v57  ;;  %1800 = vmax.xlane.f32.xlu2 %v1799_v9  ;;  %1806 = vmax.xlane.f32.xlu0 %v1805_v43  ;;  %v1817_v50 = vsel %vm615_vm2, %v4533_v16, -inf }
 0x5bd   : > { %v1820_v47 = vsel %vm615_vm2, %v4525_v49, -inf }
 0x5be   : > { %1821 = vmax.xlane.f32.xlu1 %v1820_v47 }
 0x5bf   : > { %v1779_v48 = vpop.f32.mrf.mxu3 }
 0x5c0   : > { %v4545_v43 = vadd.f32 %v1779_v48, %v4441_v57 }
 0x5c2   : > { %v1757_v34 = vpop.f32.mrf.mxu2 }
 0x5c3   : > { %v4538_v6 = vadd.f32 %v1757_v34, %v4457_v35  ;;  %1815 = vmax.xlane.f32.xlu0 %v1814_v8  ;;  %v1826_v34 = vsel %vm615_vm2, %v4545_v43, -inf }
 0x5c5   : > { %v1823_v9 = vsel %vm615_vm2, %v4538_v6, -inf }
 0x5c6   : > { %1824 = vmax.xlane.f32.xlu2 %v1823_v9  ;;  %1818 = vmax.xlane.f32.xlu1 %v1817_v50 }
 0x5c7   : > { %v1781_v47 = vpop.f32.mrf.mxu3 }
 0x5c8   : > { %v4548_v44 = vadd.f32 %v1781_v47, %v4457_v35 }
 0x5ca   : > { %v1829_v8 = vsel %vm615_vm2, %v4548_v44, -inf }
 0x5cb   : > { %1827 = vmax.xlane.f32.xlu0 %v1826_v34 }
 0x5ce   : > { %1830 = vmax.xlane.f32.xlu1 %v1829_v8 }
 0x5de   : > { %2131 = vrot.lane.b32.xlu2 %v3804_v10, %s3706_s27 }
 0x5e0   : > { %v1789_v23 = vpop.xlane.xlu2 %1788 }
 0x5e1   : > { %v1833_v57 = vsub.f32 %v4464_v18, %v1789_v23  ;;  %v4571_v23 = vpop.permute.xlu1 %2178  ;;  %v4573_v18 = vpop.permute.xlu0 %2176 }
 0x5e3   : > { %v1850_v48 = vmul.f32 1.442695, %v1833_v57 }
 0x5e5   : > { %3563 = vpow2.f32 %v1850_v48 }
 0x5e6   : > { %2202 = vrot.lane.b32.xlu2 %v3806_v12, %s3708_s30 }
 0x5e7   : > { %2056 = vrot.lane.b32.xlu1 %v3819_v32, %s3706_s27 }
 0x5e8   : > { %v1810_v48 = vpop.xlane.xlu2 %1809 }
 0x5e9   : > { %v1786_v50 = vpop.xlane.xlu1 %1785  ;;  %v1792_v8 = vpop.xlane.xlu0 %1791  ;;  %v1840_v24 = vsub.f32 %v4472_v4, %v1810_v48 }
 0x5ea   : > { %v1832_v47 = vsub.f32 %v4450_v52, %v1786_v50  ;;  %v1834_v57 = vsub.f32 %v4469_v30, %v1792_v8 }
 0x5eb   : > { %v4561_v35 = vpop.eup %3563  ;;  %v1864_v54 = vmul.f32 1.442695, %v1840_v24 }
 0x5ec   : > { %v1883_v9 = vsel %vm615_vm2, %v4561_v35, 0.0  ;;  %v1848_v34 = vmul.f32 1.442695, %v1832_v47 }
 0x5ed   : > { %1884 = vadd.xlane.f32.xlu0 %v1883_v9  ;;  %v1852_v9 = vmul.f32 1.442695, %v1834_v57 }
 0x5ee   : > { %2226 = vrot.lane.b32.xlu2 %v3794_v55, %s3708_s30  ;;  %3565 = vpow2.f32 %v1848_v34 }
 0x5ef   : > { %3567 = vpow2.f32 %v1852_v9 }
 0x5f0   : > { %3569 = vpow2.f32 %v1864_v54 }
 0x5f1   : > { %v1813_v52 = vpop.xlane.xlu0 %1812 }
 0x5f2   : > { %v1841_v30 = vsub.f32 %v4479_v60, %v1813_v52 }
 0x5f4   : > { %v4577_v25 = vpop.eup %3565  ;;  %v1866_v48 = vmul.f32 1.442695, %v1841_v30 }
 0x5f5   : > { %v1880_v2 = vsel %vm615_vm2, %v4577_v25, 0.0  ;;  %v4583_v34 = vpop.eup %3567 }
 0x5f6   : > { %2200 = vrot.lane.b32.xlu2 %v3806_v12, %s3707_s29  ;;  %v1886_v4 = vsel %vm615_vm2, %v4583_v34, 0.0 }
 0x5fe   : > { %2156 = vrot.lane.b32.xlu2 %v3826_v27, %s3706_s27 }
 0x621   : > { %v1798_v39 = vpop.xlane.xlu1 %1797 }
 0x622   : > { %v1836_v57 = vsub.f32 %v4500_v21, %v1798_v39 }
 0x626   : > { %v1804_v17 = vpop.xlane.xlu2 %1803 }
 0x627   : > { %1881 = vadd.xlane.f32.xlu2 %v1880_v2  ;;  %v1856_v2 = vmul.f32 1.442695, %v1836_v57  ;;  %v1838_v39 = vsub.f32 %v4505_v51, %v1804_v17 }
 0x629   : > { %v1795_v50 = vpop.xlane.xlu1 %1794  ;;  %v1860_v30 = vmul.f32 1.442695, %v1838_v39 }
 0x62a   : > { %v1835_v47 = vsub.f32 %v4508_v3, %v1795_v50  ;;  %v4590_v3 = vpop.eup %3569 }
 0x62c   : > { %v1854_v8 = vmul.f32 1.442695, %v1835_v47 }
 0x62e   : > { %3571 = vpow2.f32 %v1854_v8  ;;  %v1801_v24 = vpop.xlane.xlu2 %1800  ;;  %v1807_v21 = vpop.xlane.xlu0 %1806 }
 0x62f   : > { %1887 = vadd.xlane.f32.xlu2 %v1886_v4  ;;  %3573 = vpow2.f32 %v1866_v48  ;;  %v1837_v54 = vsub.f32 %v4515_v53, %v1801_v24  ;;  %v1839_v51 = vsub.f32 %v4518_v33, %v1807_v21 }
 0x630   : > { %3575 = vpow2.f32 %v1856_v2 }
 0x631   : > { %v1822_v9 = vpop.xlane.xlu1 %1821  ;;  %v1858_v47 = vmul.f32 1.442695, %v1837_v54 }
 0x632   : > { %v1844_v61 = vsub.f32 %v4525_v49, %v1822_v9  ;;  %v1904_v49 = vsel %vm615_vm2, %v4590_v3, 0.0 }
 0x634   : > { %v4592_v50 = vpop.eup %3571  ;;  %v1872_v60 = vmul.f32 1.442695, %v1844_v61 }
 0x635   : > { %v1889_v52 = vsel %vm615_vm2, %v4592_v50, 0.0  ;;  %v4600_v4 = vpop.eup %3573 }
 0x636   : > { %3577 = vpow2.f32 %v1872_v60  ;;  %1890 = vadd.xlane.f32.xlu0 %v1889_v52  ;;  %v4603_v53 = vpop.eup %3575  ;;  %v1907_v9 = vsel %vm615_vm2, %v4600_v4, 0.0  ;;  %v1816_v54 = vpop.xlane.xlu0 %1815  ;;  %v1862_v60 = vmul.f32 1.442695, %v1839_v51 }
 0x637   : > { %1905 = vadd.xlane.f32.xlu2 %v1904_v49  ;;  %3579 = vpow2.f32 %v1858_v47  ;;  %v1842_v49 = vsub.f32 %v4530_v36, %v1816_v54 }
 0x638   : > { %3581 = vpow2.f32 %v1860_v30 }
 0x639   : > { %v1825_v8 = vpop.xlane.xlu2 %1824  ;;  %v1819_v57 = vpop.xlane.xlu1 %1818  ;;  %v1868_v51 = vmul.f32 1.442695, %v1842_v49 }
 0x63a   : > { %v1843_v61 = vsub.f32 %v4533_v16, %v1819_v57  ;;  %v1845_v2 = vsub.f32 %v4538_v6, %v1825_v8  ;;  %v1892_v16 = vsel %vm615_vm2, %v4603_v53, 0.0 }
 0x63c   : > { %v4605_v17 = vpop.eup %3577  ;;  %v1870_v48 = vmul.f32 1.442695, %v1843_v61  ;;  %v1874_v33 = vmul.f32 1.442695, %v1845_v2 }
 0x63d   : > { %v1916_v24 = vsel %vm615_vm2, %v4605_v17, 0.0  ;;  %v4615_v21 = vpop.eup %3579 }
 0x63e   : > { %1917 = vadd.xlane.f32.xlu1 %v1916_v24  ;;  %1908 = vadd.xlane.f32.xlu0 %v1907_v9  ;;  %3583 = vpow2.f32 %v1870_v48  ;;  %v4617_v52 = vpop.eup %3581  ;;  %v1895_v8 = vsel %vm615_vm2, %v4615_v21, 0.0  ;;  %v1828_v48 = vpop.xlane.xlu0 %1827 }
 0x63f   : > { %1893 = vadd.xlane.f32.xlu2 %v1892_v16  ;;  %3585 = vpow2.f32 %v1862_v60  ;;  %v1898_v61 = vsel %vm615_vm2, %v4617_v52, 0.0  ;;  %v1846_v9 = vsub.f32 %v4545_v43, %v1828_v48 }
 0x640   : > { %3587 = vpow2.f32 %v1874_v33 }
 0x641   : > { %v2132_v39 = vpop.permute.xlu2 %2131  ;;  %v1831_v6 = vpop.xlane.xlu1 %1830  ;;  %3589 = vpow2.f32 %v1868_v51  ;;  %v1876_v60 = vmul.f32 1.442695, %v1846_v9 }
 0x642   : > { %2144 = vmatpush.bf16.msra.mxu2 %v2132_v39  ;;  %v1847_v30 = vsub.f32 %v4548_v44, %v1831_v6 }
 0x644   : > { %v4620_v47 = vpop.eup %3583  ;;  %v1878_v36 = vmul.f32 1.442695, %v1847_v30 }
 0x645   : > { %v1913_v57 = vsel %vm615_vm2, %v4620_v47, 0.0  ;;  %v4631_v24 = vpop.eup %3585 }
 0x646   : > { %1896 = vadd.xlane.f32.xlu0 %v1895_v8  ;;  %1914 = vadd.xlane.f32.xlu1 %v1913_v57  ;;  %v4633_v44 = vpop.eup %3587  ;;  %3591 = vpow2.f32 %v1878_v36  ;;  %v1901_v16 = vsel %vm615_vm2, %v4631_v24, 0.0 }
 0x647   : > { %1899 = vadd.xlane.f32.xlu2 %v1898_v61  ;;  %v1919_v54 = vsel %vm615_vm2, %v4633_v44, 0.0  ;;  %v4642_v39 = vpop.eup %3589  ;;  %3593 = vpow2.f32 %v1876_v60 }
 0x648   : > { %v1910_v43 = vsel %vm615_vm2, %v4642_v39, 0.0 }
 0x649   : > { %v4629_v2 = vpop.permute.xlu2 %2202 }
 0x64c   : > { %v4644_v6 = vpop.eup %3591 }
 0x64d   : > { %v1925_v49 = vsel %vm615_vm2, %v4644_v6, 0.0  ;;  %v4652_v57 = vpop.eup %3593 }
 0x64e   : > { %1902 = vadd.xlane.f32.xlu0 %v1901_v16  ;;  %1920 = vadd.xlane.f32.xlu1 %v1919_v54  ;;  %v1922_v61 = vsel %vm615_vm2, %v4652_v57, 0.0 }
 0x651   : > { %v4640_v33 = vpop.permute.xlu2 %2226 }
 0x656   : > { %1911 = vadd.xlane.f32.xlu0 %v1910_v43  ;;  %1926 = vadd.xlane.f32.xlu1 %v1925_v49 }
 0x659   : > { %v4650_v30 = vpop.permute.xlu2 %2200  ;;  %v2057_v8 = vpop.permute.xlu1 %2056 }
 0x65a   : > { %2069 = vmatpush.bf16.msrb.mxu3 %v2057_v8 }
 0x65e   : > { %1923 = vadd.xlane.f32.xlu0 %v1922_v61 }
 0x65f   : > { %2224 = vrot.lane.b32.xlu2 %v3794_v55, %s3707_s29 }
 0x660   : > { %v1885_v48 = vpop.xlane.xlu0 %1884 }
 0x661   : > { %v2157_v51 = vpop.permute.xlu2 %2156  ;;  %3595 = vrcp.f32 %v1885_v48 }
 0x662   : > { %2169 = vmatpush.bf16.msra.mxu3 %v2157_v51 }
 0x667   : > { %2274 = vrot.lane.b32.xlu2 %v3815_v28, %s3708_s30  ;;  %v3596_v9 = vpop.eup %3595 }
 0x668   : > { %v1945_v16 = vmul.f32 %v3596_v9, %v4561_v35 }
 0x66a   : > { %v1961_v60 = vpack.c.bf16 %v1945_v16, %v1945_v16 }
 0x66c   : > { %v1979_v61 = vunpack.c.l.b16 %v1961_v60 }
 0x66f   : > { %2272 = vrot.lane.b32.xlu2 %v3815_v28, %s3707_s29  ;;  %2248 = vrot.lane.b32.xlu1 %v3819_v32, %s3707_s29 }
 0x672   : > { %2250 = vrot.lane.b32.xlu0 %v3819_v32, %s3708_s30 }
 0x677   : > { %2298 = vrot.lane.b32.xlu2 %v3817_v31, %s3708_s30  ;;  %2346 = vrot.lane.b32.xlu1 %v3826_v27, %s3708_s30 }
 0x67a   : > { %2322 = vrot.lane.b32.xlu0 %v3804_v10, %s3708_s30  ;;  %s5107_s30 = scalar_lea.vmem %s5193_s6, %s3180_s28 }
 0x67f   : > { %2296 = vrot.lane.b32.xlu2 %v3817_v31, %s3707_s29 }
 0x682   : > { %2320 = vrot.lane.b32.xlu0 %v3804_v10, %s3707_s29 }
 0x687   : > { %2344 = vrot.lane.b32.xlu2 %v3826_v27, %s3707_s29 }
 0x68a   : > { %2565 = vrot.lane.b32.xlu0 %v3787_v42, %s3709_s11  ;;  %v2184_v42 = vsel %vm405_vm1, %v4571_v23, 0 }
 0x69a   : > { %v1882_v36 = vpop.xlane.xlu2 %1881 }
 0x69b   : > { %3597 = vrcp.f32 %v1882_v36 }
 0x6a1   : > { %v3598_v54 = vpop.eup %3597 }
 0x6a2   : > { %v1944_v43 = vmul.f32 %v3598_v54, %v4577_v25  ;;  %v1888_v49 = vpop.xlane.xlu2 %1887 }
 0x6a3   : > { %3599 = vrcp.f32 %v1888_v49 }
 0x6a4   : > { %v1960_v8 = vpack.c.bf16 %v1944_v43, %v1944_v43 }
 0x6a6   : > { %v1978_v51 = vunpack.c.l.b16 %v1960_v8 }
 0x6a8   : > { %v1980_v15 = vpack.c.b16 %v1979_v61, %v1978_v51 }
 0x6a9   : > { %v1891_v40 = vpop.xlane.xlu0 %1890  ;;  %v3600_v1 = vpop.eup %3599 }
 0x6aa   : > { %3601 = vrcp.f32 %v1891_v40  ;;  %v1906_v48 = vpop.xlane.xlu2 %1905  ;;  %3239 = vmatmul.msk.bf16.vlgmr.msrb.gmra.mxu0 %vm615_vm2, %v1980_v15  ;;  %v1946_v35 = vmul.f32 %v3600_v1, %v4583_v34  ;;  %v2208_v1 = vsel %vm405_vm1, %v4629_v2, 0 }
 0x6ab   : > { %2193 = vmatpush.bf16.xpose.msrb.mxu0 %v2184_v42  ;;  %3603 = vrcp.f32 %v1906_v48 }
 0x6ac   : > { %v1962_v36 = vpack.c.bf16 %v1946_v35, %v1946_v35 }
 0x6ae   : > { %v2003_v23 = vunpack.c.l.b16 %v1962_v36 }
 0x6b0   : > { %v3602_v25 = vpop.eup %3601 }
 0x6b1   : > { %v1947_v9 = vmul.f32 %v3602_v25, %v4592_v50  ;;  %v1918_v16 = vpop.xlane.xlu1 %1917  ;;  %v1909_v54 = vpop.xlane.xlu0 %1908 }
 0x6b2   : > { %v1894_v60 = vpop.xlane.xlu2 %1893  ;;  %v3604_v43 = vpop.eup %3603  ;;  %3605 = vrcp.f32 %v1909_v54 }
 0x6b3   : > { %v1963_v49 = vpack.c.bf16 %v1947_v9, %v1947_v9  ;;  %3607 = vrcp.f32 %v1894_v60  ;;  %v1952_v8 = vmul.f32 %v3604_v43, %v4590_v3 }
 0x6b5   : > { %v2004_v40 = vunpack.c.l.b16 %v1963_v49  ;;  %v1968_v51 = vpack.c.bf16 %v1952_v8, %v1952_v8 }
 0x6b7   : > { %v2005_v15 = vpack.c.b16 %v2004_v40, %v2003_v23  ;;  %v2078_v36 = vunpack.c.l.b16 %v1968_v51 }
 0x6b8   : > { %v3606_v61 = vpop.eup %3605 }
 0x6b9   : > { %3240 = vmatmul.msk.bf16.vlgmr.msrb.gmra.mxu1 %vm615_vm2, %v2005_v15  ;;  %v1897_v34 = vpop.xlane.xlu0 %1896  ;;  %v3608_v50 = vpop.eup %3607  ;;  %v1953_v42 = vmul.f32 %v3606_v61, %v4600_v4 }
 0x6ba   : > { %v1915_v48 = vpop.xlane.xlu1 %1914  ;;  %2217 = vmatpush.bf16.xpose.msrb.mxu1 %v2208_v1  ;;  %3609 = vrcp.f32 %v1897_v34  ;;  %v1900_v35 = vpop.xlane.xlu2 %1899  ;;  %v1948_v3 = vmul.f32 %v3608_v50, %v4603_v53 }
 0x6bb   : > { %v1969_v25 = vpack.c.bf16 %v1953_v42, %v1953_v42  ;;  %3611 = vrcp.f32 %v1900_v35 }
 0x6bc   : > { %3613 = vrcp.f32 %v1918_v16  ;;  %v1964_v2 = vpack.c.bf16 %v1948_v3, %v1948_v3 }
 0x6bd   : > { %v2079_v9 = vunpack.c.l.b16 %v1969_v25 }
 0x6be   : > { %v2028_v53 = vunpack.c.l.b16 %v1964_v2 }
 0x6bf   : > { %v2080_v60 = vpack.c.b16 %v2079_v9, %v2078_v36 }
 0x6c0   : > { %v3610_v54 = vpop.eup %3609 }
 0x6c1   : > { %v1949_v43 = vmul.f32 %v3610_v54, %v4615_v21  ;;  %v1903_v49 = vpop.xlane.xlu0 %1902  ;;  %v3612_v23 = vpop.eup %3611  ;;  %3243 = vmatmul.msk.bf16.vlgmr.msra.gmra.mxu0 %vm615_vm2, %v2080_v60  ;;  %v2232_v21 = vsel %vm405_vm1, %v4640_v33, 0 }
 0x6c2   : > { %v1921_v40 = vpop.xlane.xlu1 %1920  ;;  %3615 = vrcp.f32 %v1903_v49  ;;  %v4695_v4 = vpop.permute.xlu2 %2224  ;;  %v1950_v61 = vmul.f32 %v3612_v23, %v4617_v52 }
 0x6c3   : > { %v1965_v8 = vpack.c.bf16 %v1949_v43, %v1949_v43  ;;  %3617 = vrcp.f32 %v1921_v40  ;;  %v3614_v1 = vpop.eup %3613 }
 0x6c4   : > { %3619 = vrcp.f32 %v1915_v48  ;;  %v1966_v51 = vpack.c.bf16 %v1950_v61, %v1950_v61  ;;  %v1956_v33 = vmul.f32 %v3614_v1, %v4605_v17 }
 0x6c5   : > { %v2029_v15 = vunpack.c.l.b16 %v1965_v8 }
 0x6c6   : > { %v1972_v23 = vpack.c.bf16 %v1956_v33, %v1956_v33 }
 0x6c7   : > { %v2030_v16 = vpack.c.b16 %v2029_v15, %v2028_v53 }
 0x6c8   : > { %v3616_v34 = vpop.eup %3615  ;;  %v2128_v61 = vunpack.c.l.b16 %v1972_v23 }
 0x6c9   : > { %v3618_v50 = vpop.eup %3617  ;;  %v1951_v42 = vmul.f32 %v3616_v34, %v4631_v24  ;;  %3241 = vmatmul.msk.bf16.vlgmr.msrb.gmra.mxu2 %vm615_vm2, %v2030_v16  ;;  %v1912_v35 = vpop.xlane.xlu0 %1911  ;;  %v2053_v24 = vunpack.c.l.b16 %v1966_v51 }
 0x6ca   : > { %v3620_v25 = vpop.eup %3619  ;;  %v1927_v3 = vpop.xlane.xlu1 %1926  ;;  %2241 = vmatpush.bf16.xpose.msrb.mxu2 %v2232_v21  ;;  %3621 = vrcp.f32 %v1912_v35  ;;  %v1957_v52 = vmul.f32 %v3618_v50, %v4633_v44 }
 0x6cb   : > { %v2275_v48 = vpop.permute.xlu2 %2274  ;;  %v1967_v36 = vpack.c.bf16 %v1951_v42, %v1951_v42  ;;  %3623 = vrcp.f32 %v1927_v3  ;;  %v1955_v54 = vmul.f32 %v3620_v25, %v4620_v47 }
 0x6cc   : > { %v2280_v9 = vsel %vm405_vm1, %v2275_v48, 0  ;;  %v1973_v2 = vpack.c.bf16 %v1957_v52, %v1957_v52 }
 0x6cd   : > { %2289 = vmatpush.bf16.xpose.msra.mxu0 %v2280_v9  ;;  %v2054_v60 = vunpack.c.l.b16 %v1967_v36  ;;  %v1971_v40 = vpack.c.bf16 %v1955_v54, %v1955_v54 }
 0x6ce   : > { %v2129_v15 = vunpack.c.l.b16 %v1973_v2 }
 0x6cf   : > { %v2055_v43 = vpack.c.b16 %v2054_v60, %v2053_v24  ;;  %v2104_v1 = vunpack.c.l.b16 %v1971_v40 }
 0x6d0   : > { %v3622_v49 = vpop.eup %3621  ;;  %v2130_v50 = vpack.c.b16 %v2129_v15, %v2128_v61  ;;  %v4747_v15 = vld [vmem:[%s5192_s5 + $0x30] sm:$0xff] }
 0x6d1   : > { %v1954_v8 = vmul.f32 %v3622_v49, %v4642_v39  ;;  %3242 = vmatmul.msk.bf16.vlgmr.msrb.gmra.mxu3 %vm615_vm2, %v2055_v43  ;;  %v1924_v44 = vpop.xlane.xlu0 %1923  ;;  %v3624_v53 = vpop.eup %3623  ;;  %3247 = vmatmul.msk.bf16.vlgmr.msrb.gmra.mxu0 %vm405_vm1, %v4573_v18 }
 0x6d2   : > { %3625 = vrcp.f32 %v1924_v44  ;;  %v1959_v16 = vmul.f32 %v3624_v53, %v4644_v6 }
 0x6d3   : > { %v2273_v17 = vpop.permute.xlu2 %2272  ;;  %v1970_v47 = vpack.c.bf16 %v1954_v8, %v1954_v8 }
 0x6d4   : > { %v1975_v39 = vpack.c.bf16 %v1959_v16, %v1959_v16 }
 0x6d5   : > { %v2103_v34 = vunpack.c.l.b16 %v1970_v47 }
 0x6d6   : > { %v2154_v3 = vunpack.c.l.b16 %v1975_v39 }
 0x6d7   : > { %v2105_v21 = vpack.c.b16 %v2104_v1, %v2103_v34 }
 0x6d8   : > { %v3626_v51 = vpop.eup %3625 }
 0x6d9   : > { %v1958_v42 = vmul.f32 %v3626_v51, %v4652_v57  ;;  %3244 = vmatmul.msk.bf16.vlgmr.msra.gmra.mxu1 %vm615_vm2, %v2105_v21  ;;  %3245 = vmatmul.msk.bf16.vlgmr.msra.gmra.mxu2 %vm615_vm2, %v2130_v50  ;;  %v4763_v21 = vld [vmem:[%s5192_s5 + $0x38] sm:$0xff] }
 0x6db   : > { %v2299_v18 = vpop.permute.xlu2 %2298  ;;  %v1974_v35 = vpack.c.bf16 %v1958_v42, %v1958_v42 }
 0x6dc   : > { %v2304_v25 = vsel %vm405_vm1, %v2299_v18, 0 }
 0x6dd   : > { %2313 = vmatpush.bf16.xpose.msra.mxu1 %v2304_v25  ;;  %v2153_v48 = vunpack.c.l.b16 %v1974_v35 }
 0x6df   : > { %v2155_v52 = vpack.c.b16 %v2154_v3, %v2153_v48 }
 0x6e1   : > { %3246 = vmatmul.msk.bf16.vlgmr.msra.gmra.mxu3 %vm615_vm2, %v2155_v52  ;;  %v2249_v6 = vpop.permute.xlu1 %2248  ;;  %3251 = vmatmul.msk.bf16.vlgmr.msra.gmra.mxu0 %vm405_vm1, %v2273_v17 }
 0x6e3   : > { %v2297_v2 = vpop.permute.xlu2 %2296 }
 0x6e4   : > { %v2251_v36 = vpop.permute.xlu0 %2250 }
 0x6e5   : > { %v2256_v57 = vsel %vm405_vm1, %v2251_v36, 0 }
 0x6e6   : > { %2265 = vmatpush.bf16.xpose.msrb.mxu3 %v2256_v57 }
 0x6e9   : > { %3248 = vmatmul.msk.bf16.vlgmr.msrb.gmra.mxu1 %vm405_vm1, %v4650_v30  ;;  %3249 = vmatmul.msk.bf16.vlgmr.msrb.gmra.mxu2 %vm405_vm1, %v4695_v4  ;;  %v2347_v9 = vpop.permute.xlu1 %2346 }
 0x6ea   : > { %v2352_v33 = vsel %vm405_vm1, %v2347_v9, 0 }
 0x6eb   : > { %v2345_v43 = vpop.permute.xlu2 %2344 }
 0x6ec   : > { %v2323_v54 = vpop.permute.xlu0 %2322 }
 0x6ed   : > { %v2328_v24 = vsel %vm405_vm1, %v2323_v54, 0 }
 0x6ee   : > { %2361 = vmatpush.bf16.xpose.msra.mxu3 %v2352_v33  ;;  %2337 = vmatpush.bf16.xpose.msra.mxu2 %v2328_v24 }
 0x6f1   : > { %3250 = vmatmul.msk.bf16.vlgmr.msrb.gmra.mxu3 %vm405_vm1, %v2249_v6 }
 0x6f4   : > { %v2321_v60 = vpop.permute.xlu0 %2320 }
 0x6f9   : > { %3252 = vmatmul.msk.bf16.vlgmr.msra.gmra.mxu1 %vm405_vm1, %v2297_v2  ;;  %3253 = vmatmul.msk.bf16.vlgmr.msra.gmra.mxu2 %vm405_vm1, %v2321_v60 }
 0x6fc   : > { %v2566_v30 = vpop.permute.xlu0 %2565 }
 0x6fd   : > { %2578 = vmatpush.bf16.msrb.mxu0 %v2566_v30 }
 0x701   : > { %3254 = vmatmul.msk.bf16.vlgmr.msra.gmra.mxu3 %vm405_vm1, %v2345_v43 }
 0x727   : > { %v4728_v4 = vpop.f32.mrf.mxu0 }
 0x72f   : > { %v4732_v23 = vpop.f32.mrf.mxu0 }
 0x736   : > { %v4730_v49 = vpop.f32.mrf.mxu1 }
 0x73e   : > { %v4734_v40 = vpop.f32.mrf.mxu1  ;;  %v4738_v44 = vpop.f32.mrf.mxu0 }
 0x746   : > { %v4740_v53 = vpop.f32.mrf.mxu0 }
 0x74c   : > { %v4742_v17 = vpop.f32.mrf.mxu2 }
 0x74e   : > { %v2195_v47 = vpop.f32.mrf.mxu0 }
 0x74f   : > { %v4750_v61 = vadd.f32 %v2195_v47, %v4747_v15 }
 0x751   : > { %v2368_v1 = vsel %vm615_vm2, %v4750_v61, -inf }
 0x752   : > { %2369 = vmax.xlane.f32.xlu0 %v2368_v1 }
 0x754   : > { %v4754_v16 = vpop.f32.mrf.mxu2  ;;  %v4756_v34 = vpop.f32.mrf.mxu3 }
 0x756   : > { %v4765_v51 = vpop.f32.mrf.mxu1  ;;  %v2197_v39 = vpop.f32.mrf.mxu0 }
 0x757   : > { %v4768_v42 = vadd.f32 %v2197_v39, %v4763_v21 }
 0x759   : > { %v2371_v18 = vsel %vm615_vm2, %v4768_v42, -inf }
 0x75a   : > { %2372 = vmax.xlane.f32.xlu1 %v2371_v18 }
 0x75c   : > { %v4772_v35 = vpop.f32.mrf.mxu3  ;;  %v4774_v25 = vpop.f32.mrf.mxu2 }
 0x75d   : > { %5214 = vst [vmem:[#allocation18_spill] sm:$0xff] %v4774_v25 }
 0x75e   : > { %v4778_v48 = vpop.f32.mrf.mxu1  ;;  %v2291_v6 = vpop.f32.mrf.mxu0 }
 0x75f   : > { %v4783_v36 = vadd.f32 %v2291_v6, %v4747_v15 }
 0x761   : > { %v2392_v57 = vsel %vm615_vm2, %v4783_v36, -inf }
 0x762   : > { %2393 = vmax.xlane.f32.xlu1 %v2392_v57 }
 0x764   : > { %v4787_v9 = vpop.f32.mrf.mxu2  ;;  %v4789_v33 = vpop.f32.mrf.mxu3 }
 0x765   : > { %5215 = vst [vmem:[#allocation19_spill] sm:$0xff] %v4787_v9 }
 0x766   : > { %5216 = vst [vmem:[#allocation20_spill] sm:$0xff] %v4789_v33  ;;  %v2219_v24 = vpop.f32.mrf.mxu1  ;;  %v2293_v30 = vpop.f32.mrf.mxu0 }
 0x767   : > { %v4794_v60 = vadd.f32 %v2219_v24, %v4747_v15  ;;  %v4801_v1 = vadd.f32 %v2293_v30, %v4763_v21 }
 0x769   : > { %v2374_v2 = vsel %vm615_vm2, %v4794_v60, -inf  ;;  %v2395_v30 = vsel %vm615_vm2, %v4801_v1, -inf }
 0x76a   : > { %2375 = vmax.xlane.f32.xlu2 %v2374_v2 }
 0x76c   : > { %v4798_v43 = vpop.f32.mrf.mxu3  ;;  %v2243_v47 = vpop.f32.mrf.mxu2 }
 0x76d   : > { %5217 = vst [vmem:[#allocation21_spill] sm:$0xff] %v4798_v43  ;;  %v4806_v18 = vadd.f32 %v2243_v47, %v4747_v15 }
 0x76e   : > { %v2221_v6 = vpop.f32.mrf.mxu1 }
 0x76f   : > { %v4809_v57 = vadd.f32 %v2221_v6, %v4763_v21  ;;  %v2380_v24 = vsel %vm615_vm2, %v4806_v18, -inf }
 0x770   : > { %2381 = vmax.xlane.f32.xlu1 %v2380_v24 }
 0x771   : > { %v2377_v2 = vsel %vm615_vm2, %v4809_v57, -inf }
 0x772   : > { %2378 = vmax.xlane.f32.xlu0 %v2377_v2  ;;  %2396 = vmax.xlane.f32.xlu2 %v2395_v30 }
 0x774   : > { %v2245_v39 = vpop.f32.mrf.mxu2  ;;  %v2267_v54 = vpop.f32.mrf.mxu3 }
 0x775   : > { %v4818_v47 = vadd.f32 %v2245_v39, %v4763_v21  ;;  %v4821_v6 = vadd.f32 %v2267_v54, %v4747_v15 }
 0x776   : > { %v2315_v52 = vpop.f32.mrf.mxu1 }
 0x777   : > { %v4824_v3 = vadd.f32 %v2315_v52, %v4747_v15  ;;  %v2383_v50 = vsel %vm615_vm2, %v4818_v47, -inf  ;;  %v2386_v2 = vsel %vm615_vm2, %v4821_v6, -inf }
 0x779   : > { %v2398_v24 = vsel %vm615_vm2, %v4824_v3, -inf }
 0x77a   : > { %2399 = vmax.xlane.f32.xlu1 %v2398_v24  ;;  %2384 = vmax.xlane.f32.xlu2 %v2383_v50 }
 0x77b   : > { %2387 = vmax.xlane.f32.xlu0 %v2386_v2 }
 0x77c   : > { %v2269_v39 = vpop.f32.mrf.mxu3  ;;  %v2339_v50 = vpop.f32.mrf.mxu2 }
 0x77d   : > { %v4833_v54 = vadd.f32 %v2269_v39, %v4763_v21  ;;  %v4847_v24 = vadd.f32 %v2339_v50, %v4747_v15 }
 0x77e   : > { %v2317_v30 = vpop.f32.mrf.mxu1 }
 0x77f   : > { %v4836_v52 = vadd.f32 %v2317_v30, %v4763_v21  ;;  %v2389_v8 = vsel %vm615_vm2, %v4833_v54, -inf  ;;  %v2404_v2 = vsel %vm615_vm2, %v4847_v24, -inf }
 0x781   : > { %v2401_v7 = vsel %vm615_vm2, %v4836_v52, -inf }
 0x782   : > { %2390 = vmax.xlane.f32.xlu1 %v2389_v8 }
 0x783   : > { %2402 = vmax.xlane.f32.xlu0 %v2401_v7 }
 0x784   : > { %v2341_v39 = vpop.f32.mrf.mxu2  ;;  %v2363_v14 = vpop.f32.mrf.mxu3 }
 0x785   : > { %v4853_v7 = vadd.f32 %v2341_v39, %v4763_v21 }
 0x78c   : > { %v2365_v39 = vpop.f32.mrf.mxu3 }
 0x792   : > { %2590 = vrot.lane.b32.xlu2 %v3806_v12, %s3709_s11 }
 0x79b   : > { %2615 = vrot.lane.b32.xlu1 %v3794_v55, %s3709_s11  ;;  %v2407_v55 = vsel %vm615_vm2, %v4853_v7, -inf }
 0x7c5   : > { %2405 = vmax.xlane.f32.xlu1 %v2404_v2  ;;  %v2370_v30 = vpop.xlane.xlu0 %2369 }
 0x7c6   : > { %v2416_v38 = vsub.f32 %v4750_v61, %v2370_v30 }
 0x7c8   : > { %v2432_v8 = vmul.f32 1.442695, %v2416_v38 }
 0x7ca   : > { %3627 = vpow2.f32 %v2432_v8 }
 0x7cd   : > { %2408 = vmax.xlane.f32.xlu1 %v2407_v55  ;;  %v2373_v12 = vpop.xlane.xlu1 %2372 }
 0x7ce   : > { %v2417_v50 = vsub.f32 %v4768_v42, %v2373_v12  ;;  %v4867_v42 = vadd.f32 %v2365_v39, %v4763_v21 }
 0x7d0   : > { %v4858_v46 = vpop.eup %3627  ;;  %v2434_v58 = vmul.f32 1.442695, %v2417_v50 }
 0x7d1   : > { %v2464_v2 = vsel %vm615_vm2, %v4858_v46, 0.0 }
 0x7d2   : > { %3629 = vpow2.f32 %v2434_v58  ;;  %2465 = vadd.xlane.f32.xlu2 %v2464_v2  ;;  %v2413_v58 = vsel %vm615_vm2, %v4867_v42, -inf }
 0x7d5   : > { %v2394_v30 = vpop.xlane.xlu1 %2393 }
 0x7d8   : > { %v4862_v61 = vpop.eup %3629 }
 0x7d9   : > { %v2467_v38 = vsel %vm615_vm2, %v4862_v61, 0.0 }
 0x7da   : > { %2468 = vadd.xlane.f32.xlu0 %v2467_v38 }
 0x7dd   : > { %v2376_v8 = vpop.xlane.xlu2 %2375 }
 0x7de   : > { %v2418_v55 = vsub.f32 %v4794_v60, %v2376_v8  ;;  %v2424_v60 = vsub.f32 %v4783_v36, %v2394_v30 }
 0x7e0   : > { %v2436_v12 = vmul.f32 1.442695, %v2418_v55  ;;  %v2448_v8 = vmul.f32 1.442695, %v2424_v60 }
 0x7e2   : > { %3631 = vpow2.f32 %v2436_v12  ;;  %2414 = vmax.xlane.f32.xlu0 %v2413_v58 }
 0x7e3   : > { %v2382_v50 = vpop.xlane.xlu1 %2381 }
 0x7e4   : > { %v2420_v2 = vsub.f32 %v4806_v18, %v2382_v50 }
 0x7e5   : > { %v2397_v33 = vpop.xlane.xlu2 %2396  ;;  %v2379_v43 = vpop.xlane.xlu0 %2378 }
 0x7e6   : > { %v2440_v25 = vmul.f32 1.442695, %v2420_v2  ;;  %v2419_v38 = vsub.f32 %v4809_v57, %v2379_v43  ;;  %v2425_v43 = vsub.f32 %v4801_v1, %v2397_v33  ;;  %v4889_v57 = vadd.f32 %v2363_v14, %v4747_v15 }
 0x7e8   : > { %v4874_v9 = vpop.eup %3631  ;;  %3633 = vpow2.f32 %v2440_v25  ;;  %v2438_v21 = vmul.f32 1.442695, %v2419_v38  ;;  %v2450_v30 = vmul.f32 1.442695, %v2425_v43  ;;  %v2410_v1 = vsel %vm615_vm2, %v4889_v57, -inf }
 0x7e9   : > { %v2470_v39 = vsel %vm615_vm2, %v4874_v9, 0.0 }
 0x7ea   : > { %2471 = vadd.xlane.f32.xlu1 %v2470_v39  ;;  %3635 = vpow2.f32 %v2438_v21 }
 0x7eb   : > { %3637 = vpow2.f32 %v2448_v8 }
 0x7ec   : > { %3639 = vpow2.f32 %v2450_v30 }
 0x7ed   : > { %v2385_v55 = vpop.xlane.xlu2 %2384  ;;  %v2400_v15 = vpop.xlane.xlu1 %2399 }
 0x7ee   : > { %v4879_v12 = vpop.eup %3633  ;;  %v2388_v50 = vpop.xlane.xlu0 %2387  ;;  %v2421_v60 = vsub.f32 %v4818_v47, %v2385_v55  ;;  %v2426_v43 = vsub.f32 %v4824_v3, %v2400_v15 }
 0x7ef   : > { %v2476_v25 = vsel %vm615_vm2, %v4879_v12, 0.0  ;;  %v2422_v33 = vsub.f32 %v4821_v6, %v2388_v50 }
 0x7f0   : > { %v4881_v18 = vpop.eup %3635  ;;  %v2442_v6 = vmul.f32 1.442695, %v2421_v60 }
 0x7f1   : > { %v2473_v36 = vsel %vm615_vm2, %v4881_v18, 0.0  ;;  %v4891_v2 = vpop.eup %3637  ;;  %v2444_v38 = vmul.f32 1.442695, %v2422_v33 }
 0x7f2   : > { %2477 = vadd.xlane.f32.xlu1 %v2476_v25  ;;  %2474 = vadd.xlane.f32.xlu2 %v2473_v36  ;;  %v2488_v14 = vsel %vm615_vm2, %v4891_v2, 0.0  ;;  %v4900_v21 = vpop.eup %3639  ;;  %v2452_v36 = vmul.f32 1.442695, %v2426_v43 }
 0x7f3   : > { %3641 = vpow2.f32 %v2444_v38 }
 0x7f4   : > { %3643 = vpow2.f32 %v2442_v6 }
 0x7f5   : > { %v2591_v58 = vpop.permute.xlu2 %2590  ;;  %v2391_v39 = vpop.xlane.xlu1 %2390  ;;  %3645 = vpow2.f32 %v2452_v36 }
 0x7f6   : > { %2603 = vmatpush.bf16.msrb.mxu1 %v2591_v58  ;;  %2640 = vrot.lane.b32.xlu0 %v3819_v32, %s3709_s11  ;;  %v2491_v32 = vsel %vm615_vm2, %v4900_v21, 0.0  ;;  %v2423_v55 = vsub.f32 %v4833_v54, %v2391_v39 }
 0x7f8   : > { %v2446_v50 = vmul.f32 1.442695, %v2423_v55 }
 0x7f9   : > { %v4905_v8 = vpop.eup %3641 }
 0x7fa   : > { %2411 = vmax.xlane.f32.xlu1 %v2410_v1  ;;  %2489 = vadd.xlane.f32.xlu2 %v2488_v14  ;;  %v2482_v25 = vsel %vm615_vm2, %v4905_v8, 0.0  ;;  %v4910_v47 = vpop.eup %3643  ;;  %3647 = vpow2.f32 %v2446_v50 }
 0x7fb   : > { %v2479_v58 = vsel %vm615_vm2, %v4910_v47, 0.0  ;;  %v4915_v33 = vpop.eup %3645 }
 0x7fc   : > { %v2494_v3 = vsel %vm615_vm2, %v4915_v33, 0.0 }
 0x800   : > { %v4919_v1 = vpop.eup %3647 }
 0x801   : > { %v2485_v14 = vsel %vm615_vm2, %v4919_v1, 0.0 }
 0x802   : > { %2492 = vadd.xlane.f32.xlu2 %v2491_v32 }
 0x80a   : > { %2483 = vadd.xlane.f32.xlu2 %v2482_v25  ;;  %v2403_v25 = vpop.xlane.xlu0 %2402 }
 0x80d   : > { %v2616_v30 = vpop.permute.xlu1 %2615 }
 0x80e   : > { %2628 = vmatpush.bf16.msrb.mxu2 %v2616_v30  ;;  %v2427_v30 = vsub.f32 %v4836_v52, %v2403_v25 }
 0x812   : > { %2480 = vadd.xlane.f32.xlu2 %v2479_v58  ;;  %v2454_v58 = vmul.f32 1.442695, %v2427_v30 }
 0x81a   : > { %2495 = vadd.xlane.f32.xlu2 %v2494_v3 }
 0x820   : > { %2486 = vadd.xlane.f32.xlu0 %v2485_v14 }
 0x834   : > { %2665 = vrot.lane.b32.xlu0 %v3815_v28, %s3709_s11 }
 0x838   : > { %v2406_v54 = vpop.xlane.xlu1 %2405 }
 0x839   : > { %v2428_v15 = vsub.f32 %v4847_v24, %v2406_v54 }
 0x83b   : > { %v2456_v38 = vmul.f32 1.442695, %v2428_v15 }
 0x83d   : > { %3649 = vpow2.f32 %v2456_v38 }
 0x840   : > { %v2409_v60 = vpop.xlane.xlu1 %2408 }
 0x841   : > { %v2429_v32 = vsub.f32 %v4853_v7, %v2409_v60 }
 0x843   : > { %v4927_v6 = vpop.eup %3649  ;;  %v2458_v39 = vmul.f32 1.442695, %v2429_v32 }
 0x844   : > { %v2500_v43 = vsel %vm615_vm2, %v4927_v6, 0.0 }
 0x845   : > { %3651 = vpow2.f32 %v2458_v39  ;;  %2501 = vadd.xlane.f32.xlu1 %v2500_v43  ;;  %v2466_v36 = vpop.xlane.xlu2 %2465 }
 0x846   : > { %3653 = vrcp.f32 %v2466_v36 }
 0x84b   : > { %v4931_v28 = vpop.eup %3651 }
 0x84c   : > { %v2503_v24 = vsel %vm615_vm2, %v4931_v28, 0.0  ;;  %v3654_v55 = vpop.eup %3653 }
 0x84d   : > { %2504 = vadd.xlane.f32.xlu2 %v2503_v24  ;;  %v2469_v7 = vpop.xlane.xlu0 %2468  ;;  %v2528_v50 = vmul.f32 %v3654_v55, %v4858_v46 }
 0x84e   : > { %3655 = vrcp.f32 %v2469_v7 }
 0x84f   : > { %3657 = vpow2.f32 %v2454_v58  ;;  %v2544_v14 = vpack.c.bf16 %v2528_v50, %v2528_v50 }
 0x851   : > { %v2562_v38 = vunpack.c.l.b16 %v2544_v14 }
 0x854   : > { %v3656_v3 = vpop.eup %3655 }
 0x855   : > { %v2529_v54 = vmul.f32 %v3656_v3, %v4862_v61  ;;  %v4938_v32 = vpop.eup %3657  ;;  %v2415_v52 = vpop.xlane.xlu0 %2414 }
 0x856   : > { %v2497_v46 = vsel %vm615_vm2, %v4938_v32, 0.0 }
 0x857   : > { %v2545_v15 = vpack.c.bf16 %v2529_v54, %v2529_v54 }
 0x859   : > { %v2563_v60 = vunpack.c.l.b16 %v2545_v15 }
 0x85b   : > { %v2564_v39 = vpack.c.b16 %v2563_v60, %v2562_v38 }
 0x85d   : > { %v2472_v43 = vpop.xlane.xlu1 %2471  ;;  %3255 = vmatmul.msk.bf16.vlgmr.msrb.gmra.mxu0 %vm615_vm2, %v2564_v39 }
 0x85e   : > { %2690 = vrot.lane.b32.xlu1 %v3817_v31, %s3709_s11  ;;  %2498 = vadd.xlane.f32.xlu0 %v2497_v46  ;;  %3659 = vrcp.f32 %v2472_v43 }
 0x864   : > { %v3660_v25 = vpop.eup %3659 }
 0x865   : > { %2715 = vrot.lane.b32.xlu2 %v3804_v10, %s3709_s11  ;;  %v2475_v61 = vpop.xlane.xlu2 %2474  ;;  %v2478_v36 = vpop.xlane.xlu1 %2477  ;;  %v2530_v30 = vmul.f32 %v3660_v25, %v4874_v9  ;;  %v3313_v9 = vpack.i.bf16 %v4426_v5, %v4424_v20 }
 0x866   : > { %3661 = vrcp.f32 %v2475_v61 }
 0x867   : > { %v2546_v55 = vpack.c.bf16 %v2530_v30, %v2530_v30 }
 0x868   : > { %v2641_v24 = vpop.permute.xlu0 %2640 }
 0x869   : > { %2653 = vmatpush.bf16.msrb.mxu3 %v2641_v24  ;;  %v2587_v3 = vunpack.c.l.b16 %v2546_v55 }
 0x86c   : > { %v3662_v7 = vpop.eup %3661 }
 0x86d   : > { %v2531_v31 = vmul.f32 %v3662_v7, %v4881_v18  ;;  %v2490_v58 = vpop.xlane.xlu2 %2489  ;;  %v2412_v54 = vpop.xlane.xlu1 %2411  ;;  %v2431_v18 = vsub.f32 %v4867_v42, %v2415_v52  ;;  %v3328_v42 = vpack.i.bf16 %v4432_v0, %v4428_v22 }
 0x86e   : > { %v2430_v15 = vsub.f32 %v4889_v57, %v2412_v54 }
 0x86f   : > { %v2547_v50 = vpack.c.bf16 %v2531_v31, %v2531_v31  ;;  %v2462_v43 = vmul.f32 1.442695, %v2431_v18 }
 0x870   : > { %v2460_v60 = vmul.f32 1.442695, %v2430_v15 }
 0x871   : > { %v2588_v14 = vunpack.c.l.b16 %v2547_v50 }
 0x872   : > { %2740 = vrot.lane.b32.xlu0 %v3826_v27, %s3709_s11  ;;  %3663 = vpow2.f32 %v2460_v60  ;;  %v3318_v27 = vpack.i.bf16 %v4732_v23, %v4728_v4 }
 0x873   : > { %v2589_v10 = vpack.c.b16 %v2588_v14, %v2587_v3  ;;  %3665 = vrcp.f32 %v2478_v36 }
 0x874   : > { %3667 = vpow2.f32 %v2462_v43 }
 0x875   : > { %3256 = vmatmul.msk.bf16.vlgmr.msrb.gmra.mxu1 %vm615_vm2, %v2589_v10  ;;  %v2493_v38 = vpop.xlane.xlu2 %2492 }
 0x878   : > { %v4960_v57 = vpop.eup %3663 }
 0x879   : > { %v3666_v5 = vpop.eup %3665  ;;  %v2506_v46 = vsel %vm615_vm2, %v4960_v57, 0.0 }
 0x87a   : > { %3314 = vrot.lane.b32.xlu0 %v3313_v9, %s3710_s16  ;;  %v4966_v52 = vpop.eup %3667  ;;  %v2532_v4 = vmul.f32 %v3666_v5, %v4879_v12 }
 0x87b   : > { %v2509_v61 = vsel %vm615_vm2, %v4966_v52, 0.0 }
 0x87c   : > { %v2548_v25 = vpack.c.bf16 %v2532_v4, %v2532_v4 }
 0x87d   : > { %v2484_v39 = vpop.xlane.xlu2 %2483 }
 0x87e   : > { %v2612_v30 = vunpack.c.l.b16 %v2548_v25 }
 0x882   : > { %3319 = vrot.lane.b32.xlu0 %v3318_v27, %s3711_s17  ;;  %v3373_v27 = vpack.i.bf16 %v4436_v56, %v4430_v37 }
 0x885   : > { %v2481_v20 = vpop.xlane.xlu2 %2480 }
 0x886   : > { %3669 = vrcp.f32 %v2481_v20 }
 0x887   : > { %3671 = vrcp.f32 %v2484_v39 }
 0x888   : > { %2507 = vadd.xlane.f32.xlu1 %v2506_v46  ;;  %3673 = vrcp.f32 %v2493_v38 }
 0x88a   : > { %3329 = vrot.lane.b32.xlu0 %v3328_v42, %s3710_s16 }
 0x88c   : > { %v3670_v23 = vpop.eup %3669 }
 0x88d   : > { %v2533_v36 = vmul.f32 %v3670_v23, %v4910_v47  ;;  %v3672_v55 = vpop.eup %3671  ;;  %v2496_v20 = vpop.xlane.xlu2 %2495 }
 0x88e   : > { %2510 = vadd.xlane.f32.xlu2 %v2509_v61  ;;  %v2534_v12 = vmul.f32 %v3672_v55, %v4905_v8  ;;  %v3674_v31 = vpop.eup %3673  ;;  %v5218_v8 = vpack.i.bf16 %v4734_v40, %v4730_v49  ;;  %v5220_v49 = vpack.i.bf16 %v4459_v59, %v4445_v62 }
 0x88f   : > { %v2549_v24 = vpack.c.bf16 %v2533_v36, %v2533_v36  ;;  %v2537_v54 = vmul.f32 %v3674_v31, %v4900_v21 }
 0x890   : > { %v2550_v14 = vpack.c.bf16 %v2534_v12, %v2534_v12 }
 0x891   : > { %v2613_v7 = vunpack.c.l.b16 %v2549_v24  ;;  %v2553_v60 = vpack.c.bf16 %v2537_v54, %v2537_v54 }
 0x892   : > { %v2637_v38 = vunpack.c.l.b16 %v2550_v14 }
 0x893   : > { %v2614_v22 = vpack.c.b16 %v2613_v7, %v2612_v30  ;;  %v2487_v0 = vpop.xlane.xlu0 %2486  ;;  %v2663_v39 = vunpack.c.l.b16 %v2553_v60 }
 0x894   : > { %3675 = vrcp.f32 %v2487_v0 }
 0x895   : > { %3677 = vrcp.f32 %v2490_v58  ;;  %3257 = vmatmul.msk.bf16.vlgmr.msrb.gmra.mxu2 %vm615_vm2, %v2614_v22 }
 0x89a   : > { %v3676_v50 = vpop.eup %3675 }
 0x89b   : > { %v3678_v3 = vpop.eup %3677  ;;  %v2535_v47 = vmul.f32 %v3676_v50, %v4919_v1  ;;  %v5224_v50 = vpack.i.bf16 %v4772_v35, %v4756_v34 }
 0x89c   : > { %v2536_v15 = vmul.f32 %v3678_v3, %v4891_v2  ;;  %v5219_v2 = vpack.i.bf16 %v4443_v13, %v4434_v11  ;;  %v5221_v11 = vpack.i.bf16 %v4491_v45, %v4487_v29 }
 0x89d   : > { %v2551_v10 = vpack.c.bf16 %v2535_v47, %v2535_v47  ;;  %v3378_v47 = vpack.i.bf16 %v4740_v53, %v4738_v44  ;;  %v5225_v44 = vpack.i.bf16 %v4778_v48, %v4765_v51 }
 0x89e   : > { %v2552_v58 = vpack.c.bf16 %v2536_v15, %v2536_v15 }
 0x89f   : > { %v2638_v9 = vunpack.c.l.b16 %v2551_v10 }
 0x8a0   : > { %v2662_v43 = vunpack.c.l.b16 %v2552_v58  ;;  %v5227_v58 = vld [vmem:[#allocation18_spill] sm:$0xff] }
 0x8a1   : > { %v2639_v18 = vpack.c.b16 %v2638_v9, %v2637_v38 }
 0x8a2   : > { %v2664_v21 = vpack.c.b16 %v2663_v39, %v2662_v43  ;;  %v5230_v39 = vld [vmem:[#allocation20_spill] sm:$0xff] }
 0x8a3   : > { %3258 = vmatmul.msk.bf16.vlgmr.msrb.gmra.mxu3 %vm615_vm2, %v2639_v18  ;;  %v5226_v18 = vld [vmem:[#allocation19_spill] sm:$0xff] }
 0x8a6   : > { %3334 = vrot.lane.b32.xlu2 %v5218_v8, %s3711_s17  ;;  %v2666_v1 = vpop.permute.xlu0 %2665 }
 0x8a7   : > { %2678 = vmatpush.bf16.msra.mxu0 %v2666_v1 }
 0x8aa   : > { %3259 = vmatmul.msk.bf16.vlgmr.msra.gmra.mxu0 %vm615_vm2, %v2664_v21 }
 0x8ae   : > { %3359 = vrot.lane.b32.xlu2 %v5219_v2, %s3710_s16 }
 0x8b6   : > { %3374 = vrot.lane.b32.xlu2 %v3373_v27, %s3710_s16  ;;  %v3284_v27 = vld [vmem:[%s5190_s3 + $0x8] sm:$0xff] }
 0x8b7   : > { %3059 = vmatpush.bf16.msrb.mxu0 %v3284_v27 }
 0x8b8   : > { %v2502_v5 = vpop.xlane.xlu1 %2501 }
 0x8b9   : > { %3679 = vrcp.f32 %v2502_v5 }
 0x8be   : > { %3389 = vrot.lane.b32.xlu2 %v5220_v49, %s3710_s16  ;;  %v3283_v49 = vld [vmem:[%s5190_s3] sm:$0xff] }
 0x8bf   : > { %v3680_v46 = vpop.eup %3679  ;;  %3060 = vmatpush.bf16.msrb.mxu0 %v3283_v49 }
 0x8c0   : > { %v2505_v40 = vpop.xlane.xlu2 %2504  ;;  %v2540_v42 = vmul.f32 %v3680_v46, %v4927_v6  ;;  %v5222_v6 = vpack.i.bf16 %v4495_v19, %v4489_v26 }
 0x8c1   : > { %3681 = vrcp.f32 %v2505_v40 }
 0x8c2   : > { %v2556_v56 = vpack.c.bf16 %v2540_v42, %v2540_v42  ;;  %3683 = vrcp.f32 %v2496_v20 }
 0x8c4   : > { %v2712_v61 = vunpack.c.l.b16 %v2556_v56 }
 0x8c6   : > { %3404 = vrot.lane.b32.xlu2 %v5221_v11, %s3710_s16 }
 0x8c7   : > { %v3682_v37 = vpop.eup %3681 }
 0x8c8   : > { %v2541_v13 = vmul.f32 %v3682_v37, %v4931_v28  ;;  %v2716_v4 = vpop.permute.xlu2 %2715  ;;  %v3684_v45 = vpop.eup %3683 }
 0x8c9   : > { %2728 = vmatpush.bf16.msra.mxu2 %v2716_v4  ;;  %v2538_v28 = vmul.f32 %v3684_v45, %v4915_v33  ;;  %v5223_v33 = vpack.i.bf16 %v4754_v16, %v4742_v17  ;;  %v3343_v16 = vpack.i.bf16 %v4485_v41, %v4483_v63  ;;  %v5228_v63 = vpack.i.bf16 %v5226_v18, %v5227_v58  ;;  %v5232_v4 = vld [vmem:[#allocation6_spill] sm:$0xff]  ;;  %v5236_v58 = vld [vmem:[#allocation3_spill] sm:$0xff] }
 0x8ca   : > { %v2557_v23 = vpack.c.bf16 %v2541_v13, %v2541_v13 }
 0x8cb   : > { %v2554_v24 = vpack.c.bf16 %v2538_v28, %v2538_v28 }
 0x8cc   : > { %v2713_v62 = vunpack.c.l.b16 %v2557_v23 }
 0x8cd   : > { %v2687_v0 = vunpack.c.l.b16 %v2554_v24 }
 0x8ce   : > { %v2714_v59 = vpack.c.b16 %v2713_v62, %v2712_v61  ;;  %3419 = vrot.lane.b32.xlu2 %v5222_v6, %s3710_s16  ;;  %v5233_v61 = vld [vmem:[#allocation4_spill] sm:$0xff] }
 0x8d0   : > { %v2691_v25 = vpop.permute.xlu1 %2690  ;;  %3261 = vmatmul.msk.bf16.vlgmr.msra.gmra.mxu2 %vm615_vm2, %v2714_v59 }
 0x8d1   : > { %2703 = vmatpush.bf16.msra.mxu1 %v2691_v25  ;;  %v2499_v29 = vpop.xlane.xlu0 %2498 }
 0x8d2   : > { %3685 = vrcp.f32 %v2499_v29 }
 0x8d8   : > { %v3686_v36 = vpop.eup %3685 }
 0x8d9   : > { %v2539_v30 = vmul.f32 %v3686_v36, %v4938_v32 }
 0x8da   : > { %v2580_v7 = vpop.f32.mrf.mxu0 }
 0x8db   : > { %v2555_v22 = vpack.c.bf16 %v2539_v30, %v2539_v30 }
 0x8dd   : > { %v2688_v55 = vunpack.c.l.b16 %v2555_v22 }
 0x8df   : > { %v2689_v12 = vpack.c.b16 %v2688_v55, %v2687_v0 }
 0x8e1   : > { %3260 = vmatmul.msk.bf16.vlgmr.msra.gmra.mxu1 %vm615_vm2, %v2689_v12 }
 0x8e2   : > { %v2582_v26 = vpop.f32.mrf.mxu0 }
 0x8e3   : > { %v3323_v19 = vpack.i.bf16 %v2582_v26, %v2580_v7 }
 0x8e4   : > { %v2741_v31 = vpop.permute.xlu0 %2740 }
 0x8e5   : > { %3324 = vrot.lane.b32.xlu1 %v3323_v19, %s3712_s18  ;;  %2753 = vmatpush.bf16.msra.mxu3 %v2741_v31 }
 0x8ec   : > { %v3315_v40 = vpop.permute.xlu0 %3314 }
 0x8ed   : > { %3349 = vrot.lane.b32.xlu1 %v5223_v33, %s3711_s17  ;;  %v3317_v42 = vunpack.i.h.bf16 %v3315_v40  ;;  %v3316_v11 = vunpack.i.l.bf16 %v3315_v40 }
 0x8ef   : > { %v2953_v23 = vsel %vm405_vm1, %v5232_v4, %v3317_v42  ;;  %v2952_v62 = vsel %vm405_vm1, %v5233_v61, %v3316_v11 }
 0x8f2   : > { %v2605_v32 = vpop.f32.mrf.mxu1 }
 0x8f4   : > { %v3320_v46 = vpop.permute.xlu0 %3319 }
 0x8f5   : > { %3364 = vrot.lane.b32.xlu1 %v5224_v50, %s3711_s17  ;;  %v3322_v37 = vunpack.i.h.bf16 %v3320_v46  ;;  %v3321_v56 = vunpack.i.l.bf16 %v3320_v46 }
 0x8f7   : > { %v2968_v25 = vsel %vm615_vm2, %v2952_v62, %v3321_v56  ;;  %v2969_v29 = vsel %vm615_vm2, %v2953_v23, %v3322_v37  ;;  %v5239_v23 = vld [vmem:[#allocation8_spill] sm:$0xff] }
 0x8fa   : > { %v2607_v3 = vpop.f32.mrf.mxu1 }
 0x8fb   : > { %v2508_v14 = vpop.xlane.xlu1 %2507  ;;  %v3338_v54 = vpack.i.bf16 %v2607_v3, %v2605_v32  ;;  %v5234_v3 = vld [vmem:[#allocation13_spill] sm:$0xff] }
 0x8fc   : > { %3687 = vrcp.f32 %v2508_v14  ;;  %v3330_v22 = vpop.permute.xlu0 %3329 }
 0x8fd   : > { %3339 = vrot.lane.b32.xlu0 %v3338_v54, %s3712_s18  ;;  %3379 = vrot.lane.b32.xlu1 %v3378_v47, %s3711_s17  ;;  %v3332_v12 = vunpack.i.h.bf16 %v3330_v22  ;;  %v3331_v26 = vunpack.i.l.bf16 %v3330_v22  ;;  %v5235_v47 = vld [vmem:[#allocation12_spill] sm:$0xff] }
 0x8ff   : > { %v2955_v14 = vsel %vm405_vm1, %v5234_v3, %v3332_v12  ;;  %v2954_v54 = vsel %vm405_vm1, %v5235_v47, %v3331_v26 }
 0x901   : > { %v2511_v10 = vpop.xlane.xlu2 %2510 }
 0x902   : > { %v3688_v17 = vpop.eup %3687  ;;  %3689 = vrcp.f32 %v2511_v10 }
 0x903   : > { %v2542_v34 = vmul.f32 %v3688_v17, %v4960_v57  ;;  %v5229_v57 = vld [vmem:[#allocation21_spill] sm:$0xff] }
 0x904   : > { %v5231_v51 = vpack.i.bf16 %v5229_v57, %v5230_v39 }
 0x905   : > { %3344 = vrot.lane.b32.xlu0 %v3343_v16, %s3710_s16  ;;  %3394 = vrot.lane.b32.xlu1 %v5225_v44, %s3711_s17  ;;  %v2558_v35 = vpack.c.bf16 %v2542_v34, %v2542_v34 }
 0x907   : > { %v2737_v9 = vunpack.c.l.b16 %v2558_v35 }
 0x908   : > { %v3690_v53 = vpop.eup %3689 }
 0x909   : > { %v2543_v15 = vmul.f32 %v3690_v53, %v4966_v52  ;;  %v3335_v55 = vpop.permute.xlu2 %3334 }
 0x90a   : > { %v3337_v31 = vunpack.i.h.bf16 %v3335_v55  ;;  %v3336_v33 = vunpack.i.l.bf16 %v3335_v55 }
 0x90b   : > { %v2559_v38 = vpack.c.bf16 %v2543_v15, %v2543_v15 }
 0x90c   : > { %v2970_v16 = vsel %vm615_vm2, %v2954_v54, %v3336_v33  ;;  %v2971_v34 = vsel %vm615_vm2, %v2955_v14, %v3337_v31  ;;  %v5241_v33 = vld [vmem:[#allocation14_spill] sm:$0xff] }
 0x90d   : > { %v2738_v60 = vunpack.c.l.b16 %v2559_v38  ;;  %3409 = vrot.lane.b32.xlu1 %v5228_v63, %s3711_s17 }
 0x90f   : > { %v2739_v41 = vpack.c.b16 %v2738_v60, %v2737_v9 }
 0x911   : > { %3262 = vmatmul.msk.bf16.vlgmr.msra.gmra.mxu3 %vm615_vm2, %v2739_v41  ;;  %v5237_v41 = vld [vmem:[#allocation2_spill] sm:$0xff]  ;;  %v3360_v49 = vpop.permute.xlu2 %3359 }
 0x912   : > { %v3362_v46 = vunpack.i.h.bf16 %v3360_v49  ;;  %v3361_v42 = vunpack.i.l.bf16 %v3360_v49 }
 0x914   : > { %v2958_v61 = vsel %vm405_vm1, %v5239_v23, %v3361_v42 }
 0x915   : > { %3424 = vrot.lane.b32.xlu1 %v5231_v51, %s3711_s17 }
 0x918   : > { %v2630_v48 = vpop.f32.mrf.mxu2 }
 0x920   : > { %v2632_v8 = vpop.f32.mrf.mxu2 }
 0x921   : > { %v3353_v43 = vpack.i.bf16 %v2632_v8, %v2630_v48 }
 0x923   : > { %3354 = vrot.lane.b32.xlu0 %v3353_v43, %s3712_s18 }
 0x926   : > { %v2655_v52 = vpop.f32.mrf.mxu3 }
 0x927   : > { %v2680_v1 = vpop.f32.mrf.mxu0 }
 0x92e   : > { %v2657_v21 = vpop.f32.mrf.mxu3 }
 0x92f   : > { %v3368_v2 = vpack.i.bf16 %v2657_v21, %v2655_v52  ;;  %v2682_v20 = vpop.f32.mrf.mxu0 }
 0x930   : > { %v3383_v5 = vpack.i.bf16 %v2682_v20, %v2680_v1 }
 0x931   : > { %3369 = vrot.lane.b32.xlu0 %v3368_v2, %s3712_s18 }
 0x939   : > { %3384 = vrot.lane.b32.xlu0 %v3383_v5, %s3712_s18 }
 0x953   : > { %v2730_v30 = vpop.f32.mrf.mxu2 }
 0x957   : > { %v3325_v13 = vpop.permute.xlu1 %3324 }
 0x958   : > { %v3327_v59 = vunpack.i.h.bf16 %v3325_v13  ;;  %v3326_v6 = vunpack.i.l.bf16 %v3325_v13  ;;  %v5238_v13 = vld [vmem:[#allocation9_spill] sm:$0xff] }
 0x959   : > { %v2959_v4 = vsel %vm405_vm1, %v5238_v13, %v3362_v46 }
 0x95a   : > { %v2985_v45 = vsel %vm2984_vm3, %v2968_v25, %v3326_v6  ;;  %v2986_v28 = vsel %vm2984_vm3, %v2969_v29, %v3327_v59 }
 0x95b   : > { %v3001_v36 = vpack.c.bf16 %v2986_v28, %v2985_v45  ;;  %v2732_v19 = vpop.f32.mrf.mxu2 }
 0x95c   : > { %v3413_v32 = vpack.i.bf16 %v2732_v19, %v2730_v30  ;;  %v5240_v19 = vld [vmem:[#allocation15_spill] sm:$0xff] }
 0x95d   : > { %3271 = vmatmul.msk.bf16.vlgmr.msrb.gmra.mxu0 %vm300_vm0, %v3001_v36  ;;  %v3375_v36 = vpop.permute.xlu2 %3374 }
 0x95e   : > { %v2705_v24 = vpop.f32.mrf.mxu1  ;;  %v3376_v22 = vunpack.i.l.bf16 %v3375_v36 }
 0x95f   : > { %v3350_v60 = vpop.permute.xlu1 %3349 }
 0x960   : > { %v3352_v39 = vunpack.i.h.bf16 %v3350_v60  ;;  %v3351_v51 = vunpack.i.l.bf16 %v3350_v60  ;;  %v5242_v60 = vld [vmem:[#allocation7_spill] sm:$0xff] }
 0x966   : > { %v2707_v7 = vpop.f32.mrf.mxu1 }
 0x967   : > { %v3398_v0 = vpack.i.bf16 %v2707_v7, %v2705_v24  ;;  %v3365_v40 = vpop.permute.xlu1 %3364  ;;  %v3377_v7 = vunpack.i.h.bf16 %v3375_v36 }
 0x968   : > { %v3367_v11 = vunpack.i.h.bf16 %v3365_v40  ;;  %v3366_v37 = vunpack.i.l.bf16 %v3365_v40 }
 0x969   : > { %3399 = vrot.lane.b32.xlu0 %v3398_v0, %s3712_s18  ;;  %v2961_v31 = vsel %vm405_vm1, %v5240_v19, %v3377_v7 }
 0x96a   : > { %v2974_v6 = vsel %vm615_vm2, %v2958_v61, %v3366_v37  ;;  %v2975_v25 = vsel %vm615_vm2, %v2959_v4, %v3367_v11  ;;  %v5244_v11 = vld [vmem:[#allocation11_spill] sm:$0xff] }
 0x96f   : > { %v3340_v50 = vpop.permute.xlu0 %3339  ;;  %v3380_v24 = vpop.permute.xlu1 %3379 }
 0x970   : > { %v3342_v10 = vunpack.i.h.bf16 %v3340_v50  ;;  %v3341_v17 = vunpack.i.l.bf16 %v3340_v50  ;;  %v3382_v0 = vunpack.i.h.bf16 %v3380_v24  ;;  %v3381_v55 = vunpack.i.l.bf16 %v3380_v24 }
 0x971   : > { %3414 = vrot.lane.b32.xlu0 %v3413_v32, %s3712_s18  ;;  %v2960_v32 = vsel %vm405_vm1, %v5241_v33, %v3376_v22 }
 0x972   : > { %v2987_v44 = vsel %vm2984_vm3, %v2970_v16, %v3341_v17  ;;  %v2988_v53 = vsel %vm2984_vm3, %v2971_v34, %v3342_v10  ;;  %v2976_v50 = vsel %vm615_vm2, %v2960_v32, %v3381_v55  ;;  %v2977_v3 = vsel %vm615_vm2, %v2961_v31, %v3382_v0  ;;  %v3390_v10 = vpop.permute.xlu2 %3389  ;;  %v5100_v16 = vld [vmem:[%s5191_s4] ss:$0 sm:$0xff]  ;;  %v5246_v55 = vld [vmem:[#allocation17_spill] sm:$0xff] }
 0x973   : > { %v3002_v35 = vpack.c.bf16 %v2988_v53, %v2987_v44  ;;  %v3392_v34 = vunpack.i.h.bf16 %v3390_v10  ;;  %v3391_v44 = vunpack.i.l.bf16 %v3390_v10 }
 0x975   : > { %3272 = vmatmul.msk.bf16.gmra.mxu0 %vm300_vm0, %v3002_v35 }
 0x977   : > { %v3345_v15 = vpop.permute.xlu0 %3344  ;;  %v3395_v17 = vpop.permute.xlu1 %3394 }
 0x978   : > { %v3347_v38 = vunpack.i.h.bf16 %v3345_v15  ;;  %v3346_v9 = vunpack.i.l.bf16 %v3345_v15  ;;  %v3397_v53 = vunpack.i.h.bf16 %v3395_v17  ;;  %v3396_v35 = vunpack.i.l.bf16 %v3395_v17 }
 0x97a   : > { %v2957_v63 = vsel %vm405_vm1, %v5236_v58, %v3347_v38  ;;  %v2956_v57 = vsel %vm405_vm1, %v5237_v41, %v3346_v9  ;;  %v5243_v58 = vld [vmem:[#allocation5_spill] sm:$0xff] }
 0x97b   : > { %v2972_v52 = vsel %vm615_vm2, %v2956_v57, %v3351_v51  ;;  %v2973_v1 = vsel %vm615_vm2, %v2957_v63, %v3352_v39  ;;  %v2962_v63 = vsel %vm405_vm1, %v5243_v58, %v3391_v44 }
 0x97c   : > { %v2978_v39 = vsel %vm615_vm2, %v2962_v63, %v3396_v35 }
 0x994   : > { %v2755_v18 = vpop.f32.mrf.mxu3 }
 0x995   : > { %v3355_v48 = vpop.permute.xlu0 %3354 }
 0x996   : > { %v3357_v8 = vunpack.i.h.bf16 %v3355_v48  ;;  %v3356_v43 = vunpack.i.l.bf16 %v3355_v48 }
 0x998   : > { %v2989_v21 = vsel %vm2984_vm3, %v2972_v52, %v3356_v43  ;;  %v2990_v2 = vsel %vm2984_vm3, %v2973_v1, %v3357_v8  ;;  %v3405_v1 = vpop.permute.xlu2 %3404 }
 0x999   : > { %v3003_v27 = vpack.c.bf16 %v2990_v2, %v2989_v21  ;;  %v3410_v2 = vpop.permute.xlu1 %3409 }
 0x99a   : > { %v3412_v49 = vunpack.i.h.bf16 %v3410_v2  ;;  %v3411_v40 = vunpack.i.l.bf16 %v3410_v2 }
 0x99b   : > { %3273 = vmatmul.msk.bf16.gmra.mxu0 %vm300_vm0, %v3003_v27 }
 0x99c   : > { %v2757_v20 = vpop.f32.mrf.mxu3 }
 0x99d   : > { %v3428_v5 = vpack.i.bf16 %v2757_v20, %v2755_v18  ;;  %v2963_v18 = vsel %vm405_vm1, %v5242_v60, %v3392_v34  ;;  %v3407_v20 = vunpack.i.h.bf16 %v3405_v1 }
 0x99e   : > { %v2979_v51 = vsel %vm615_vm2, %v2963_v18, %v3397_v53 }
 0x99f   : > { %3429 = vrot.lane.b32.xlu0 %v3428_v5, %s3712_s18  ;;  %v3406_v5 = vunpack.i.l.bf16 %v3405_v1  ;;  %v2965_v37 = vsel %vm405_vm1, %v5244_v11, %v3407_v20 }
 0x9a0   : > { %v2981_v23 = vsel %vm615_vm2, %v2965_v37, %v3412_v49 }
 0x9a1   : > { %v3425_v36 = vpop.permute.xlu1 %3424 }
 0x9a2   : > { %v3427_v7 = vunpack.i.h.bf16 %v3425_v36  ;;  %v3426_v22 = vunpack.i.l.bf16 %v3425_v36 }
 0x9a3   : > { %v3370_v56 = vpop.permute.xlu0 %3369 }
 0x9a4   : > { %v3372_v62 = vunpack.i.h.bf16 %v3370_v56  ;;  %v3371_v59 = vunpack.i.l.bf16 %v3370_v56  ;;  %v5245_v56 = vld [vmem:[#allocation10_spill] sm:$0xff] }
 0x9a5   : > { %v2964_v13 = vsel %vm405_vm1, %v5245_v56, %v3406_v5 }
 0x9a6   : > { %v2992_v29 = vsel %vm2984_vm3, %v2975_v25, %v3372_v62  ;;  %v2991_v45 = vsel %vm2984_vm3, %v2974_v6, %v3371_v59  ;;  %v2980_v4 = vsel %vm615_vm2, %v2964_v13, %v3411_v40 }
 0x9a7   : > { %v3004_v28 = vpack.c.bf16 %v2992_v29, %v2991_v45 }
 0x9ab   : > { %3274 = vmatmul.msk.bf16.gmra.mxu0 %vm300_vm0, %v3004_v28  ;;  %v3385_v30 = vpop.permute.xlu0 %3384  ;;  %v3420_v28 = vpop.permute.xlu2 %3419 }
 0x9ac   : > { %v3387_v12 = vunpack.i.h.bf16 %v3385_v30  ;;  %v3386_v26 = vunpack.i.l.bf16 %v3385_v30  ;;  %v3422_v24 = vunpack.i.h.bf16 %v3420_v28  ;;  %v3421_v30 = vunpack.i.l.bf16 %v3420_v28 }
 0x9ae   : > { %v2994_v14 = vsel %vm2984_vm3, %v2977_v3, %v3387_v12  ;;  %v2993_v47 = vsel %vm2984_vm3, %v2976_v50, %v3386_v26  ;;  %v2967_v12 = vsel %vm405_vm1, %v5246_v55, %v3422_v24  ;;  %v5247_v26 = vld [vmem:[#allocation16_spill] sm:$0xff] }
 0x9af   : > { %v3005_v54 = vpack.c.bf16 %v2994_v14, %v2993_v47  ;;  %v2966_v19 = vsel %vm405_vm1, %v5247_v26, %v3421_v30  ;;  %v2983_v50 = vsel %vm615_vm2, %v2967_v12, %v3427_v7 }
 0x9b0   : > { %v2982_v32 = vsel %vm615_vm2, %v2966_v19, %v3426_v22 }
 0x9bb   : > { %3275 = vmatmul.msk.bf16.gmra.mxu0 %vm300_vm0, %v3005_v54 }
 0x9da   : > { %v3062_v15 = vpop.f32.mrf.mxu0 }
 0x9db   : > { %v3063_v38 = vadd.f32 %v5100_v16, %v3062_v15  ;;  %v3400_v9 = vpop.permute.xlu0 %3399 }
 0x9dc   : > { %v3402_v41 = vunpack.i.h.bf16 %v3400_v9  ;;  %v3401_v57 = vunpack.i.l.bf16 %v3400_v9 }
 0x9dd   : > { %3102 = vst.msk [vmem:[%s5107_s30] sm:$0xff] %vm300_vm0, %v3063_v38 }
 0x9de   : > { %v2996_v48 = vsel %vm2984_vm3, %v2979_v51, %v3402_v41  ;;  %v2995_v8 = vsel %vm2984_vm3, %v2978_v39, %v3401_v57 }
 0x9df   : > { %v3006_v43 = vpack.c.bf16 %v2996_v48, %v2995_v8 }
 0x9e1   : > { %3276 = vmatmul.msk.bf16.gmra.mxu0 %vm300_vm0, %v3006_v43 }
 0x9e2   : > { %v3064_v52 = vpop.f32.mrf.mxu0 }
 0x9e3   : > { %v3065_v21 = vadd.f32 %v5100_v16, %v3064_v52  ;;  %v3415_v27 = vpop.permute.xlu0 %3414 }
 0x9e4   : > { %v3417_v46 = vunpack.i.h.bf16 %v3415_v27  ;;  %v3416_v42 = vunpack.i.l.bf16 %v3415_v27 }
 0x9e5   : > { %3103 = vst.msk [vmem:[%s5107_s30 + $0x8] sm:$0xff] %vm300_vm0, %v3065_v21 }
 0x9e6   : > { %v2998_v61 = vsel %vm2984_vm3, %v2981_v23, %v3417_v46  ;;  %v2997_v62 = vsel %vm2984_vm3, %v2980_v4, %v3416_v42 }
 0x9e7   : > { %v3007_v59 = vpack.c.bf16 %v2998_v61, %v2997_v62 }
 0x9f1   : > { %3277 = vmatmul.msk.bf16.gmra.mxu0 %vm300_vm0, %v3007_v59 }
 0x9f2   : > { %v3067_v6 = vpop.f32.mrf.mxu0 }
 0x9f3   : > { %v3068_v25 = vadd.f32 %v5100_v16, %v3067_v6 }
 0x9f5   : > { %3104 = vst.msk [vmem:[%s5107_s30 + $0x10] sm:$0xff] %vm300_vm0, %v3068_v25 }
 0x9fa   : > { %v3069_v29 = vpop.f32.mrf.mxu0 }
 0x9fb   : > { %v3070_v45 = vadd.f32 %v5100_v16, %v3069_v29 }
 0x9fd   : > { %3105 = vst.msk [vmem:[%s5107_s30 + $0x18] sm:$0xff] %vm300_vm0, %v3070_v45 }
 0xa11   : > { %v3430_v0 = vpop.permute.xlu0 %3429 }
 0xa12   : > { %v3432_v31 = vunpack.i.h.bf16 %v3430_v0  ;;  %v3431_v33 = vunpack.i.l.bf16 %v3430_v0 }
 0xa14   : > { %v3000_v3 = vsel %vm2984_vm3, %v2983_v50, %v3432_v31  ;;  %v2999_v14 = vsel %vm2984_vm3, %v2982_v32, %v3431_v33 }
 0xa15   : > { %v3008_v47 = vpack.c.bf16 %v3000_v3, %v2999_v14 }
 0xa17   : > { %3278 = vmatmul.msk.bf16.gmra.mxu0 %vm300_vm0, %v3008_v47 }
 0xa18   : > { %v3072_v54 = vpop.f32.mrf.mxu0 }
 0xa19   : > { %v3073_v10 = vadd.f32 %v5100_v16, %v3072_v54 }
 0xa1b   : > { %3106 = vst.msk [vmem:[%s5107_s30 + $0x20] sm:$0xff] %vm300_vm0, %v3073_v10 }
 0xa20   : > { %v3074_v17 = vpop.f32.mrf.mxu0 }
 0xa21   : > { %v3075_v34 = vadd.f32 %v5100_v16, %v3074_v17 }
 0xa23   : > { %3107 = vst.msk [vmem:[%s5107_s30 + $0x28] sm:$0xff] %vm300_vm0, %v3075_v34 }
 0xa28   : > { %v3077_v44 = vpop.f32.mrf.mxu0 }
 0xa29   : > { %v3078_v53 = vadd.f32 %v5100_v16, %v3077_v44 }
 0xa2b   : > { %3108 = vst.msk [vmem:[%s5107_s30 + $0x30] sm:$0xff] %vm300_vm0, %v3078_v53 }
 0xa30   : > { %v3079_v35 = vpop.f32.mrf.mxu0 }
 0xa31   : > { %v3080_v15 = vadd.f32 %v5100_v16, %v3079_v35 }
 0xa33   : > { %3109 = vst.msk [vmem:[%s5107_s30 + $0x38] sm:$0xff] %vm300_vm0, %v3080_v15 }
 0xa38   : > { %v3082_v38 = vpop.f32.mrf.mxu0 }
 0xa39   : > { %v3083_v9 = vadd.f32 %v5100_v16, %v3082_v38 }
 0xa3b   : > { %3110 = vst.msk [vmem:[%s5107_s30 + $0x40] sm:$0xff] %vm300_vm0, %v3083_v9 }
 0xa40   : > { %v3084_v60 = vpop.f32.mrf.mxu0 }
 0xa41   : > { %v3085_v18 = vadd.f32 %v5100_v16, %v3084_v60 }
 0xa43   : > { %3111 = vst.msk [vmem:[%s5107_s30 + $0x48] sm:$0xff] %vm300_vm0, %v3085_v18 }
 0xa5e   : > { %v3087_v58 = vpop.f32.mrf.mxu0 }
 0xa5f   : > { %v3088_v63 = vadd.f32 %v5100_v16, %v3087_v58 }
 0xa61   : > { %3112 = vst.msk [vmem:[%s5107_s30 + $0x50] sm:$0xff] %vm300_vm0, %v3088_v63 }
 0xa66   : > { %v3089_v41 = vpop.f32.mrf.mxu0 }
 0xa67   : > { %v3090_v57 = vadd.f32 %v5100_v16, %v3089_v41 }
 0xa69   : > { %3113 = vst.msk [vmem:[%s5107_s30 + $0x58] sm:$0xff] %vm300_vm0, %v3090_v57 }
 0xa6e   : > { %v3092_v39 = vpop.f32.mrf.mxu0 }
 0xa6f   : > { %v3093_v51 = vadd.f32 %v5100_v16, %v3092_v39 }
 0xa71   : > { %3114 = vst.msk [vmem:[%s5107_s30 + $0x60] sm:$0xff] %vm300_vm0, %v3093_v51 }
 0xa76   : > { %v3094_v48 = vpop.f32.mrf.mxu0 }
 0xa77   : > { %v3095_v8 = vadd.f32 %v5100_v16, %v3094_v48 }
 0xa79   : > { %3115 = vst.msk [vmem:[%s5107_s30 + $0x68] sm:$0xff] %vm300_vm0, %v3095_v8 }
 0xa94   : > { %v3097_v43 = vpop.f32.mrf.mxu0 }
 0xa95   : > { %v3098_v52 = vadd.f32 %v5100_v16, %v3097_v43 }
 0xa97   : > { %3116 = vst.msk [vmem:[%s5107_s30 + $0x70] sm:$0xff] %vm300_vm0, %v3098_v52 }
 0xa9c   : > { %v3099_v1 = vpop.f32.mrf.mxu0 }
 0xa9d   : > { %v3100_v21 = vadd.f32 %v5100_v16, %v3099_v1 }
 0xa9f   : > { %3117 = vst.msk [vmem:[%s5107_s30 + $0x78] sm:$0xff] %vm300_vm0, %v3100_v21 }
 0xaa0 PF: > { %s16_s21 = sadd.s32 1, %s3697_s21  }
 0xaa1   : > { %p13_p4 = scmp.ge.s32.totalorder %s16_s21, 4  }
 0xaa3   :  { %15 = sbr.rel (!%p13_p4) target bundleno = 1 (0x1), region = 74 }

</bundles_post_ra>
